<compile_context>
chip_gen: v7x
topology: tpu7x:2x2x1
jax: 0.10.0
libtpu: 0.0.40
codegen_flags: <defaults>
</compile_context>

<pallas_src>
import functools

import numpy as np

import jax
import jax.numpy as jnp
from jax.experimental import pallas as pl
from jax.experimental.pallas import tpu as pltpu


def _densenet_kernel(x_ref, w_ref, mask_ref, scale_ref, shift_ref, out_ref, *,
                     num_conv, W):
    """One batch image per grid step.

    x_ref     : (1, C, HW)             input feature map, spatial on lanes
    w_ref     : (num_conv*9*C, C, 1)   conv weights as (C_out, 1) columns per
                                       (layer, tap, c_in)
    mask_ref  : (9, 1, HW)             1/0 validity mask per 3x3 tap (padding=1)
    scale_ref : (num_conv, C, 1)       folded BN scale  gamma / sqrt(var+eps)
    shift_ref : (num_conv, C, 1)       folded BN shift  scale*(conv_b-mean)+beta
    out_ref   : (1, C, HW)
    """
    C = x_ref.shape[1]
    HW = x_ref.shape[2]
    f32 = jnp.float32

    # 3x3 taps as flat spatial offsets; same (dh, dw) order as the host prep.
    offsets = [dh * W + dw for dh in (-1, 0, 1) for dw in (-1, 0, 1)]
    # Tap masks are layer-invariant: hoist the loads out of the layer loop.
    tap_masks = [mask_ref[t] for t in range(9)]            # each (1, HW)

    cur = x_ref[0].astype(f32)                             # outs[l]   (C, HW)
    skip = jnp.zeros((C, HW), f32)                         # sum_{j<l} outs[j]

    for l in range(num_conv):
        # Dense skips are added before BN (PyTorch order); seed the conv
        # accumulator with the running skip sum.
        z = skip
        for t, s in enumerate(offsets):
            if s == 0:
                window = cur                               # center tap: all valid
            else:
                # window[:, p] == cur[:, p + s] where the (h+dh, w+dw)
                # neighbour is in-bounds; wrapped / row-crossing lanes are
                # exactly the masked-out ones, so the wrap is harmless.
                window = jnp.roll(cur, -s, axis=1) * tap_masks[t]
            for ci in range(C):
                w_col = w_ref[(l * 9 + t) * C + ci]        # (C_out, 1)
                z = z + w_col * window[ci:ci + 1, :]       # VPU broadcast-FMA

        # Eval-mode BN (+ conv bias) folded to per-channel affine, then ReLU.
        y = jnp.maximum(z * scale_ref[l] + shift_ref[l], 0.0)
        skip = skip + cur                                  # add outs[l] for next stage
        cur = y

    out_ref[0] = cur.astype(out_ref.dtype)


def single_level_densenet(x, conv_w, conv_b, bn_params, *, eps=1e-5):
    """x: (N, C, H, W) float32 NCHW.  Returns (N, C, H, W)."""
    N, C, H, W = x.shape
    L = len(conv_w)
    HW = H * W

    # ---- parameter glue (host side, tiny) --------------------------------
    # Conv weight (C_out, C_in, 3, 3) -> (layer, tap, c_in) rows of (C_out, 1).
    w_rows = []
    for l in range(L):
        wt = jnp.transpose(conv_w[l], (2, 3, 1, 0)).reshape(9, C, C)  # (t, ci, co)
        w_rows.append(wt)
    w_arr = jnp.stack(w_rows, 0).reshape(L * 9 * C, C)[:, :, None]    # (L*9*C, C, 1)

    # Fold eval-mode BN (+ conv bias) into per-channel scale / shift.
    scales, shifts = [], []
    for l in range(L):
        gamma, beta, mean, var = bn_params[l]
        s = gamma / jnp.sqrt(var + eps)
        scales.append(s)
        shifts.append(s * (conv_b[l] - mean) + beta)
    scale_arr = jnp.stack(scales, 0)[:, :, None]          # (L, C, 1)
    shift_arr = jnp.stack(shifts, 0)[:, :, None]          # (L, C, 1)

    # Tap validity masks (padding=1 boundaries on the flattened spatial axis).
    masks = np.zeros((9, 1, HW), np.float32)
    hh, ww = np.meshgrid(np.arange(H), np.arange(W), indexing="ij")
    t = 0
    for dh in (-1, 0, 1):
        for dw in (-1, 0, 1):
            valid = ((hh + dh >= 0) & (hh + dh < H) &
                     (ww + dw >= 0) & (ww + dw < W))
            masks[t, 0, :] = valid.reshape(-1).astype(np.float32)
            t += 1
    masks = jnp.asarray(masks)

    # NCHW -> (N, C, H*W): pure reshape, no transpose.
    x2 = x.reshape(N, C, HW)

    kernel = functools.partial(_densenet_kernel, num_conv=L, W=W)
    flops = N * L * (2 * 9 * C * C * HW + 12 * C * HW)
    bytes_accessed = 4 * (2 * N * C * HW + int(w_arr.size) + int(masks.size)
                          + 2 * L * C)

    out2 = pl.pallas_call(
        kernel,
        out_shape=jax.ShapeDtypeStruct((N, C, HW), x.dtype),
        grid_spec=pltpu.PrefetchScalarGridSpec(
            num_scalar_prefetch=0,
            grid=(N,),
            in_specs=[
                pl.BlockSpec((1, C, HW), lambda n: (n, 0, 0)),          # x
                pl.BlockSpec((L * 9 * C, C, 1), lambda n: (0, 0, 0)),   # weights
                pl.BlockSpec((9, 1, HW), lambda n: (0, 0, 0)),          # tap masks
                pl.BlockSpec((L, C, 1), lambda n: (0, 0, 0)),           # BN scale
                pl.BlockSpec((L, C, 1), lambda n: (0, 0, 0)),           # BN shift
            ],
            out_specs=pl.BlockSpec((1, C, HW), lambda n: (n, 0, 0)),
        ),
        compiler_params=pltpu.CompilerParams(
            dimension_semantics=("parallel",)),     # batch images independent
        cost_estimate=pl.CostEstimate(
            flops=int(flops), transcendentals=0,
            bytes_accessed=int(bytes_accessed)),
    )(x2, w_arr, masks, scale_arr, shift_arr)

    return out2.reshape(N, C, H, W)


def single_level_densenet_ref(x, conv_w, conv_b, bn_params, *, eps=1e-5):
    """Pure-JAX reference (eval-mode BN), matches the PyTorch forward."""
    outs = [x]
    for i in range(len(conv_w)):
        t = jax.lax.conv_general_dilated(
            outs[i], conv_w[i], window_strides=(1, 1),
            padding=((1, 1), (1, 1)),
            dimension_numbers=("NCHW", "OIHW", "NCHW"),
            precision=jax.lax.Precision.HIGHEST)
        t = t + conv_b[i][None, :, None, None]
        for j in range(i):
            t = t + outs[j]
        gamma, beta, mean, var = bn_params[i]
        s = gamma / jnp.sqrt(var + eps)
        t = (t - mean[None, :, None, None]) * s[None, :, None, None] \
            + beta[None, :, None, None]
        outs.append(jnp.maximum(t, 0.0))
    return outs[-1]


if __name__ == "__main__":
    # filters=4, num_conv=4, batch=2, spatial 16x16 (small but module-consistent).
    N, C, H, W = 2, 4, 16, 16
    num_conv = 4

    key = jax.random.PRNGKey(0)
    keys = jax.random.split(key, 1 + 6 * num_conv)
    x = jax.random.normal(keys[0], (N, C, H, W), jnp.float32)

    conv_w, conv_b, bn_params = [], [], []
    k = 1
    for _ in range(num_conv):
        conv_w.append(0.3 * jax.random.normal(keys[k], (C, C, 3, 3), jnp.float32)); k += 1
        conv_b.append(0.1 * jax.random.normal(keys[k], (C,), jnp.float32)); k += 1
        gamma = 1.0 + 0.1 * jax.random.normal(keys[k], (C,), jnp.float32); k += 1
        beta = 0.1 * jax.random.normal(keys[k], (C,), jnp.float32); k += 1
        mean = 0.05 * jax.random.normal(keys[k], (C,), jnp.float32); k += 1
        var = jnp.abs(1.0 + 0.1 * jax.random.normal(keys[k], (C,), jnp.float32)); k += 1
        bn_params.append((gamma, beta, mean, var))

    out = single_level_densenet(x, conv_w, conv_b, bn_params)
    out = jax.block_until_ready(out)

    ref = single_level_densenet_ref(x, conv_w, conv_b, bn_params)
    assert out.shape == (N, C, H, W)
    assert jnp.allclose(out, ref, atol=1e-4, rtol=1e-4), "Pallas kernel mismatch"

    print("KERNEL_OK")
</pallas_src>

<mosaic_0001>
module attributes {stable_mosaic.version = 11 : i64} {
  func.func @_densenet_kernel(%arg0: i32, %arg1: memref<1x4x256xf32, #tpu.memory_space<vmem>>, %arg2: memref<144x4x1xf32, #tpu.memory_space<vmem>>, %arg3: memref<9x1x256xf32, #tpu.memory_space<vmem>>, %arg4: memref<4x4x1xf32, #tpu.memory_space<vmem>>, %arg5: memref<4x4x1xf32, #tpu.memory_space<vmem>>, %arg6: memref<1x4x256xf32, #tpu.memory_space<vmem>>) attributes {dimension_semantics = [#tpu.dimension_semantics<parallel>], iteration_bounds = array<i64: 2>, scalar_prefetch = 0 : i64, scratch_operands = 0 : i64, tpu.core_type = #tpu.core_type<tc>, window_params = [{transform_indices = @transform_0, window_bounds = array<i64: 1, 4, 256>}, {pipeline_mode = #tpu.pipeline_mode<synchronous>, transform_indices = @transform_1, window_bounds = array<i64: 144, 4, 1>}, {pipeline_mode = #tpu.pipeline_mode<synchronous>, transform_indices = @transform_2, window_bounds = array<i64: 9, 1, 256>}, {pipeline_mode = #tpu.pipeline_mode<synchronous>, transform_indices = @transform_3, window_bounds = array<i64: 4, 4, 1>}, {pipeline_mode = #tpu.pipeline_mode<synchronous>, transform_indices = @transform_4, window_bounds = array<i64: 4, 4, 1>}, {transform_indices = @transform_5, window_bounds = array<i64: 1, 4, 256>}]} {
    %c0 = arith.constant 0 : index
    %c0_0 = arith.constant 0 : index
    %c0_1 = arith.constant 0 : index
    %0 = vector.load %arg3[%c0, %c0_0, %c0_1] : memref<9x1x256xf32, #tpu.memory_space<vmem>>, vector<1x1x256xf32>
    %1 = vector.shape_cast %0 : vector<1x1x256xf32> to vector<1x256xf32>
    %c1 = arith.constant 1 : index
    %c0_2 = arith.constant 0 : index
    %c0_3 = arith.constant 0 : index
    %2 = vector.load %arg3[%c1, %c0_2, %c0_3] : memref<9x1x256xf32, #tpu.memory_space<vmem>>, vector<1x1x256xf32>
    %3 = vector.shape_cast %2 : vector<1x1x256xf32> to vector<1x256xf32>
    %c2 = arith.constant 2 : index
    %c0_4 = arith.constant 0 : index
    %c0_5 = arith.constant 0 : index
    %4 = vector.load %arg3[%c2, %c0_4, %c0_5] : memref<9x1x256xf32, #tpu.memory_space<vmem>>, vector<1x1x256xf32>
    %5 = vector.shape_cast %4 : vector<1x1x256xf32> to vector<1x256xf32>
    %c3 = arith.constant 3 : index
    %c0_6 = arith.constant 0 : index
    %c0_7 = arith.constant 0 : index
    %6 = vector.load %arg3[%c3, %c0_6, %c0_7] : memref<9x1x256xf32, #tpu.memory_space<vmem>>, vector<1x1x256xf32>
    %7 = vector.shape_cast %6 : vector<1x1x256xf32> to vector<1x256xf32>
    %c5 = arith.constant 5 : index
    %c0_8 = arith.constant 0 : index
    %c0_9 = arith.constant 0 : index
    %8 = vector.load %arg3[%c5, %c0_8, %c0_9] : memref<9x1x256xf32, #tpu.memory_space<vmem>>, vector<1x1x256xf32>
    %9 = vector.shape_cast %8 : vector<1x1x256xf32> to vector<1x256xf32>
    %c6 = arith.constant 6 : index
    %c0_10 = arith.constant 0 : index
    %c0_11 = arith.constant 0 : index
    %10 = vector.load %arg3[%c6, %c0_10, %c0_11] : memref<9x1x256xf32, #tpu.memory_space<vmem>>, vector<1x1x256xf32>
    %11 = vector.shape_cast %10 : vector<1x1x256xf32> to vector<1x256xf32>
    %c7 = arith.constant 7 : index
    %c0_12 = arith.constant 0 : index
    %c0_13 = arith.constant 0 : index
    %12 = vector.load %arg3[%c7, %c0_12, %c0_13] : memref<9x1x256xf32, #tpu.memory_space<vmem>>, vector<1x1x256xf32>
    %13 = vector.shape_cast %12 : vector<1x1x256xf32> to vector<1x256xf32>
    %c8 = arith.constant 8 : index
    %c0_14 = arith.constant 0 : index
    %c0_15 = arith.constant 0 : index
    %14 = vector.load %arg3[%c8, %c0_14, %c0_15] : memref<9x1x256xf32, #tpu.memory_space<vmem>>, vector<1x1x256xf32>
    %15 = vector.shape_cast %14 : vector<1x1x256xf32> to vector<1x256xf32>
    %c0_16 = arith.constant 0 : index
    %c0_17 = arith.constant 0 : index
    %c0_18 = arith.constant 0 : index
    %16 = vector.load %arg1[%c0_16, %c0_17, %c0_18] : memref<1x4x256xf32, #tpu.memory_space<vmem>>, vector<1x4x256xf32>
    %17 = vector.shape_cast %16 : vector<1x4x256xf32> to vector<4x256xf32>
    %cst = arith.constant 0.000000e+00 : f32
    %18 = vector.broadcast %cst : f32 to vector<4x256xf32>
    %19 = vector.extract_strided_slice %17 {offsets = [0, 239], sizes = [4, 17], strides = [1, 1]} : vector<4x256xf32> to vector<4x17xf32>
    %20 = vector.extract_strided_slice %17 {offsets = [0, 0], sizes = [4, 239], strides = [1, 1]} : vector<4x256xf32> to vector<4x239xf32>
    %21 = tpu.concatenate %19, %20 in 1 : vector<4x17xf32>, vector<4x239xf32> -> vector<4x256xf32>
    %22 = vector.broadcast %1 : vector<1x256xf32> to vector<4x256xf32>
    %23 = arith.mulf %21, %22 : vector<4x256xf32>
    %c0_19 = arith.constant 0 : index
    %c0_20 = arith.constant 0 : index
    %c0_21 = arith.constant 0 : index
    %24 = vector.load %arg2[%c0_19, %c0_20, %c0_21] : memref<144x4x1xf32, #tpu.memory_space<vmem>>, vector<1x4x1xf32>
    %25 = vector.shape_cast %24 : vector<1x4x1xf32> to vector<4x1xf32>
    %26 = vector.extract_strided_slice %23 {offsets = [0, 0], sizes = [1, 256], strides = [1, 1]} : vector<4x256xf32> to vector<1x256xf32>
    %27 = vector.broadcast %25 : vector<4x1xf32> to vector<4x256xf32>
    %28 = vector.broadcast %26 : vector<1x256xf32> to vector<4x256xf32>
    %29 = arith.mulf %27, %28 : vector<4x256xf32>
    %30 = arith.addf %18, %29 : vector<4x256xf32>
    %c1_22 = arith.constant 1 : index
    %c0_23 = arith.constant 0 : index
    %c0_24 = arith.constant 0 : index
    %31 = vector.load %arg2[%c1_22, %c0_23, %c0_24] : memref<144x4x1xf32, #tpu.memory_space<vmem>>, vector<1x4x1xf32>
    %32 = vector.shape_cast %31 : vector<1x4x1xf32> to vector<4x1xf32>
    %33 = vector.extract_strided_slice %23 {offsets = [1, 0], sizes = [1, 256], strides = [1, 1]} : vector<4x256xf32> to vector<1x256xf32>
    %34 = vector.broadcast %32 : vector<4x1xf32> to vector<4x256xf32>
    %35 = vector.broadcast %33 : vector<1x256xf32> to vector<4x256xf32>
    %36 = arith.mulf %34, %35 : vector<4x256xf32>
    %37 = arith.addf %30, %36 : vector<4x256xf32>
    %c2_25 = arith.constant 2 : index
    %c0_26 = arith.constant 0 : index
    %c0_27 = arith.constant 0 : index
    %38 = vector.load %arg2[%c2_25, %c0_26, %c0_27] : memref<144x4x1xf32, #tpu.memory_space<vmem>>, vector<1x4x1xf32>
    %39 = vector.shape_cast %38 : vector<1x4x1xf32> to vector<4x1xf32>
    %40 = vector.extract_strided_slice %23 {offsets = [2, 0], sizes = [1, 256], strides = [1, 1]} : vector<4x256xf32> to vector<1x256xf32>
    %41 = vector.broadcast %39 : vector<4x1xf32> to vector<4x256xf32>
    %42 = vector.broadcast %40 : vector<1x256xf32> to vector<4x256xf32>
    %43 = arith.mulf %41, %42 : vector<4x256xf32>
    %44 = arith.addf %37, %43 : vector<4x256xf32>
    %c3_28 = arith.constant 3 : index
    %c0_29 = arith.constant 0 : index
    %c0_30 = arith.constant 0 : index
    %45 = vector.load %arg2[%c3_28, %c0_29, %c0_30] : memref<144x4x1xf32, #tpu.memory_space<vmem>>, vector<1x4x1xf32>
    %46 = vector.shape_cast %45 : vector<1x4x1xf32> to vector<4x1xf32>
    %47 = vector.extract_strided_slice %23 {offsets = [3, 0], sizes = [1, 256], strides = [1, 1]} : vector<4x256xf32> to vector<1x256xf32>
    %48 = vector.broadcast %46 : vector<4x1xf32> to vector<4x256xf32>
    %49 = vector.broadcast %47 : vector<1x256xf32> to vector<4x256xf32>
    %50 = arith.mulf %48, %49 : vector<4x256xf32>
    %51 = arith.addf %44, %50 : vector<4x256xf32>
    %52 = vector.extract_strided_slice %17 {offsets = [0, 240], sizes = [4, 16], strides = [1, 1]} : vector<4x256xf32> to vector<4x16xf32>
    %53 = vector.extract_strided_slice %17 {offsets = [0, 0], sizes = [4, 240], strides = [1, 1]} : vector<4x256xf32> to vector<4x240xf32>
    %54 = tpu.concatenate %52, %53 in 1 : vector<4x16xf32>, vector<4x240xf32> -> vector<4x256xf32>
    %55 = vector.broadcast %3 : vector<1x256xf32> to vector<4x256xf32>
    %56 = arith.mulf %54, %55 : vector<4x256xf32>
    %c4 = arith.constant 4 : index
    %c0_31 = arith.constant 0 : index
    %c0_32 = arith.constant 0 : index
    %57 = vector.load %arg2[%c4, %c0_31, %c0_32] : memref<144x4x1xf32, #tpu.memory_space<vmem>>, vector<1x4x1xf32>
    %58 = vector.shape_cast %57 : vector<1x4x1xf32> to vector<4x1xf32>
    %59 = vector.extract_strided_slice %56 {offsets = [0, 0], sizes = [1, 256], strides = [1, 1]} : vector<4x256xf32> to vector<1x256xf32>
    %60 = vector.broadcast %58 : vector<4x1xf32> to vector<4x256xf32>
    %61 = vector.broadcast %59 : vector<1x256xf32> to vector<4x256xf32>
    %62 = arith.mulf %60, %61 : vector<4x256xf32>
    %63 = arith.addf %51, %62 : vector<4x256xf32>
    %c5_33 = arith.constant 5 : index
    %c0_34 = arith.constant 0 : index
    %c0_35 = arith.constant 0 : index
    %64 = vector.load %arg2[%c5_33, %c0_34, %c0_35] : memref<144x4x1xf32, #tpu.memory_space<vmem>>, vector<1x4x1xf32>
    %65 = vector.shape_cast %64 : vector<1x4x1xf32> to vector<4x1xf32>
    %66 = vector.extract_strided_slice %56 {offsets = [1, 0], sizes = [1, 256], strides = [1, 1]} : vector<4x256xf32> to vector<1x256xf32>
    %67 = vector.broadcast %65 : vector<4x1xf32> to vector<4x256xf32>
    %68 = vector.broadcast %66 : vector<1x256xf32> to vector<4x256xf32>
    %69 = arith.mulf %67, %68 : vector<4x256xf32>
    %70 = arith.addf %63, %69 : vector<4x256xf32>
    %c6_36 = arith.constant 6 : index
    %c0_37 = arith.constant 0 : index
    %c0_38 = arith.constant 0 : index
    %71 = vector.load %arg2[%c6_36, %c0_37, %c0_38] : memref<144x4x1xf32, #tpu.memory_space<vmem>>, vector<1x4x1xf32>
    %72 = vector.shape_cast %71 : vector<1x4x1xf32> to vector<4x1xf32>
    %73 = vector.extract_strided_slice %56 {offsets = [2, 0], sizes = [1, 256], strides = [1, 1]} : vector<4x256xf32> to vector<1x256xf32>
    %74 = vector.broadcast %72 : vector<4x1xf32> to vector<4x256xf32>
    %75 = vector.broadcast %73 : vector<1x256xf32> to vector<4x256xf32>
    %76 = arith.mulf %74, %75 : vector<4x256xf32>
    %77 = arith.addf %70, %76 : vector<4x256xf32>
    %c7_39 = arith.constant 7 : index
    %c0_40 = arith.constant 0 : index
    %c0_41 = arith.constant 0 : index
    %78 = vector.load %arg2[%c7_39, %c0_40, %c0_41] : memref<144x4x1xf32, #tpu.memory_space<vmem>>, vector<1x4x1xf32>
    %79 = vector.shape_cast %78 : vector<1x4x1xf32> to vector<4x1xf32>
    %80 = vector.extract_strided_slice %56 {offsets = [3, 0], sizes = [1, 256], strides = [1, 1]} : vector<4x256xf32> to vector<1x256xf32>
    %81 = vector.broadcast %79 : vector<4x1xf32> to vector<4x256xf32>
    %82 = vector.broadcast %80 : vector<1x256xf32> to vector<4x256xf32>
    %83 = arith.mulf %81, %82 : vector<4x256xf32>
    %84 = arith.addf %77, %83 : vector<4x256xf32>
    %85 = vector.extract_strided_slice %17 {offsets = [0, 241], sizes = [4, 15], strides = [1, 1]} : vector<4x256xf32> to vector<4x15xf32>
    %86 = vector.extract_strided_slice %17 {offsets = [0, 0], sizes = [4, 241], strides = [1, 1]} : vector<4x256xf32> to vector<4x241xf32>
    %87 = tpu.concatenate %85, %86 in 1 : vector<4x15xf32>, vector<4x241xf32> -> vector<4x256xf32>
    %88 = vector.broadcast %5 : vector<1x256xf32> to vector<4x256xf32>
    %89 = arith.mulf %87, %88 : vector<4x256xf32>
    %c8_42 = arith.constant 8 : index
    %c0_43 = arith.constant 0 : index
    %c0_44 = arith.constant 0 : index
    %90 = vector.load %arg2[%c8_42, %c0_43, %c0_44] : memref<144x4x1xf32, #tpu.memory_space<vmem>>, vector<1x4x1xf32>
    %91 = vector.shape_cast %90 : vector<1x4x1xf32> to vector<4x1xf32>
    %92 = vector.extract_strided_slice %89 {offsets = [0, 0], sizes = [1, 256], strides = [1, 1]} : vector<4x256xf32> to vector<1x256xf32>
    %93 = vector.broadcast %91 : vector<4x1xf32> to vector<4x256xf32>
    %94 = vector.broadcast %92 : vector<1x256xf32> to vector<4x256xf32>
    %95 = arith.mulf %93, %94 : vector<4x256xf32>
    %96 = arith.addf %84, %95 : vector<4x256xf32>
    %c9 = arith.constant 9 : index
    %c0_45 = arith.constant 0 : index
    %c0_46 = arith.constant 0 : index
    %97 = vector.load %arg2[%c9, %c0_45, %c0_46] : memref<144x4x1xf32, #tpu.memory_space<vmem>>, vector<1x4x1xf32>
    %98 = vector.shape_cast %97 : vector<1x4x1xf32> to vector<4x1xf32>
    %99 = vector.extract_strided_slice %89 {offsets = [1, 0], sizes = [1, 256], strides = [1, 1]} : vector<4x256xf32> to vector<1x256xf32>
    %100 = vector.broadcast %98 : vector<4x1xf32> to vector<4x256xf32>
    %101 = vector.broadcast %99 : vector<1x256xf32> to vector<4x256xf32>
    %102 = arith.mulf %100, %101 : vector<4x256xf32>
    %103 = arith.addf %96, %102 : vector<4x256xf32>
    %c10 = arith.constant 10 : index
    %c0_47 = arith.constant 0 : index
    %c0_48 = arith.constant 0 : index
    %104 = vector.load %arg2[%c10, %c0_47, %c0_48] : memref<144x4x1xf32, #tpu.memory_space<vmem>>, vector<1x4x1xf32>
    %105 = vector.shape_cast %104 : vector<1x4x1xf32> to vector<4x1xf32>
    %106 = vector.extract_strided_slice %89 {offsets = [2, 0], sizes = [1, 256], strides = [1, 1]} : vector<4x256xf32> to vector<1x256xf32>
    %107 = vector.broadcast %105 : vector<4x1xf32> to vector<4x256xf32>
    %108 = vector.broadcast %106 : vector<1x256xf32> to vector<4x256xf32>
    %109 = arith.mulf %107, %108 : vector<4x256xf32>
    %110 = arith.addf %103, %109 : vector<4x256xf32>
    %c11 = arith.constant 11 : index
    %c0_49 = arith.constant 0 : index
    %c0_50 = arith.constant 0 : index
    %111 = vector.load %arg2[%c11, %c0_49, %c0_50] : memref<144x4x1xf32, #tpu.memory_space<vmem>>, vector<1x4x1xf32>
    %112 = vector.shape_cast %111 : vector<1x4x1xf32> to vector<4x1xf32>
    %113 = vector.extract_strided_slice %89 {offsets = [3, 0], sizes = [1, 256], strides = [1, 1]} : vector<4x256xf32> to vector<1x256xf32>
    %114 = vector.broadcast %112 : vector<4x1xf32> to vector<4x256xf32>
    %115 = vector.broadcast %113 : vector<1x256xf32> to vector<4x256xf32>
    %116 = arith.mulf %114, %115 : vector<4x256xf32>
    %117 = arith.addf %110, %116 : vector<4x256xf32>
    %118 = vector.extract_strided_slice %17 {offsets = [0, 255], sizes = [4, 1], strides = [1, 1]} : vector<4x256xf32> to vector<4x1xf32>
    %119 = vector.extract_strided_slice %17 {offsets = [0, 0], sizes = [4, 255], strides = [1, 1]} : vector<4x256xf32> to vector<4x255xf32>
    %120 = tpu.concatenate %118, %119 in 1 : vector<4x1xf32>, vector<4x255xf32> -> vector<4x256xf32>
    %121 = vector.broadcast %7 : vector<1x256xf32> to vector<4x256xf32>
    %122 = arith.mulf %120, %121 : vector<4x256xf32>
    %c12 = arith.constant 12 : index
    %c0_51 = arith.constant 0 : index
    %c0_52 = arith.constant 0 : index
    %123 = vector.load %arg2[%c12, %c0_51, %c0_52] : memref<144x4x1xf32, #tpu.memory_space<vmem>>, vector<1x4x1xf32>
    %124 = vector.shape_cast %123 : vector<1x4x1xf32> to vector<4x1xf32>
    %125 = vector.extract_strided_slice %122 {offsets = [0, 0], sizes = [1, 256], strides = [1, 1]} : vector<4x256xf32> to vector<1x256xf32>
    %126 = vector.broadcast %124 : vector<4x1xf32> to vector<4x256xf32>
    %127 = vector.broadcast %125 : vector<1x256xf32> to vector<4x256xf32>
    %128 = arith.mulf %126, %127 : vector<4x256xf32>
    %129 = arith.addf %117, %128 : vector<4x256xf32>
    %c13 = arith.constant 13 : index
    %c0_53 = arith.constant 0 : index
    %c0_54 = arith.constant 0 : index
    %130 = vector.load %arg2[%c13, %c0_53, %c0_54] : memref<144x4x1xf32, #tpu.memory_space<vmem>>, vector<1x4x1xf32>
    %131 = vector.shape_cast %130 : vector<1x4x1xf32> to vector<4x1xf32>
    %132 = vector.extract_strided_slice %122 {offsets = [1, 0], sizes = [1, 256], strides = [1, 1]} : vector<4x256xf32> to vector<1x256xf32>
    %133 = vector.broadcast %131 : vector<4x1xf32> to vector<4x256xf32>
    %134 = vector.broadcast %132 : vector<1x256xf32> to vector<4x256xf32>
    %135 = arith.mulf %133, %134 : vector<4x256xf32>
    %136 = arith.addf %129, %135 : vector<4x256xf32>
    %c14 = arith.constant 14 : index
    %c0_55 = arith.constant 0 : index
    %c0_56 = arith.constant 0 : index
    %137 = vector.load %arg2[%c14, %c0_55, %c0_56] : memref<144x4x1xf32, #tpu.memory_space<vmem>>, vector<1x4x1xf32>
    %138 = vector.shape_cast %137 : vector<1x4x1xf32> to vector<4x1xf32>
    %139 = vector.extract_strided_slice %122 {offsets = [2, 0], sizes = [1, 256], strides = [1, 1]} : vector<4x256xf32> to vector<1x256xf32>
    %140 = vector.broadcast %138 : vector<4x1xf32> to vector<4x256xf32>
    %141 = vector.broadcast %139 : vector<1x256xf32> to vector<4x256xf32>
    %142 = arith.mulf %140, %141 : vector<4x256xf32>
    %143 = arith.addf %136, %142 : vector<4x256xf32>
    %c15 = arith.constant 15 : index
    %c0_57 = arith.constant 0 : index
    %c0_58 = arith.constant 0 : index
    %144 = vector.load %arg2[%c15, %c0_57, %c0_58] : memref<144x4x1xf32, #tpu.memory_space<vmem>>, vector<1x4x1xf32>
    %145 = vector.shape_cast %144 : vector<1x4x1xf32> to vector<4x1xf32>
    %146 = vector.extract_strided_slice %122 {offsets = [3, 0], sizes = [1, 256], strides = [1, 1]} : vector<4x256xf32> to vector<1x256xf32>
    %147 = vector.broadcast %145 : vector<4x1xf32> to vector<4x256xf32>
    %148 = vector.broadcast %146 : vector<1x256xf32> to vector<4x256xf32>
    %149 = arith.mulf %147, %148 : vector<4x256xf32>
    %150 = arith.addf %143, %149 : vector<4x256xf32>
    %c16 = arith.constant 16 : index
    %c0_59 = arith.constant 0 : index
    %c0_60 = arith.constant 0 : index
    %151 = vector.load %arg2[%c16, %c0_59, %c0_60] : memref<144x4x1xf32, #tpu.memory_space<vmem>>, vector<1x4x1xf32>
    %152 = vector.shape_cast %151 : vector<1x4x1xf32> to vector<4x1xf32>
    %153 = vector.extract_strided_slice %17 {offsets = [0, 0], sizes = [1, 256], strides = [1, 1]} : vector<4x256xf32> to vector<1x256xf32>
    %154 = vector.broadcast %152 : vector<4x1xf32> to vector<4x256xf32>
    %155 = vector.broadcast %153 : vector<1x256xf32> to vector<4x256xf32>
    %156 = arith.mulf %154, %155 : vector<4x256xf32>
    %157 = arith.addf %150, %156 : vector<4x256xf32>
    %c17 = arith.constant 17 : index
    %c0_61 = arith.constant 0 : index
    %c0_62 = arith.constant 0 : index
    %158 = vector.load %arg2[%c17, %c0_61, %c0_62] : memref<144x4x1xf32, #tpu.memory_space<vmem>>, vector<1x4x1xf32>
    %159 = vector.shape_cast %158 : vector<1x4x1xf32> to vector<4x1xf32>
    %160 = vector.extract_strided_slice %17 {offsets = [1, 0], sizes = [1, 256], strides = [1, 1]} : vector<4x256xf32> to vector<1x256xf32>
    %161 = vector.broadcast %159 : vector<4x1xf32> to vector<4x256xf32>
    %162 = vector.broadcast %160 : vector<1x256xf32> to vector<4x256xf32>
    %163 = arith.mulf %161, %162 : vector<4x256xf32>
    %164 = arith.addf %157, %163 : vector<4x256xf32>
    %c18 = arith.constant 18 : index
    %c0_63 = arith.constant 0 : index
    %c0_64 = arith.constant 0 : index
    %165 = vector.load %arg2[%c18, %c0_63, %c0_64] : memref<144x4x1xf32, #tpu.memory_space<vmem>>, vector<1x4x1xf32>
    %166 = vector.shape_cast %165 : vector<1x4x1xf32> to vector<4x1xf32>
    %167 = vector.extract_strided_slice %17 {offsets = [2, 0], sizes = [1, 256], strides = [1, 1]} : vector<4x256xf32> to vector<1x256xf32>
    %168 = vector.broadcast %166 : vector<4x1xf32> to vector<4x256xf32>
    %169 = vector.broadcast %167 : vector<1x256xf32> to vector<4x256xf32>
    %170 = arith.mulf %168, %169 : vector<4x256xf32>
    %171 = arith.addf %164, %170 : vector<4x256xf32>
    %c19 = arith.constant 19 : index
    %c0_65 = arith.constant 0 : index
    %c0_66 = arith.constant 0 : index
    %172 = vector.load %arg2[%c19, %c0_65, %c0_66] : memref<144x4x1xf32, #tpu.memory_space<vmem>>, vector<1x4x1xf32>
    %173 = vector.shape_cast %172 : vector<1x4x1xf32> to vector<4x1xf32>
    %174 = vector.extract_strided_slice %17 {offsets = [3, 0], sizes = [1, 256], strides = [1, 1]} : vector<4x256xf32> to vector<1x256xf32>
    %175 = vector.broadcast %173 : vector<4x1xf32> to vector<4x256xf32>
    %176 = vector.broadcast %174 : vector<1x256xf32> to vector<4x256xf32>
    %177 = arith.mulf %175, %176 : vector<4x256xf32>
    %178 = arith.addf %171, %177 : vector<4x256xf32>
    %179 = vector.extract_strided_slice %17 {offsets = [0, 1], sizes = [4, 255], strides = [1, 1]} : vector<4x256xf32> to vector<4x255xf32>
    %180 = vector.extract_strided_slice %17 {offsets = [0, 0], sizes = [4, 1], strides = [1, 1]} : vector<4x256xf32> to vector<4x1xf32>
    %181 = tpu.concatenate %179, %180 in 1 : vector<4x255xf32>, vector<4x1xf32> -> vector<4x256xf32>
    %182 = vector.broadcast %9 : vector<1x256xf32> to vector<4x256xf32>
    %183 = arith.mulf %181, %182 : vector<4x256xf32>
    %c20 = arith.constant 20 : index
    %c0_67 = arith.constant 0 : index
    %c0_68 = arith.constant 0 : index
    %184 = vector.load %arg2[%c20, %c0_67, %c0_68] : memref<144x4x1xf32, #tpu.memory_space<vmem>>, vector<1x4x1xf32>
    %185 = vector.shape_cast %184 : vector<1x4x1xf32> to vector<4x1xf32>
    %186 = vector.extract_strided_slice %183 {offsets = [0, 0], sizes = [1, 256], strides = [1, 1]} : vector<4x256xf32> to vector<1x256xf32>
    %187 = vector.broadcast %185 : vector<4x1xf32> to vector<4x256xf32>
    %188 = vector.broadcast %186 : vector<1x256xf32> to vector<4x256xf32>
    %189 = arith.mulf %187, %188 : vector<4x256xf32>
    %190 = arith.addf %178, %189 : vector<4x256xf32>
    %c21 = arith.constant 21 : index
    %c0_69 = arith.constant 0 : index
    %c0_70 = arith.constant 0 : index
    %191 = vector.load %arg2[%c21, %c0_69, %c0_70] : memref<144x4x1xf32, #tpu.memory_space<vmem>>, vector<1x4x1xf32>
    %192 = vector.shape_cast %191 : vector<1x4x1xf32> to vector<4x1xf32>
    %193 = vector.extract_strided_slice %183 {offsets = [1, 0], sizes = [1, 256], strides = [1, 1]} : vector<4x256xf32> to vector<1x256xf32>
    %194 = vector.broadcast %192 : vector<4x1xf32> to vector<4x256xf32>
    %195 = vector.broadcast %193 : vector<1x256xf32> to vector<4x256xf32>
    %196 = arith.mulf %194, %195 : vector<4x256xf32>
    %197 = arith.addf %190, %196 : vector<4x256xf32>
    %c22 = arith.constant 22 : index
    %c0_71 = arith.constant 0 : index
    %c0_72 = arith.constant 0 : index
    %198 = vector.load %arg2[%c22, %c0_71, %c0_72] : memref<144x4x1xf32, #tpu.memory_space<vmem>>, vector<1x4x1xf32>
    %199 = vector.shape_cast %198 : vector<1x4x1xf32> to vector<4x1xf32>
    %200 = vector.extract_strided_slice %183 {offsets = [2, 0], sizes = [1, 256], strides = [1, 1]} : vector<4x256xf32> to vector<1x256xf32>
    %201 = vector.broadcast %199 : vector<4x1xf32> to vector<4x256xf32>
    %202 = vector.broadcast %200 : vector<1x256xf32> to vector<4x256xf32>
    %203 = arith.mulf %201, %202 : vector<4x256xf32>
    %204 = arith.addf %197, %203 : vector<4x256xf32>
    %c23 = arith.constant 23 : index
    %c0_73 = arith.constant 0 : index
    %c0_74 = arith.constant 0 : index
    %205 = vector.load %arg2[%c23, %c0_73, %c0_74] : memref<144x4x1xf32, #tpu.memory_space<vmem>>, vector<1x4x1xf32>
    %206 = vector.shape_cast %205 : vector<1x4x1xf32> to vector<4x1xf32>
    %207 = vector.extract_strided_slice %183 {offsets = [3, 0], sizes = [1, 256], strides = [1, 1]} : vector<4x256xf32> to vector<1x256xf32>
    %208 = vector.broadcast %206 : vector<4x1xf32> to vector<4x256xf32>
    %209 = vector.broadcast %207 : vector<1x256xf32> to vector<4x256xf32>
    %210 = arith.mulf %208, %209 : vector<4x256xf32>
    %211 = arith.addf %204, %210 : vector<4x256xf32>
    %212 = vector.extract_strided_slice %17 {offsets = [0, 15], sizes = [4, 241], strides = [1, 1]} : vector<4x256xf32> to vector<4x241xf32>
    %213 = vector.extract_strided_slice %17 {offsets = [0, 0], sizes = [4, 15], strides = [1, 1]} : vector<4x256xf32> to vector<4x15xf32>
    %214 = tpu.concatenate %212, %213 in 1 : vector<4x241xf32>, vector<4x15xf32> -> vector<4x256xf32>
    %215 = vector.broadcast %11 : vector<1x256xf32> to vector<4x256xf32>
    %216 = arith.mulf %214, %215 : vector<4x256xf32>
    %c24 = arith.constant 24 : index
    %c0_75 = arith.constant 0 : index
    %c0_76 = arith.constant 0 : index
    %217 = vector.load %arg2[%c24, %c0_75, %c0_76] : memref<144x4x1xf32, #tpu.memory_space<vmem>>, vector<1x4x1xf32>
    %218 = vector.shape_cast %217 : vector<1x4x1xf32> to vector<4x1xf32>
    %219 = vector.extract_strided_slice %216 {offsets = [0, 0], sizes = [1, 256], strides = [1, 1]} : vector<4x256xf32> to vector<1x256xf32>
    %220 = vector.broadcast %218 : vector<4x1xf32> to vector<4x256xf32>
    %221 = vector.broadcast %219 : vector<1x256xf32> to vector<4x256xf32>
    %222 = arith.mulf %220, %221 : vector<4x256xf32>
    %223 = arith.addf %211, %222 : vector<4x256xf32>
    %c25 = arith.constant 25 : index
    %c0_77 = arith.constant 0 : index
    %c0_78 = arith.constant 0 : index
    %224 = vector.load %arg2[%c25, %c0_77, %c0_78] : memref<144x4x1xf32, #tpu.memory_space<vmem>>, vector<1x4x1xf32>
    %225 = vector.shape_cast %224 : vector<1x4x1xf32> to vector<4x1xf32>
    %226 = vector.extract_strided_slice %216 {offsets = [1, 0], sizes = [1, 256], strides = [1, 1]} : vector<4x256xf32> to vector<1x256xf32>
    %227 = vector.broadcast %225 : vector<4x1xf32> to vector<4x256xf32>
    %228 = vector.broadcast %226 : vector<1x256xf32> to vector<4x256xf32>
    %229 = arith.mulf %227, %228 : vector<4x256xf32>
    %230 = arith.addf %223, %229 : vector<4x256xf32>
    %c26 = arith.constant 26 : index
    %c0_79 = arith.constant 0 : index
    %c0_80 = arith.constant 0 : index
    %231 = vector.load %arg2[%c26, %c0_79, %c0_80] : memref<144x4x1xf32, #tpu.memory_space<vmem>>, vector<1x4x1xf32>
    %232 = vector.shape_cast %231 : vector<1x4x1xf32> to vector<4x1xf32>
    %233 = vector.extract_strided_slice %216 {offsets = [2, 0], sizes = [1, 256], strides = [1, 1]} : vector<4x256xf32> to vector<1x256xf32>
    %234 = vector.broadcast %232 : vector<4x1xf32> to vector<4x256xf32>
    %235 = vector.broadcast %233 : vector<1x256xf32> to vector<4x256xf32>
    %236 = arith.mulf %234, %235 : vector<4x256xf32>
    %237 = arith.addf %230, %236 : vector<4x256xf32>
    %c27 = arith.constant 27 : index
    %c0_81 = arith.constant 0 : index
    %c0_82 = arith.constant 0 : index
    %238 = vector.load %arg2[%c27, %c0_81, %c0_82] : memref<144x4x1xf32, #tpu.memory_space<vmem>>, vector<1x4x1xf32>
    %239 = vector.shape_cast %238 : vector<1x4x1xf32> to vector<4x1xf32>
    %240 = vector.extract_strided_slice %216 {offsets = [3, 0], sizes = [1, 256], strides = [1, 1]} : vector<4x256xf32> to vector<1x256xf32>
    %241 = vector.broadcast %239 : vector<4x1xf32> to vector<4x256xf32>
    %242 = vector.broadcast %240 : vector<1x256xf32> to vector<4x256xf32>
    %243 = arith.mulf %241, %242 : vector<4x256xf32>
    %244 = arith.addf %237, %243 : vector<4x256xf32>
    %245 = vector.extract_strided_slice %17 {offsets = [0, 16], sizes = [4, 240], strides = [1, 1]} : vector<4x256xf32> to vector<4x240xf32>
    %246 = vector.extract_strided_slice %17 {offsets = [0, 0], sizes = [4, 16], strides = [1, 1]} : vector<4x256xf32> to vector<4x16xf32>
    %247 = tpu.concatenate %245, %246 in 1 : vector<4x240xf32>, vector<4x16xf32> -> vector<4x256xf32>
    %248 = vector.broadcast %13 : vector<1x256xf32> to vector<4x256xf32>
    %249 = arith.mulf %247, %248 : vector<4x256xf32>
    %c28 = arith.constant 28 : index
    %c0_83 = arith.constant 0 : index
    %c0_84 = arith.constant 0 : index
    %250 = vector.load %arg2[%c28, %c0_83, %c0_84] : memref<144x4x1xf32, #tpu.memory_space<vmem>>, vector<1x4x1xf32>
    %251 = vector.shape_cast %250 : vector<1x4x1xf32> to vector<4x1xf32>
    %252 = vector.extract_strided_slice %249 {offsets = [0, 0], sizes = [1, 256], strides = [1, 1]} : vector<4x256xf32> to vector<1x256xf32>
    %253 = vector.broadcast %251 : vector<4x1xf32> to vector<4x256xf32>
    %254 = vector.broadcast %252 : vector<1x256xf32> to vector<4x256xf32>
    %255 = arith.mulf %253, %254 : vector<4x256xf32>
    %256 = arith.addf %244, %255 : vector<4x256xf32>
    %c29 = arith.constant 29 : index
    %c0_85 = arith.constant 0 : index
    %c0_86 = arith.constant 0 : index
    %257 = vector.load %arg2[%c29, %c0_85, %c0_86] : memref<144x4x1xf32, #tpu.memory_space<vmem>>, vector<1x4x1xf32>
    %258 = vector.shape_cast %257 : vector<1x4x1xf32> to vector<4x1xf32>
    %259 = vector.extract_strided_slice %249 {offsets = [1, 0], sizes = [1, 256], strides = [1, 1]} : vector<4x256xf32> to vector<1x256xf32>
    %260 = vector.broadcast %258 : vector<4x1xf32> to vector<4x256xf32>
    %261 = vector.broadcast %259 : vector<1x256xf32> to vector<4x256xf32>
    %262 = arith.mulf %260, %261 : vector<4x256xf32>
    %263 = arith.addf %256, %262 : vector<4x256xf32>
    %c30 = arith.constant 30 : index
    %c0_87 = arith.constant 0 : index
    %c0_88 = arith.constant 0 : index
    %264 = vector.load %arg2[%c30, %c0_87, %c0_88] : memref<144x4x1xf32, #tpu.memory_space<vmem>>, vector<1x4x1xf32>
    %265 = vector.shape_cast %264 : vector<1x4x1xf32> to vector<4x1xf32>
    %266 = vector.extract_strided_slice %249 {offsets = [2, 0], sizes = [1, 256], strides = [1, 1]} : vector<4x256xf32> to vector<1x256xf32>
    %267 = vector.broadcast %265 : vector<4x1xf32> to vector<4x256xf32>
    %268 = vector.broadcast %266 : vector<1x256xf32> to vector<4x256xf32>
    %269 = arith.mulf %267, %268 : vector<4x256xf32>
    %270 = arith.addf %263, %269 : vector<4x256xf32>
    %c31 = arith.constant 31 : index
    %c0_89 = arith.constant 0 : index
    %c0_90 = arith.constant 0 : index
    %271 = vector.load %arg2[%c31, %c0_89, %c0_90] : memref<144x4x1xf32, #tpu.memory_space<vmem>>, vector<1x4x1xf32>
    %272 = vector.shape_cast %271 : vector<1x4x1xf32> to vector<4x1xf32>
    %273 = vector.extract_strided_slice %249 {offsets = [3, 0], sizes = [1, 256], strides = [1, 1]} : vector<4x256xf32> to vector<1x256xf32>
    %274 = vector.broadcast %272 : vector<4x1xf32> to vector<4x256xf32>
    %275 = vector.broadcast %273 : vector<1x256xf32> to vector<4x256xf32>
    %276 = arith.mulf %274, %275 : vector<4x256xf32>
    %277 = arith.addf %270, %276 : vector<4x256xf32>
    %278 = vector.extract_strided_slice %17 {offsets = [0, 17], sizes = [4, 239], strides = [1, 1]} : vector<4x256xf32> to vector<4x239xf32>
    %279 = vector.extract_strided_slice %17 {offsets = [0, 0], sizes = [4, 17], strides = [1, 1]} : vector<4x256xf32> to vector<4x17xf32>
    %280 = tpu.concatenate %278, %279 in 1 : vector<4x239xf32>, vector<4x17xf32> -> vector<4x256xf32>
    %281 = vector.broadcast %15 : vector<1x256xf32> to vector<4x256xf32>
    %282 = arith.mulf %280, %281 : vector<4x256xf32>
    %c32 = arith.constant 32 : index
    %c0_91 = arith.constant 0 : index
    %c0_92 = arith.constant 0 : index
    %283 = vector.load %arg2[%c32, %c0_91, %c0_92] : memref<144x4x1xf32, #tpu.memory_space<vmem>>, vector<1x4x1xf32>
    %284 = vector.shape_cast %283 : vector<1x4x1xf32> to vector<4x1xf32>
    %285 = vector.extract_strided_slice %282 {offsets = [0, 0], sizes = [1, 256], strides = [1, 1]} : vector<4x256xf32> to vector<1x256xf32>
    %286 = vector.broadcast %284 : vector<4x1xf32> to vector<4x256xf32>
    %287 = vector.broadcast %285 : vector<1x256xf32> to vector<4x256xf32>
    %288 = arith.mulf %286, %287 : vector<4x256xf32>
    %289 = arith.addf %277, %288 : vector<4x256xf32>
    %c33 = arith.constant 33 : index
    %c0_93 = arith.constant 0 : index
    %c0_94 = arith.constant 0 : index
    %290 = vector.load %arg2[%c33, %c0_93, %c0_94] : memref<144x4x1xf32, #tpu.memory_space<vmem>>, vector<1x4x1xf32>
    %291 = vector.shape_cast %290 : vector<1x4x1xf32> to vector<4x1xf32>
    %292 = vector.extract_strided_slice %282 {offsets = [1, 0], sizes = [1, 256], strides = [1, 1]} : vector<4x256xf32> to vector<1x256xf32>
    %293 = vector.broadcast %291 : vector<4x1xf32> to vector<4x256xf32>
    %294 = vector.broadcast %292 : vector<1x256xf32> to vector<4x256xf32>
    %295 = arith.mulf %293, %294 : vector<4x256xf32>
    %296 = arith.addf %289, %295 : vector<4x256xf32>
    %c34 = arith.constant 34 : index
    %c0_95 = arith.constant 0 : index
    %c0_96 = arith.constant 0 : index
    %297 = vector.load %arg2[%c34, %c0_95, %c0_96] : memref<144x4x1xf32, #tpu.memory_space<vmem>>, vector<1x4x1xf32>
    %298 = vector.shape_cast %297 : vector<1x4x1xf32> to vector<4x1xf32>
    %299 = vector.extract_strided_slice %282 {offsets = [2, 0], sizes = [1, 256], strides = [1, 1]} : vector<4x256xf32> to vector<1x256xf32>
    %300 = vector.broadcast %298 : vector<4x1xf32> to vector<4x256xf32>
    %301 = vector.broadcast %299 : vector<1x256xf32> to vector<4x256xf32>
    %302 = arith.mulf %300, %301 : vector<4x256xf32>
    %303 = arith.addf %296, %302 : vector<4x256xf32>
    %c35 = arith.constant 35 : index
    %c0_97 = arith.constant 0 : index
    %c0_98 = arith.constant 0 : index
    %304 = vector.load %arg2[%c35, %c0_97, %c0_98] : memref<144x4x1xf32, #tpu.memory_space<vmem>>, vector<1x4x1xf32>
    %305 = vector.shape_cast %304 : vector<1x4x1xf32> to vector<4x1xf32>
    %306 = vector.extract_strided_slice %282 {offsets = [3, 0], sizes = [1, 256], strides = [1, 1]} : vector<4x256xf32> to vector<1x256xf32>
    %307 = vector.broadcast %305 : vector<4x1xf32> to vector<4x256xf32>
    %308 = vector.broadcast %306 : vector<1x256xf32> to vector<4x256xf32>
    %309 = arith.mulf %307, %308 : vector<4x256xf32>
    %310 = arith.addf %303, %309 : vector<4x256xf32>
    %c0_99 = arith.constant 0 : index
    %c0_100 = arith.constant 0 : index
    %c0_101 = arith.constant 0 : index
    %311 = vector.load %arg4[%c0_99, %c0_100, %c0_101] : memref<4x4x1xf32, #tpu.memory_space<vmem>>, vector<1x4x1xf32>
    %312 = vector.shape_cast %311 : vector<1x4x1xf32> to vector<4x1xf32>
    %313 = vector.broadcast %312 : vector<4x1xf32> to vector<4x256xf32>
    %314 = arith.mulf %310, %313 : vector<4x256xf32>
    %c0_102 = arith.constant 0 : index
    %c0_103 = arith.constant 0 : index
    %c0_104 = arith.constant 0 : index
    %315 = vector.load %arg5[%c0_102, %c0_103, %c0_104] : memref<4x4x1xf32, #tpu.memory_space<vmem>>, vector<1x4x1xf32>
    %316 = vector.shape_cast %315 : vector<1x4x1xf32> to vector<4x1xf32>
    %317 = vector.broadcast %316 : vector<4x1xf32> to vector<4x256xf32>
    %318 = arith.addf %314, %317 : vector<4x256xf32>
    %cst_105 = arith.constant 0.000000e+00 : f32
    %319 = vector.broadcast %cst_105 : f32 to vector<4x256xf32>
    %320 = arith.maximumf %318, %319 : vector<4x256xf32>
    %321 = arith.addf %18, %17 : vector<4x256xf32>
    %322 = vector.extract_strided_slice %320 {offsets = [0, 239], sizes = [4, 17], strides = [1, 1]} : vector<4x256xf32> to vector<4x17xf32>
    %323 = vector.extract_strided_slice %320 {offsets = [0, 0], sizes = [4, 239], strides = [1, 1]} : vector<4x256xf32> to vector<4x239xf32>
    %324 = tpu.concatenate %322, %323 in 1 : vector<4x17xf32>, vector<4x239xf32> -> vector<4x256xf32>
    %325 = vector.broadcast %1 : vector<1x256xf32> to vector<4x256xf32>
    %326 = arith.mulf %324, %325 : vector<4x256xf32>
    %c36 = arith.constant 36 : index
    %c0_106 = arith.constant 0 : index
    %c0_107 = arith.constant 0 : index
    %327 = vector.load %arg2[%c36, %c0_106, %c0_107] : memref<144x4x1xf32, #tpu.memory_space<vmem>>, vector<1x4x1xf32>
    %328 = vector.shape_cast %327 : vector<1x4x1xf32> to vector<4x1xf32>
    %329 = vector.extract_strided_slice %326 {offsets = [0, 0], sizes = [1, 256], strides = [1, 1]} : vector<4x256xf32> to vector<1x256xf32>
    %330 = vector.broadcast %328 : vector<4x1xf32> to vector<4x256xf32>
    %331 = vector.broadcast %329 : vector<1x256xf32> to vector<4x256xf32>
    %332 = arith.mulf %330, %331 : vector<4x256xf32>
    %333 = arith.addf %321, %332 : vector<4x256xf32>
    %c37 = arith.constant 37 : index
    %c0_108 = arith.constant 0 : index
    %c0_109 = arith.constant 0 : index
    %334 = vector.load %arg2[%c37, %c0_108, %c0_109] : memref<144x4x1xf32, #tpu.memory_space<vmem>>, vector<1x4x1xf32>
    %335 = vector.shape_cast %334 : vector<1x4x1xf32> to vector<4x1xf32>
    %336 = vector.extract_strided_slice %326 {offsets = [1, 0], sizes = [1, 256], strides = [1, 1]} : vector<4x256xf32> to vector<1x256xf32>
    %337 = vector.broadcast %335 : vector<4x1xf32> to vector<4x256xf32>
    %338 = vector.broadcast %336 : vector<1x256xf32> to vector<4x256xf32>
    %339 = arith.mulf %337, %338 : vector<4x256xf32>
    %340 = arith.addf %333, %339 : vector<4x256xf32>
    %c38 = arith.constant 38 : index
    %c0_110 = arith.constant 0 : index
    %c0_111 = arith.constant 0 : index
    %341 = vector.load %arg2[%c38, %c0_110, %c0_111] : memref<144x4x1xf32, #tpu.memory_space<vmem>>, vector<1x4x1xf32>
    %342 = vector.shape_cast %341 : vector<1x4x1xf32> to vector<4x1xf32>
    %343 = vector.extract_strided_slice %326 {offsets = [2, 0], sizes = [1, 256], strides = [1, 1]} : vector<4x256xf32> to vector<1x256xf32>
    %344 = vector.broadcast %342 : vector<4x1xf32> to vector<4x256xf32>
    %345 = vector.broadcast %343 : vector<1x256xf32> to vector<4x256xf32>
    %346 = arith.mulf %344, %345 : vector<4x256xf32>
    %347 = arith.addf %340, %346 : vector<4x256xf32>
    %c39 = arith.constant 39 : index
    %c0_112 = arith.constant 0 : index
    %c0_113 = arith.constant 0 : index
    %348 = vector.load %arg2[%c39, %c0_112, %c0_113] : memref<144x4x1xf32, #tpu.memory_space<vmem>>, vector<1x4x1xf32>
    %349 = vector.shape_cast %348 : vector<1x4x1xf32> to vector<4x1xf32>
    %350 = vector.extract_strided_slice %326 {offsets = [3, 0], sizes = [1, 256], strides = [1, 1]} : vector<4x256xf32> to vector<1x256xf32>
    %351 = vector.broadcast %349 : vector<4x1xf32> to vector<4x256xf32>
    %352 = vector.broadcast %350 : vector<1x256xf32> to vector<4x256xf32>
    %353 = arith.mulf %351, %352 : vector<4x256xf32>
    %354 = arith.addf %347, %353 : vector<4x256xf32>
    %355 = vector.extract_strided_slice %320 {offsets = [0, 240], sizes = [4, 16], strides = [1, 1]} : vector<4x256xf32> to vector<4x16xf32>
    %356 = vector.extract_strided_slice %320 {offsets = [0, 0], sizes = [4, 240], strides = [1, 1]} : vector<4x256xf32> to vector<4x240xf32>
    %357 = tpu.concatenate %355, %356 in 1 : vector<4x16xf32>, vector<4x240xf32> -> vector<4x256xf32>
    %358 = vector.broadcast %3 : vector<1x256xf32> to vector<4x256xf32>
    %359 = arith.mulf %357, %358 : vector<4x256xf32>
    %c40 = arith.constant 40 : index
    %c0_114 = arith.constant 0 : index
    %c0_115 = arith.constant 0 : index
    %360 = vector.load %arg2[%c40, %c0_114, %c0_115] : memref<144x4x1xf32, #tpu.memory_space<vmem>>, vector<1x4x1xf32>
    %361 = vector.shape_cast %360 : vector<1x4x1xf32> to vector<4x1xf32>
    %362 = vector.extract_strided_slice %359 {offsets = [0, 0], sizes = [1, 256], strides = [1, 1]} : vector<4x256xf32> to vector<1x256xf32>
    %363 = vector.broadcast %361 : vector<4x1xf32> to vector<4x256xf32>
    %364 = vector.broadcast %362 : vector<1x256xf32> to vector<4x256xf32>
    %365 = arith.mulf %363, %364 : vector<4x256xf32>
    %366 = arith.addf %354, %365 : vector<4x256xf32>
    %c41 = arith.constant 41 : index
    %c0_116 = arith.constant 0 : index
    %c0_117 = arith.constant 0 : index
    %367 = vector.load %arg2[%c41, %c0_116, %c0_117] : memref<144x4x1xf32, #tpu.memory_space<vmem>>, vector<1x4x1xf32>
    %368 = vector.shape_cast %367 : vector<1x4x1xf32> to vector<4x1xf32>
    %369 = vector.extract_strided_slice %359 {offsets = [1, 0], sizes = [1, 256], strides = [1, 1]} : vector<4x256xf32> to vector<1x256xf32>
    %370 = vector.broadcast %368 : vector<4x1xf32> to vector<4x256xf32>
    %371 = vector.broadcast %369 : vector<1x256xf32> to vector<4x256xf32>
    %372 = arith.mulf %370, %371 : vector<4x256xf32>
    %373 = arith.addf %366, %372 : vector<4x256xf32>
    %c42 = arith.constant 42 : index
    %c0_118 = arith.constant 0 : index
    %c0_119 = arith.constant 0 : index
    %374 = vector.load %arg2[%c42, %c0_118, %c0_119] : memref<144x4x1xf32, #tpu.memory_space<vmem>>, vector<1x4x1xf32>
    %375 = vector.shape_cast %374 : vector<1x4x1xf32> to vector<4x1xf32>
    %376 = vector.extract_strided_slice %359 {offsets = [2, 0], sizes = [1, 256], strides = [1, 1]} : vector<4x256xf32> to vector<1x256xf32>
    %377 = vector.broadcast %375 : vector<4x1xf32> to vector<4x256xf32>
    %378 = vector.broadcast %376 : vector<1x256xf32> to vector<4x256xf32>
    %379 = arith.mulf %377, %378 : vector<4x256xf32>
    %380 = arith.addf %373, %379 : vector<4x256xf32>
    %c43 = arith.constant 43 : index
    %c0_120 = arith.constant 0 : index
    %c0_121 = arith.constant 0 : index
    %381 = vector.load %arg2[%c43, %c0_120, %c0_121] : memref<144x4x1xf32, #tpu.memory_space<vmem>>, vector<1x4x1xf32>
    %382 = vector.shape_cast %381 : vector<1x4x1xf32> to vector<4x1xf32>
    %383 = vector.extract_strided_slice %359 {offsets = [3, 0], sizes = [1, 256], strides = [1, 1]} : vector<4x256xf32> to vector<1x256xf32>
    %384 = vector.broadcast %382 : vector<4x1xf32> to vector<4x256xf32>
    %385 = vector.broadcast %383 : vector<1x256xf32> to vector<4x256xf32>
    %386 = arith.mulf %384, %385 : vector<4x256xf32>
    %387 = arith.addf %380, %386 : vector<4x256xf32>
    %388 = vector.extract_strided_slice %320 {offsets = [0, 241], sizes = [4, 15], strides = [1, 1]} : vector<4x256xf32> to vector<4x15xf32>
    %389 = vector.extract_strided_slice %320 {offsets = [0, 0], sizes = [4, 241], strides = [1, 1]} : vector<4x256xf32> to vector<4x241xf32>
    %390 = tpu.concatenate %388, %389 in 1 : vector<4x15xf32>, vector<4x241xf32> -> vector<4x256xf32>
    %391 = vector.broadcast %5 : vector<1x256xf32> to vector<4x256xf32>
    %392 = arith.mulf %390, %391 : vector<4x256xf32>
    %c44 = arith.constant 44 : index
    %c0_122 = arith.constant 0 : index
    %c0_123 = arith.constant 0 : index
    %393 = vector.load %arg2[%c44, %c0_122, %c0_123] : memref<144x4x1xf32, #tpu.memory_space<vmem>>, vector<1x4x1xf32>
    %394 = vector.shape_cast %393 : vector<1x4x1xf32> to vector<4x1xf32>
    %395 = vector.extract_strided_slice %392 {offsets = [0, 0], sizes = [1, 256], strides = [1, 1]} : vector<4x256xf32> to vector<1x256xf32>
    %396 = vector.broadcast %394 : vector<4x1xf32> to vector<4x256xf32>
    %397 = vector.broadcast %395 : vector<1x256xf32> to vector<4x256xf32>
    %398 = arith.mulf %396, %397 : vector<4x256xf32>
    %399 = arith.addf %387, %398 : vector<4x256xf32>
    %c45 = arith.constant 45 : index
    %c0_124 = arith.constant 0 : index
    %c0_125 = arith.constant 0 : index
    %400 = vector.load %arg2[%c45, %c0_124, %c0_125] : memref<144x4x1xf32, #tpu.memory_space<vmem>>, vector<1x4x1xf32>
    %401 = vector.shape_cast %400 : vector<1x4x1xf32> to vector<4x1xf32>
    %402 = vector.extract_strided_slice %392 {offsets = [1, 0], sizes = [1, 256], strides = [1, 1]} : vector<4x256xf32> to vector<1x256xf32>
    %403 = vector.broadcast %401 : vector<4x1xf32> to vector<4x256xf32>
    %404 = vector.broadcast %402 : vector<1x256xf32> to vector<4x256xf32>
    %405 = arith.mulf %403, %404 : vector<4x256xf32>
    %406 = arith.addf %399, %405 : vector<4x256xf32>
    %c46 = arith.constant 46 : index
    %c0_126 = arith.constant 0 : index
    %c0_127 = arith.constant 0 : index
    %407 = vector.load %arg2[%c46, %c0_126, %c0_127] : memref<144x4x1xf32, #tpu.memory_space<vmem>>, vector<1x4x1xf32>
    %408 = vector.shape_cast %407 : vector<1x4x1xf32> to vector<4x1xf32>
    %409 = vector.extract_strided_slice %392 {offsets = [2, 0], sizes = [1, 256], strides = [1, 1]} : vector<4x256xf32> to vector<1x256xf32>
    %410 = vector.broadcast %408 : vector<4x1xf32> to vector<4x256xf32>
    %411 = vector.broadcast %409 : vector<1x256xf32> to vector<4x256xf32>
    %412 = arith.mulf %410, %411 : vector<4x256xf32>
    %413 = arith.addf %406, %412 : vector<4x256xf32>
    %c47 = arith.constant 47 : index
    %c0_128 = arith.constant 0 : index
    %c0_129 = arith.constant 0 : index
    %414 = vector.load %arg2[%c47, %c0_128, %c0_129] : memref<144x4x1xf32, #tpu.memory_space<vmem>>, vector<1x4x1xf32>
    %415 = vector.shape_cast %414 : vector<1x4x1xf32> to vector<4x1xf32>
    %416 = vector.extract_strided_slice %392 {offsets = [3, 0], sizes = [1, 256], strides = [1, 1]} : vector<4x256xf32> to vector<1x256xf32>
    %417 = vector.broadcast %415 : vector<4x1xf32> to vector<4x256xf32>
    %418 = vector.broadcast %416 : vector<1x256xf32> to vector<4x256xf32>
    %419 = arith.mulf %417, %418 : vector<4x256xf32>
    %420 = arith.addf %413, %419 : vector<4x256xf32>
    %421 = vector.extract_strided_slice %320 {offsets = [0, 255], sizes = [4, 1], strides = [1, 1]} : vector<4x256xf32> to vector<4x1xf32>
    %422 = vector.extract_strided_slice %320 {offsets = [0, 0], sizes = [4, 255], strides = [1, 1]} : vector<4x256xf32> to vector<4x255xf32>
    %423 = tpu.concatenate %421, %422 in 1 : vector<4x1xf32>, vector<4x255xf32> -> vector<4x256xf32>
    %424 = vector.broadcast %7 : vector<1x256xf32> to vector<4x256xf32>
    %425 = arith.mulf %423, %424 : vector<4x256xf32>
    %c48 = arith.constant 48 : index
    %c0_130 = arith.constant 0 : index
    %c0_131 = arith.constant 0 : index
    %426 = vector.load %arg2[%c48, %c0_130, %c0_131] : memref<144x4x1xf32, #tpu.memory_space<vmem>>, vector<1x4x1xf32>
    %427 = vector.shape_cast %426 : vector<1x4x1xf32> to vector<4x1xf32>
    %428 = vector.extract_strided_slice %425 {offsets = [0, 0], sizes = [1, 256], strides = [1, 1]} : vector<4x256xf32> to vector<1x256xf32>
    %429 = vector.broadcast %427 : vector<4x1xf32> to vector<4x256xf32>
    %430 = vector.broadcast %428 : vector<1x256xf32> to vector<4x256xf32>
    %431 = arith.mulf %429, %430 : vector<4x256xf32>
    %432 = arith.addf %420, %431 : vector<4x256xf32>
    %c49 = arith.constant 49 : index
    %c0_132 = arith.constant 0 : index
    %c0_133 = arith.constant 0 : index
    %433 = vector.load %arg2[%c49, %c0_132, %c0_133] : memref<144x4x1xf32, #tpu.memory_space<vmem>>, vector<1x4x1xf32>
    %434 = vector.shape_cast %433 : vector<1x4x1xf32> to vector<4x1xf32>
    %435 = vector.extract_strided_slice %425 {offsets = [1, 0], sizes = [1, 256], strides = [1, 1]} : vector<4x256xf32> to vector<1x256xf32>
    %436 = vector.broadcast %434 : vector<4x1xf32> to vector<4x256xf32>
    %437 = vector.broadcast %435 : vector<1x256xf32> to vector<4x256xf32>
    %438 = arith.mulf %436, %437 : vector<4x256xf32>
    %439 = arith.addf %432, %438 : vector<4x256xf32>
    %c50 = arith.constant 50 : index
    %c0_134 = arith.constant 0 : index
    %c0_135 = arith.constant 0 : index
    %440 = vector.load %arg2[%c50, %c0_134, %c0_135] : memref<144x4x1xf32, #tpu.memory_space<vmem>>, vector<1x4x1xf32>
    %441 = vector.shape_cast %440 : vector<1x4x1xf32> to vector<4x1xf32>
    %442 = vector.extract_strided_slice %425 {offsets = [2, 0], sizes = [1, 256], strides = [1, 1]} : vector<4x256xf32> to vector<1x256xf32>
    %443 = vector.broadcast %441 : vector<4x1xf32> to vector<4x256xf32>
    %444 = vector.broadcast %442 : vector<1x256xf32> to vector<4x256xf32>
    %445 = arith.mulf %443, %444 : vector<4x256xf32>
    %446 = arith.addf %439, %445 : vector<4x256xf32>
    %c51 = arith.constant 51 : index
    %c0_136 = arith.constant 0 : index
    %c0_137 = arith.constant 0 : index
    %447 = vector.load %arg2[%c51, %c0_136, %c0_137] : memref<144x4x1xf32, #tpu.memory_space<vmem>>, vector<1x4x1xf32>
    %448 = vector.shape_cast %447 : vector<1x4x1xf32> to vector<4x1xf32>
    %449 = vector.extract_strided_slice %425 {offsets = [3, 0], sizes = [1, 256], strides = [1, 1]} : vector<4x256xf32> to vector<1x256xf32>
    %450 = vector.broadcast %448 : vector<4x1xf32> to vector<4x256xf32>
    %451 = vector.broadcast %449 : vector<1x256xf32> to vector<4x256xf32>
    %452 = arith.mulf %450, %451 : vector<4x256xf32>
    %453 = arith.addf %446, %452 : vector<4x256xf32>
    %c52 = arith.constant 52 : index
    %c0_138 = arith.constant 0 : index
    %c0_139 = arith.constant 0 : index
    %454 = vector.load %arg2[%c52, %c0_138, %c0_139] : memref<144x4x1xf32, #tpu.memory_space<vmem>>, vector<1x4x1xf32>
    %455 = vector.shape_cast %454 : vector<1x4x1xf32> to vector<4x1xf32>
    %456 = vector.extract_strided_slice %320 {offsets = [0, 0], sizes = [1, 256], strides = [1, 1]} : vector<4x256xf32> to vector<1x256xf32>
    %457 = vector.broadcast %455 : vector<4x1xf32> to vector<4x256xf32>
    %458 = vector.broadcast %456 : vector<1x256xf32> to vector<4x256xf32>
    %459 = arith.mulf %457, %458 : vector<4x256xf32>
    %460 = arith.addf %453, %459 : vector<4x256xf32>
    %c53 = arith.constant 53 : index
    %c0_140 = arith.constant 0 : index
    %c0_141 = arith.constant 0 : index
    %461 = vector.load %arg2[%c53, %c0_140, %c0_141] : memref<144x4x1xf32, #tpu.memory_space<vmem>>, vector<1x4x1xf32>
    %462 = vector.shape_cast %461 : vector<1x4x1xf32> to vector<4x1xf32>
    %463 = vector.extract_strided_slice %320 {offsets = [1, 0], sizes = [1, 256], strides = [1, 1]} : vector<4x256xf32> to vector<1x256xf32>
    %464 = vector.broadcast %462 : vector<4x1xf32> to vector<4x256xf32>
    %465 = vector.broadcast %463 : vector<1x256xf32> to vector<4x256xf32>
    %466 = arith.mulf %464, %465 : vector<4x256xf32>
    %467 = arith.addf %460, %466 : vector<4x256xf32>
    %c54 = arith.constant 54 : index
    %c0_142 = arith.constant 0 : index
    %c0_143 = arith.constant 0 : index
    %468 = vector.load %arg2[%c54, %c0_142, %c0_143] : memref<144x4x1xf32, #tpu.memory_space<vmem>>, vector<1x4x1xf32>
    %469 = vector.shape_cast %468 : vector<1x4x1xf32> to vector<4x1xf32>
    %470 = vector.extract_strided_slice %320 {offsets = [2, 0], sizes = [1, 256], strides = [1, 1]} : vector<4x256xf32> to vector<1x256xf32>
    %471 = vector.broadcast %469 : vector<4x1xf32> to vector<4x256xf32>
    %472 = vector.broadcast %470 : vector<1x256xf32> to vector<4x256xf32>
    %473 = arith.mulf %471, %472 : vector<4x256xf32>
    %474 = arith.addf %467, %473 : vector<4x256xf32>
    %c55 = arith.constant 55 : index
    %c0_144 = arith.constant 0 : index
    %c0_145 = arith.constant 0 : index
    %475 = vector.load %arg2[%c55, %c0_144, %c0_145] : memref<144x4x1xf32, #tpu.memory_space<vmem>>, vector<1x4x1xf32>
    %476 = vector.shape_cast %475 : vector<1x4x1xf32> to vector<4x1xf32>
    %477 = vector.extract_strided_slice %320 {offsets = [3, 0], sizes = [1, 256], strides = [1, 1]} : vector<4x256xf32> to vector<1x256xf32>
    %478 = vector.broadcast %476 : vector<4x1xf32> to vector<4x256xf32>
    %479 = vector.broadcast %477 : vector<1x256xf32> to vector<4x256xf32>
    %480 = arith.mulf %478, %479 : vector<4x256xf32>
    %481 = arith.addf %474, %480 : vector<4x256xf32>
    %482 = vector.extract_strided_slice %320 {offsets = [0, 1], sizes = [4, 255], strides = [1, 1]} : vector<4x256xf32> to vector<4x255xf32>
    %483 = vector.extract_strided_slice %320 {offsets = [0, 0], sizes = [4, 1], strides = [1, 1]} : vector<4x256xf32> to vector<4x1xf32>
    %484 = tpu.concatenate %482, %483 in 1 : vector<4x255xf32>, vector<4x1xf32> -> vector<4x256xf32>
    %485 = vector.broadcast %9 : vector<1x256xf32> to vector<4x256xf32>
    %486 = arith.mulf %484, %485 : vector<4x256xf32>
    %c56 = arith.constant 56 : index
    %c0_146 = arith.constant 0 : index
    %c0_147 = arith.constant 0 : index
    %487 = vector.load %arg2[%c56, %c0_146, %c0_147] : memref<144x4x1xf32, #tpu.memory_space<vmem>>, vector<1x4x1xf32>
    %488 = vector.shape_cast %487 : vector<1x4x1xf32> to vector<4x1xf32>
    %489 = vector.extract_strided_slice %486 {offsets = [0, 0], sizes = [1, 256], strides = [1, 1]} : vector<4x256xf32> to vector<1x256xf32>
    %490 = vector.broadcast %488 : vector<4x1xf32> to vector<4x256xf32>
    %491 = vector.broadcast %489 : vector<1x256xf32> to vector<4x256xf32>
    %492 = arith.mulf %490, %491 : vector<4x256xf32>
    %493 = arith.addf %481, %492 : vector<4x256xf32>
    %c57 = arith.constant 57 : index
    %c0_148 = arith.constant 0 : index
    %c0_149 = arith.constant 0 : index
    %494 = vector.load %arg2[%c57, %c0_148, %c0_149] : memref<144x4x1xf32, #tpu.memory_space<vmem>>, vector<1x4x1xf32>
    %495 = vector.shape_cast %494 : vector<1x4x1xf32> to vector<4x1xf32>
    %496 = vector.extract_strided_slice %486 {offsets = [1, 0], sizes = [1, 256], strides = [1, 1]} : vector<4x256xf32> to vector<1x256xf32>
    %497 = vector.broadcast %495 : vector<4x1xf32> to vector<4x256xf32>
    %498 = vector.broadcast %496 : vector<1x256xf32> to vector<4x256xf32>
    %499 = arith.mulf %497, %498 : vector<4x256xf32>
    %500 = arith.addf %493, %499 : vector<4x256xf32>
    %c58 = arith.constant 58 : index
    %c0_150 = arith.constant 0 : index
    %c0_151 = arith.constant 0 : index
    %501 = vector.load %arg2[%c58, %c0_150, %c0_151] : memref<144x4x1xf32, #tpu.memory_space<vmem>>, vector<1x4x1xf32>
    %502 = vector.shape_cast %501 : vector<1x4x1xf32> to vector<4x1xf32>
    %503 = vector.extract_strided_slice %486 {offsets = [2, 0], sizes = [1, 256], strides = [1, 1]} : vector<4x256xf32> to vector<1x256xf32>
    %504 = vector.broadcast %502 : vector<4x1xf32> to vector<4x256xf32>
    %505 = vector.broadcast %503 : vector<1x256xf32> to vector<4x256xf32>
    %506 = arith.mulf %504, %505 : vector<4x256xf32>
    %507 = arith.addf %500, %506 : vector<4x256xf32>
    %c59 = arith.constant 59 : index
    %c0_152 = arith.constant 0 : index
    %c0_153 = arith.constant 0 : index
    %508 = vector.load %arg2[%c59, %c0_152, %c0_153] : memref<144x4x1xf32, #tpu.memory_space<vmem>>, vector<1x4x1xf32>
    %509 = vector.shape_cast %508 : vector<1x4x1xf32> to vector<4x1xf32>
    %510 = vector.extract_strided_slice %486 {offsets = [3, 0], sizes = [1, 256], strides = [1, 1]} : vector<4x256xf32> to vector<1x256xf32>
    %511 = vector.broadcast %509 : vector<4x1xf32> to vector<4x256xf32>
    %512 = vector.broadcast %510 : vector<1x256xf32> to vector<4x256xf32>
    %513 = arith.mulf %511, %512 : vector<4x256xf32>
    %514 = arith.addf %507, %513 : vector<4x256xf32>
    %515 = vector.extract_strided_slice %320 {offsets = [0, 15], sizes = [4, 241], strides = [1, 1]} : vector<4x256xf32> to vector<4x241xf32>
    %516 = vector.extract_strided_slice %320 {offsets = [0, 0], sizes = [4, 15], strides = [1, 1]} : vector<4x256xf32> to vector<4x15xf32>
    %517 = tpu.concatenate %515, %516 in 1 : vector<4x241xf32>, vector<4x15xf32> -> vector<4x256xf32>
    %518 = vector.broadcast %11 : vector<1x256xf32> to vector<4x256xf32>
    %519 = arith.mulf %517, %518 : vector<4x256xf32>
    %c60 = arith.constant 60 : index
    %c0_154 = arith.constant 0 : index
    %c0_155 = arith.constant 0 : index
    %520 = vector.load %arg2[%c60, %c0_154, %c0_155] : memref<144x4x1xf32, #tpu.memory_space<vmem>>, vector<1x4x1xf32>
    %521 = vector.shape_cast %520 : vector<1x4x1xf32> to vector<4x1xf32>
    %522 = vector.extract_strided_slice %519 {offsets = [0, 0], sizes = [1, 256], strides = [1, 1]} : vector<4x256xf32> to vector<1x256xf32>
    %523 = vector.broadcast %521 : vector<4x1xf32> to vector<4x256xf32>
    %524 = vector.broadcast %522 : vector<1x256xf32> to vector<4x256xf32>
    %525 = arith.mulf %523, %524 : vector<4x256xf32>
    %526 = arith.addf %514, %525 : vector<4x256xf32>
    %c61 = arith.constant 61 : index
    %c0_156 = arith.constant 0 : index
    %c0_157 = arith.constant 0 : index
    %527 = vector.load %arg2[%c61, %c0_156, %c0_157] : memref<144x4x1xf32, #tpu.memory_space<vmem>>, vector<1x4x1xf32>
    %528 = vector.shape_cast %527 : vector<1x4x1xf32> to vector<4x1xf32>
    %529 = vector.extract_strided_slice %519 {offsets = [1, 0], sizes = [1, 256], strides = [1, 1]} : vector<4x256xf32> to vector<1x256xf32>
    %530 = vector.broadcast %528 : vector<4x1xf32> to vector<4x256xf32>
    %531 = vector.broadcast %529 : vector<1x256xf32> to vector<4x256xf32>
    %532 = arith.mulf %530, %531 : vector<4x256xf32>
    %533 = arith.addf %526, %532 : vector<4x256xf32>
    %c62 = arith.constant 62 : index
    %c0_158 = arith.constant 0 : index
    %c0_159 = arith.constant 0 : index
    %534 = vector.load %arg2[%c62, %c0_158, %c0_159] : memref<144x4x1xf32, #tpu.memory_space<vmem>>, vector<1x4x1xf32>
    %535 = vector.shape_cast %534 : vector<1x4x1xf32> to vector<4x1xf32>
    %536 = vector.extract_strided_slice %519 {offsets = [2, 0], sizes = [1, 256], strides = [1, 1]} : vector<4x256xf32> to vector<1x256xf32>
    %537 = vector.broadcast %535 : vector<4x1xf32> to vector<4x256xf32>
    %538 = vector.broadcast %536 : vector<1x256xf32> to vector<4x256xf32>
    %539 = arith.mulf %537, %538 : vector<4x256xf32>
    %540 = arith.addf %533, %539 : vector<4x256xf32>
    %c63 = arith.constant 63 : index
    %c0_160 = arith.constant 0 : index
    %c0_161 = arith.constant 0 : index
    %541 = vector.load %arg2[%c63, %c0_160, %c0_161] : memref<144x4x1xf32, #tpu.memory_space<vmem>>, vector<1x4x1xf32>
    %542 = vector.shape_cast %541 : vector<1x4x1xf32> to vector<4x1xf32>
    %543 = vector.extract_strided_slice %519 {offsets = [3, 0], sizes = [1, 256], strides = [1, 1]} : vector<4x256xf32> to vector<1x256xf32>
    %544 = vector.broadcast %542 : vector<4x1xf32> to vector<4x256xf32>
    %545 = vector.broadcast %543 : vector<1x256xf32> to vector<4x256xf32>
    %546 = arith.mulf %544, %545 : vector<4x256xf32>
    %547 = arith.addf %540, %546 : vector<4x256xf32>
    %548 = vector.extract_strided_slice %320 {offsets = [0, 16], sizes = [4, 240], strides = [1, 1]} : vector<4x256xf32> to vector<4x240xf32>
    %549 = vector.extract_strided_slice %320 {offsets = [0, 0], sizes = [4, 16], strides = [1, 1]} : vector<4x256xf32> to vector<4x16xf32>
    %550 = tpu.concatenate %548, %549 in 1 : vector<4x240xf32>, vector<4x16xf32> -> vector<4x256xf32>
    %551 = vector.broadcast %13 : vector<1x256xf32> to vector<4x256xf32>
    %552 = arith.mulf %550, %551 : vector<4x256xf32>
    %c64 = arith.constant 64 : index
    %c0_162 = arith.constant 0 : index
    %c0_163 = arith.constant 0 : index
    %553 = vector.load %arg2[%c64, %c0_162, %c0_163] : memref<144x4x1xf32, #tpu.memory_space<vmem>>, vector<1x4x1xf32>
    %554 = vector.shape_cast %553 : vector<1x4x1xf32> to vector<4x1xf32>
    %555 = vector.extract_strided_slice %552 {offsets = [0, 0], sizes = [1, 256], strides = [1, 1]} : vector<4x256xf32> to vector<1x256xf32>
    %556 = vector.broadcast %554 : vector<4x1xf32> to vector<4x256xf32>
    %557 = vector.broadcast %555 : vector<1x256xf32> to vector<4x256xf32>
    %558 = arith.mulf %556, %557 : vector<4x256xf32>
    %559 = arith.addf %547, %558 : vector<4x256xf32>
    %c65 = arith.constant 65 : index
    %c0_164 = arith.constant 0 : index
    %c0_165 = arith.constant 0 : index
    %560 = vector.load %arg2[%c65, %c0_164, %c0_165] : memref<144x4x1xf32, #tpu.memory_space<vmem>>, vector<1x4x1xf32>
    %561 = vector.shape_cast %560 : vector<1x4x1xf32> to vector<4x1xf32>
    %562 = vector.extract_strided_slice %552 {offsets = [1, 0], sizes = [1, 256], strides = [1, 1]} : vector<4x256xf32> to vector<1x256xf32>
    %563 = vector.broadcast %561 : vector<4x1xf32> to vector<4x256xf32>
    %564 = vector.broadcast %562 : vector<1x256xf32> to vector<4x256xf32>
    %565 = arith.mulf %563, %564 : vector<4x256xf32>
    %566 = arith.addf %559, %565 : vector<4x256xf32>
    %c66 = arith.constant 66 : index
    %c0_166 = arith.constant 0 : index
    %c0_167 = arith.constant 0 : index
    %567 = vector.load %arg2[%c66, %c0_166, %c0_167] : memref<144x4x1xf32, #tpu.memory_space<vmem>>, vector<1x4x1xf32>
    %568 = vector.shape_cast %567 : vector<1x4x1xf32> to vector<4x1xf32>
    %569 = vector.extract_strided_slice %552 {offsets = [2, 0], sizes = [1, 256], strides = [1, 1]} : vector<4x256xf32> to vector<1x256xf32>
    %570 = vector.broadcast %568 : vector<4x1xf32> to vector<4x256xf32>
    %571 = vector.broadcast %569 : vector<1x256xf32> to vector<4x256xf32>
    %572 = arith.mulf %570, %571 : vector<4x256xf32>
    %573 = arith.addf %566, %572 : vector<4x256xf32>
    %c67 = arith.constant 67 : index
    %c0_168 = arith.constant 0 : index
    %c0_169 = arith.constant 0 : index
    %574 = vector.load %arg2[%c67, %c0_168, %c0_169] : memref<144x4x1xf32, #tpu.memory_space<vmem>>, vector<1x4x1xf32>
    %575 = vector.shape_cast %574 : vector<1x4x1xf32> to vector<4x1xf32>
    %576 = vector.extract_strided_slice %552 {offsets = [3, 0], sizes = [1, 256], strides = [1, 1]} : vector<4x256xf32> to vector<1x256xf32>
    %577 = vector.broadcast %575 : vector<4x1xf32> to vector<4x256xf32>
    %578 = vector.broadcast %576 : vector<1x256xf32> to vector<4x256xf32>
    %579 = arith.mulf %577, %578 : vector<4x256xf32>
    %580 = arith.addf %573, %579 : vector<4x256xf32>
    %581 = vector.extract_strided_slice %320 {offsets = [0, 17], sizes = [4, 239], strides = [1, 1]} : vector<4x256xf32> to vector<4x239xf32>
    %582 = vector.extract_strided_slice %320 {offsets = [0, 0], sizes = [4, 17], strides = [1, 1]} : vector<4x256xf32> to vector<4x17xf32>
    %583 = tpu.concatenate %581, %582 in 1 : vector<4x239xf32>, vector<4x17xf32> -> vector<4x256xf32>
    %584 = vector.broadcast %15 : vector<1x256xf32> to vector<4x256xf32>
    %585 = arith.mulf %583, %584 : vector<4x256xf32>
    %c68 = arith.constant 68 : index
    %c0_170 = arith.constant 0 : index
    %c0_171 = arith.constant 0 : index
    %586 = vector.load %arg2[%c68, %c0_170, %c0_171] : memref<144x4x1xf32, #tpu.memory_space<vmem>>, vector<1x4x1xf32>
    %587 = vector.shape_cast %586 : vector<1x4x1xf32> to vector<4x1xf32>
    %588 = vector.extract_strided_slice %585 {offsets = [0, 0], sizes = [1, 256], strides = [1, 1]} : vector<4x256xf32> to vector<1x256xf32>
    %589 = vector.broadcast %587 : vector<4x1xf32> to vector<4x256xf32>
    %590 = vector.broadcast %588 : vector<1x256xf32> to vector<4x256xf32>
    %591 = arith.mulf %589, %590 : vector<4x256xf32>
    %592 = arith.addf %580, %591 : vector<4x256xf32>
    %c69 = arith.constant 69 : index
    %c0_172 = arith.constant 0 : index
    %c0_173 = arith.constant 0 : index
    %593 = vector.load %arg2[%c69, %c0_172, %c0_173] : memref<144x4x1xf32, #tpu.memory_space<vmem>>, vector<1x4x1xf32>
    %594 = vector.shape_cast %593 : vector<1x4x1xf32> to vector<4x1xf32>
    %595 = vector.extract_strided_slice %585 {offsets = [1, 0], sizes = [1, 256], strides = [1, 1]} : vector<4x256xf32> to vector<1x256xf32>
    %596 = vector.broadcast %594 : vector<4x1xf32> to vector<4x256xf32>
    %597 = vector.broadcast %595 : vector<1x256xf32> to vector<4x256xf32>
    %598 = arith.mulf %596, %597 : vector<4x256xf32>
    %599 = arith.addf %592, %598 : vector<4x256xf32>
    %c70 = arith.constant 70 : index
    %c0_174 = arith.constant 0 : index
    %c0_175 = arith.constant 0 : index
    %600 = vector.load %arg2[%c70, %c0_174, %c0_175] : memref<144x4x1xf32, #tpu.memory_space<vmem>>, vector<1x4x1xf32>
    %601 = vector.shape_cast %600 : vector<1x4x1xf32> to vector<4x1xf32>
    %602 = vector.extract_strided_slice %585 {offsets = [2, 0], sizes = [1, 256], strides = [1, 1]} : vector<4x256xf32> to vector<1x256xf32>
    %603 = vector.broadcast %601 : vector<4x1xf32> to vector<4x256xf32>
    %604 = vector.broadcast %602 : vector<1x256xf32> to vector<4x256xf32>
    %605 = arith.mulf %603, %604 : vector<4x256xf32>
    %606 = arith.addf %599, %605 : vector<4x256xf32>
    %c71 = arith.constant 71 : index
    %c0_176 = arith.constant 0 : index
    %c0_177 = arith.constant 0 : index
    %607 = vector.load %arg2[%c71, %c0_176, %c0_177] : memref<144x4x1xf32, #tpu.memory_space<vmem>>, vector<1x4x1xf32>
    %608 = vector.shape_cast %607 : vector<1x4x1xf32> to vector<4x1xf32>
    %609 = vector.extract_strided_slice %585 {offsets = [3, 0], sizes = [1, 256], strides = [1, 1]} : vector<4x256xf32> to vector<1x256xf32>
    %610 = vector.broadcast %608 : vector<4x1xf32> to vector<4x256xf32>
    %611 = vector.broadcast %609 : vector<1x256xf32> to vector<4x256xf32>
    %612 = arith.mulf %610, %611 : vector<4x256xf32>
    %613 = arith.addf %606, %612 : vector<4x256xf32>
    %c1_178 = arith.constant 1 : index
    %c0_179 = arith.constant 0 : index
    %c0_180 = arith.constant 0 : index
    %614 = vector.load %arg4[%c1_178, %c0_179, %c0_180] : memref<4x4x1xf32, #tpu.memory_space<vmem>>, vector<1x4x1xf32>
    %615 = vector.shape_cast %614 : vector<1x4x1xf32> to vector<4x1xf32>
    %616 = vector.broadcast %615 : vector<4x1xf32> to vector<4x256xf32>
    %617 = arith.mulf %613, %616 : vector<4x256xf32>
    %c1_181 = arith.constant 1 : index
    %c0_182 = arith.constant 0 : index
    %c0_183 = arith.constant 0 : index
    %618 = vector.load %arg5[%c1_181, %c0_182, %c0_183] : memref<4x4x1xf32, #tpu.memory_space<vmem>>, vector<1x4x1xf32>
    %619 = vector.shape_cast %618 : vector<1x4x1xf32> to vector<4x1xf32>
    %620 = vector.broadcast %619 : vector<4x1xf32> to vector<4x256xf32>
    %621 = arith.addf %617, %620 : vector<4x256xf32>
    %cst_184 = arith.constant 0.000000e+00 : f32
    %622 = vector.broadcast %cst_184 : f32 to vector<4x256xf32>
    %623 = arith.maximumf %621, %622 : vector<4x256xf32>
    %624 = arith.addf %321, %320 : vector<4x256xf32>
    %625 = vector.extract_strided_slice %623 {offsets = [0, 239], sizes = [4, 17], strides = [1, 1]} : vector<4x256xf32> to vector<4x17xf32>
    %626 = vector.extract_strided_slice %623 {offsets = [0, 0], sizes = [4, 239], strides = [1, 1]} : vector<4x256xf32> to vector<4x239xf32>
    %627 = tpu.concatenate %625, %626 in 1 : vector<4x17xf32>, vector<4x239xf32> -> vector<4x256xf32>
    %628 = vector.broadcast %1 : vector<1x256xf32> to vector<4x256xf32>
    %629 = arith.mulf %627, %628 : vector<4x256xf32>
    %c72 = arith.constant 72 : index
    %c0_185 = arith.constant 0 : index
    %c0_186 = arith.constant 0 : index
    %630 = vector.load %arg2[%c72, %c0_185, %c0_186] : memref<144x4x1xf32, #tpu.memory_space<vmem>>, vector<1x4x1xf32>
    %631 = vector.shape_cast %630 : vector<1x4x1xf32> to vector<4x1xf32>
    %632 = vector.extract_strided_slice %629 {offsets = [0, 0], sizes = [1, 256], strides = [1, 1]} : vector<4x256xf32> to vector<1x256xf32>
    %633 = vector.broadcast %631 : vector<4x1xf32> to vector<4x256xf32>
    %634 = vector.broadcast %632 : vector<1x256xf32> to vector<4x256xf32>
    %635 = arith.mulf %633, %634 : vector<4x256xf32>
    %636 = arith.addf %624, %635 : vector<4x256xf32>
    %c73 = arith.constant 73 : index
    %c0_187 = arith.constant 0 : index
    %c0_188 = arith.constant 0 : index
    %637 = vector.load %arg2[%c73, %c0_187, %c0_188] : memref<144x4x1xf32, #tpu.memory_space<vmem>>, vector<1x4x1xf32>
    %638 = vector.shape_cast %637 : vector<1x4x1xf32> to vector<4x1xf32>
    %639 = vector.extract_strided_slice %629 {offsets = [1, 0], sizes = [1, 256], strides = [1, 1]} : vector<4x256xf32> to vector<1x256xf32>
    %640 = vector.broadcast %638 : vector<4x1xf32> to vector<4x256xf32>
    %641 = vector.broadcast %639 : vector<1x256xf32> to vector<4x256xf32>
    %642 = arith.mulf %640, %641 : vector<4x256xf32>
    %643 = arith.addf %636, %642 : vector<4x256xf32>
    %c74 = arith.constant 74 : index
    %c0_189 = arith.constant 0 : index
    %c0_190 = arith.constant 0 : index
    %644 = vector.load %arg2[%c74, %c0_189, %c0_190] : memref<144x4x1xf32, #tpu.memory_space<vmem>>, vector<1x4x1xf32>
    %645 = vector.shape_cast %644 : vector<1x4x1xf32> to vector<4x1xf32>
    %646 = vector.extract_strided_slice %629 {offsets = [2, 0], sizes = [1, 256], strides = [1, 1]} : vector<4x256xf32> to vector<1x256xf32>
    %647 = vector.broadcast %645 : vector<4x1xf32> to vector<4x256xf32>
    %648 = vector.broadcast %646 : vector<1x256xf32> to vector<4x256xf32>
    %649 = arith.mulf %647, %648 : vector<4x256xf32>
    %650 = arith.addf %643, %649 : vector<4x256xf32>
    %c75 = arith.constant 75 : index
    %c0_191 = arith.constant 0 : index
    %c0_192 = arith.constant 0 : index
    %651 = vector.load %arg2[%c75, %c0_191, %c0_192] : memref<144x4x1xf32, #tpu.memory_space<vmem>>, vector<1x4x1xf32>
    %652 = vector.shape_cast %651 : vector<1x4x1xf32> to vector<4x1xf32>
    %653 = vector.extract_strided_slice %629 {offsets = [3, 0], sizes = [1, 256], strides = [1, 1]} : vector<4x256xf32> to vector<1x256xf32>
    %654 = vector.broadcast %652 : vector<4x1xf32> to vector<4x256xf32>
    %655 = vector.broadcast %653 : vector<1x256xf32> to vector<4x256xf32>
    %656 = arith.mulf %654, %655 : vector<4x256xf32>
    %657 = arith.addf %650, %656 : vector<4x256xf32>
    %658 = vector.extract_strided_slice %623 {offsets = [0, 240], sizes = [4, 16], strides = [1, 1]} : vector<4x256xf32> to vector<4x16xf32>
    %659 = vector.extract_strided_slice %623 {offsets = [0, 0], sizes = [4, 240], strides = [1, 1]} : vector<4x256xf32> to vector<4x240xf32>
    %660 = tpu.concatenate %658, %659 in 1 : vector<4x16xf32>, vector<4x240xf32> -> vector<4x256xf32>
    %661 = vector.broadcast %3 : vector<1x256xf32> to vector<4x256xf32>
    %662 = arith.mulf %660, %661 : vector<4x256xf32>
    %c76 = arith.constant 76 : index
    %c0_193 = arith.constant 0 : index
    %c0_194 = arith.constant 0 : index
    %663 = vector.load %arg2[%c76, %c0_193, %c0_194] : memref<144x4x1xf32, #tpu.memory_space<vmem>>, vector<1x4x1xf32>
    %664 = vector.shape_cast %663 : vector<1x4x1xf32> to vector<4x1xf32>
    %665 = vector.extract_strided_slice %662 {offsets = [0, 0], sizes = [1, 256], strides = [1, 1]} : vector<4x256xf32> to vector<1x256xf32>
    %666 = vector.broadcast %664 : vector<4x1xf32> to vector<4x256xf32>
    %667 = vector.broadcast %665 : vector<1x256xf32> to vector<4x256xf32>
    %668 = arith.mulf %666, %667 : vector<4x256xf32>
    %669 = arith.addf %657, %668 : vector<4x256xf32>
    %c77 = arith.constant 77 : index
    %c0_195 = arith.constant 0 : index
    %c0_196 = arith.constant 0 : index
    %670 = vector.load %arg2[%c77, %c0_195, %c0_196] : memref<144x4x1xf32, #tpu.memory_space<vmem>>, vector<1x4x1xf32>
    %671 = vector.shape_cast %670 : vector<1x4x1xf32> to vector<4x1xf32>
    %672 = vector.extract_strided_slice %662 {offsets = [1, 0], sizes = [1, 256], strides = [1, 1]} : vector<4x256xf32> to vector<1x256xf32>
    %673 = vector.broadcast %671 : vector<4x1xf32> to vector<4x256xf32>
    %674 = vector.broadcast %672 : vector<1x256xf32> to vector<4x256xf32>
    %675 = arith.mulf %673, %674 : vector<4x256xf32>
    %676 = arith.addf %669, %675 : vector<4x256xf32>
    %c78 = arith.constant 78 : index
    %c0_197 = arith.constant 0 : index
    %c0_198 = arith.constant 0 : index
    %677 = vector.load %arg2[%c78, %c0_197, %c0_198] : memref<144x4x1xf32, #tpu.memory_space<vmem>>, vector<1x4x1xf32>
    %678 = vector.shape_cast %677 : vector<1x4x1xf32> to vector<4x1xf32>
    %679 = vector.extract_strided_slice %662 {offsets = [2, 0], sizes = [1, 256], strides = [1, 1]} : vector<4x256xf32> to vector<1x256xf32>
    %680 = vector.broadcast %678 : vector<4x1xf32> to vector<4x256xf32>
    %681 = vector.broadcast %679 : vector<1x256xf32> to vector<4x256xf32>
    %682 = arith.mulf %680, %681 : vector<4x256xf32>
    %683 = arith.addf %676, %682 : vector<4x256xf32>
    %c79 = arith.constant 79 : index
    %c0_199 = arith.constant 0 : index
    %c0_200 = arith.constant 0 : index
    %684 = vector.load %arg2[%c79, %c0_199, %c0_200] : memref<144x4x1xf32, #tpu.memory_space<vmem>>, vector<1x4x1xf32>
    %685 = vector.shape_cast %684 : vector<1x4x1xf32> to vector<4x1xf32>
    %686 = vector.extract_strided_slice %662 {offsets = [3, 0], sizes = [1, 256], strides = [1, 1]} : vector<4x256xf32> to vector<1x256xf32>
    %687 = vector.broadcast %685 : vector<4x1xf32> to vector<4x256xf32>
    %688 = vector.broadcast %686 : vector<1x256xf32> to vector<4x256xf32>
    %689 = arith.mulf %687, %688 : vector<4x256xf32>
    %690 = arith.addf %683, %689 : vector<4x256xf32>
    %691 = vector.extract_strided_slice %623 {offsets = [0, 241], sizes = [4, 15], strides = [1, 1]} : vector<4x256xf32> to vector<4x15xf32>
    %692 = vector.extract_strided_slice %623 {offsets = [0, 0], sizes = [4, 241], strides = [1, 1]} : vector<4x256xf32> to vector<4x241xf32>
    %693 = tpu.concatenate %691, %692 in 1 : vector<4x15xf32>, vector<4x241xf32> -> vector<4x256xf32>
    %694 = vector.broadcast %5 : vector<1x256xf32> to vector<4x256xf32>
    %695 = arith.mulf %693, %694 : vector<4x256xf32>
    %c80 = arith.constant 80 : index
    %c0_201 = arith.constant 0 : index
    %c0_202 = arith.constant 0 : index
    %696 = vector.load %arg2[%c80, %c0_201, %c0_202] : memref<144x4x1xf32, #tpu.memory_space<vmem>>, vector<1x4x1xf32>
    %697 = vector.shape_cast %696 : vector<1x4x1xf32> to vector<4x1xf32>
    %698 = vector.extract_strided_slice %695 {offsets = [0, 0], sizes = [1, 256], strides = [1, 1]} : vector<4x256xf32> to vector<1x256xf32>
    %699 = vector.broadcast %697 : vector<4x1xf32> to vector<4x256xf32>
    %700 = vector.broadcast %698 : vector<1x256xf32> to vector<4x256xf32>
    %701 = arith.mulf %699, %700 : vector<4x256xf32>
    %702 = arith.addf %690, %701 : vector<4x256xf32>
    %c81 = arith.constant 81 : index
    %c0_203 = arith.constant 0 : index
    %c0_204 = arith.constant 0 : index
    %703 = vector.load %arg2[%c81, %c0_203, %c0_204] : memref<144x4x1xf32, #tpu.memory_space<vmem>>, vector<1x4x1xf32>
    %704 = vector.shape_cast %703 : vector<1x4x1xf32> to vector<4x1xf32>
    %705 = vector.extract_strided_slice %695 {offsets = [1, 0], sizes = [1, 256], strides = [1, 1]} : vector<4x256xf32> to vector<1x256xf32>
    %706 = vector.broadcast %704 : vector<4x1xf32> to vector<4x256xf32>
    %707 = vector.broadcast %705 : vector<1x256xf32> to vector<4x256xf32>
    %708 = arith.mulf %706, %707 : vector<4x256xf32>
    %709 = arith.addf %702, %708 : vector<4x256xf32>
    %c82 = arith.constant 82 : index
    %c0_205 = arith.constant 0 : index
    %c0_206 = arith.constant 0 : index
    %710 = vector.load %arg2[%c82, %c0_205, %c0_206] : memref<144x4x1xf32, #tpu.memory_space<vmem>>, vector<1x4x1xf32>
    %711 = vector.shape_cast %710 : vector<1x4x1xf32> to vector<4x1xf32>
    %712 = vector.extract_strided_slice %695 {offsets = [2, 0], sizes = [1, 256], strides = [1, 1]} : vector<4x256xf32> to vector<1x256xf32>
    %713 = vector.broadcast %711 : vector<4x1xf32> to vector<4x256xf32>
    %714 = vector.broadcast %712 : vector<1x256xf32> to vector<4x256xf32>
    %715 = arith.mulf %713, %714 : vector<4x256xf32>
    %716 = arith.addf %709, %715 : vector<4x256xf32>
    %c83 = arith.constant 83 : index
    %c0_207 = arith.constant 0 : index
    %c0_208 = arith.constant 0 : index
    %717 = vector.load %arg2[%c83, %c0_207, %c0_208] : memref<144x4x1xf32, #tpu.memory_space<vmem>>, vector<1x4x1xf32>
    %718 = vector.shape_cast %717 : vector<1x4x1xf32> to vector<4x1xf32>
    %719 = vector.extract_strided_slice %695 {offsets = [3, 0], sizes = [1, 256], strides = [1, 1]} : vector<4x256xf32> to vector<1x256xf32>
    %720 = vector.broadcast %718 : vector<4x1xf32> to vector<4x256xf32>
    %721 = vector.broadcast %719 : vector<1x256xf32> to vector<4x256xf32>
    %722 = arith.mulf %720, %721 : vector<4x256xf32>
    %723 = arith.addf %716, %722 : vector<4x256xf32>
    %724 = vector.extract_strided_slice %623 {offsets = [0, 255], sizes = [4, 1], strides = [1, 1]} : vector<4x256xf32> to vector<4x1xf32>
    %725 = vector.extract_strided_slice %623 {offsets = [0, 0], sizes = [4, 255], strides = [1, 1]} : vector<4x256xf32> to vector<4x255xf32>
    %726 = tpu.concatenate %724, %725 in 1 : vector<4x1xf32>, vector<4x255xf32> -> vector<4x256xf32>
    %727 = vector.broadcast %7 : vector<1x256xf32> to vector<4x256xf32>
    %728 = arith.mulf %726, %727 : vector<4x256xf32>
    %c84 = arith.constant 84 : index
    %c0_209 = arith.constant 0 : index
    %c0_210 = arith.constant 0 : index
    %729 = vector.load %arg2[%c84, %c0_209, %c0_210] : memref<144x4x1xf32, #tpu.memory_space<vmem>>, vector<1x4x1xf32>
    %730 = vector.shape_cast %729 : vector<1x4x1xf32> to vector<4x1xf32>
    %731 = vector.extract_strided_slice %728 {offsets = [0, 0], sizes = [1, 256], strides = [1, 1]} : vector<4x256xf32> to vector<1x256xf32>
    %732 = vector.broadcast %730 : vector<4x1xf32> to vector<4x256xf32>
    %733 = vector.broadcast %731 : vector<1x256xf32> to vector<4x256xf32>
    %734 = arith.mulf %732, %733 : vector<4x256xf32>
    %735 = arith.addf %723, %734 : vector<4x256xf32>
    %c85 = arith.constant 85 : index
    %c0_211 = arith.constant 0 : index
    %c0_212 = arith.constant 0 : index
    %736 = vector.load %arg2[%c85, %c0_211, %c0_212] : memref<144x4x1xf32, #tpu.memory_space<vmem>>, vector<1x4x1xf32>
    %737 = vector.shape_cast %736 : vector<1x4x1xf32> to vector<4x1xf32>
    %738 = vector.extract_strided_slice %728 {offsets = [1, 0], sizes = [1, 256], strides = [1, 1]} : vector<4x256xf32> to vector<1x256xf32>
    %739 = vector.broadcast %737 : vector<4x1xf32> to vector<4x256xf32>
    %740 = vector.broadcast %738 : vector<1x256xf32> to vector<4x256xf32>
    %741 = arith.mulf %739, %740 : vector<4x256xf32>
    %742 = arith.addf %735, %741 : vector<4x256xf32>
    %c86 = arith.constant 86 : index
    %c0_213 = arith.constant 0 : index
    %c0_214 = arith.constant 0 : index
    %743 = vector.load %arg2[%c86, %c0_213, %c0_214] : memref<144x4x1xf32, #tpu.memory_space<vmem>>, vector<1x4x1xf32>
    %744 = vector.shape_cast %743 : vector<1x4x1xf32> to vector<4x1xf32>
    %745 = vector.extract_strided_slice %728 {offsets = [2, 0], sizes = [1, 256], strides = [1, 1]} : vector<4x256xf32> to vector<1x256xf32>
    %746 = vector.broadcast %744 : vector<4x1xf32> to vector<4x256xf32>
    %747 = vector.broadcast %745 : vector<1x256xf32> to vector<4x256xf32>
    %748 = arith.mulf %746, %747 : vector<4x256xf32>
    %749 = arith.addf %742, %748 : vector<4x256xf32>
    %c87 = arith.constant 87 : index
    %c0_215 = arith.constant 0 : index
    %c0_216 = arith.constant 0 : index
    %750 = vector.load %arg2[%c87, %c0_215, %c0_216] : memref<144x4x1xf32, #tpu.memory_space<vmem>>, vector<1x4x1xf32>
    %751 = vector.shape_cast %750 : vector<1x4x1xf32> to vector<4x1xf32>
    %752 = vector.extract_strided_slice %728 {offsets = [3, 0], sizes = [1, 256], strides = [1, 1]} : vector<4x256xf32> to vector<1x256xf32>
    %753 = vector.broadcast %751 : vector<4x1xf32> to vector<4x256xf32>
    %754 = vector.broadcast %752 : vector<1x256xf32> to vector<4x256xf32>
    %755 = arith.mulf %753, %754 : vector<4x256xf32>
    %756 = arith.addf %749, %755 : vector<4x256xf32>
    %c88 = arith.constant 88 : index
    %c0_217 = arith.constant 0 : index
    %c0_218 = arith.constant 0 : index
    %757 = vector.load %arg2[%c88, %c0_217, %c0_218] : memref<144x4x1xf32, #tpu.memory_space<vmem>>, vector<1x4x1xf32>
    %758 = vector.shape_cast %757 : vector<1x4x1xf32> to vector<4x1xf32>
    %759 = vector.extract_strided_slice %623 {offsets = [0, 0], sizes = [1, 256], strides = [1, 1]} : vector<4x256xf32> to vector<1x256xf32>
    %760 = vector.broadcast %758 : vector<4x1xf32> to vector<4x256xf32>
    %761 = vector.broadcast %759 : vector<1x256xf32> to vector<4x256xf32>
    %762 = arith.mulf %760, %761 : vector<4x256xf32>
    %763 = arith.addf %756, %762 : vector<4x256xf32>
    %c89 = arith.constant 89 : index
    %c0_219 = arith.constant 0 : index
    %c0_220 = arith.constant 0 : index
    %764 = vector.load %arg2[%c89, %c0_219, %c0_220] : memref<144x4x1xf32, #tpu.memory_space<vmem>>, vector<1x4x1xf32>
    %765 = vector.shape_cast %764 : vector<1x4x1xf32> to vector<4x1xf32>
    %766 = vector.extract_strided_slice %623 {offsets = [1, 0], sizes = [1, 256], strides = [1, 1]} : vector<4x256xf32> to vector<1x256xf32>
    %767 = vector.broadcast %765 : vector<4x1xf32> to vector<4x256xf32>
    %768 = vector.broadcast %766 : vector<1x256xf32> to vector<4x256xf32>
    %769 = arith.mulf %767, %768 : vector<4x256xf32>
    %770 = arith.addf %763, %769 : vector<4x256xf32>
    %c90 = arith.constant 90 : index
    %c0_221 = arith.constant 0 : index
    %c0_222 = arith.constant 0 : index
    %771 = vector.load %arg2[%c90, %c0_221, %c0_222] : memref<144x4x1xf32, #tpu.memory_space<vmem>>, vector<1x4x1xf32>
    %772 = vector.shape_cast %771 : vector<1x4x1xf32> to vector<4x1xf32>
    %773 = vector.extract_strided_slice %623 {offsets = [2, 0], sizes = [1, 256], strides = [1, 1]} : vector<4x256xf32> to vector<1x256xf32>
    %774 = vector.broadcast %772 : vector<4x1xf32> to vector<4x256xf32>
    %775 = vector.broadcast %773 : vector<1x256xf32> to vector<4x256xf32>
    %776 = arith.mulf %774, %775 : vector<4x256xf32>
    %777 = arith.addf %770, %776 : vector<4x256xf32>
    %c91 = arith.constant 91 : index
    %c0_223 = arith.constant 0 : index
    %c0_224 = arith.constant 0 : index
    %778 = vector.load %arg2[%c91, %c0_223, %c0_224] : memref<144x4x1xf32, #tpu.memory_space<vmem>>, vector<1x4x1xf32>
    %779 = vector.shape_cast %778 : vector<1x4x1xf32> to vector<4x1xf32>
    %780 = vector.extract_strided_slice %623 {offsets = [3, 0], sizes = [1, 256], strides = [1, 1]} : vector<4x256xf32> to vector<1x256xf32>
    %781 = vector.broadcast %779 : vector<4x1xf32> to vector<4x256xf32>
    %782 = vector.broadcast %780 : vector<1x256xf32> to vector<4x256xf32>
    %783 = arith.mulf %781, %782 : vector<4x256xf32>
    %784 = arith.addf %777, %783 : vector<4x256xf32>
    %785 = vector.extract_strided_slice %623 {offsets = [0, 1], sizes = [4, 255], strides = [1, 1]} : vector<4x256xf32> to vector<4x255xf32>
    %786 = vector.extract_strided_slice %623 {offsets = [0, 0], sizes = [4, 1], strides = [1, 1]} : vector<4x256xf32> to vector<4x1xf32>
    %787 = tpu.concatenate %785, %786 in 1 : vector<4x255xf32>, vector<4x1xf32> -> vector<4x256xf32>
    %788 = vector.broadcast %9 : vector<1x256xf32> to vector<4x256xf32>
    %789 = arith.mulf %787, %788 : vector<4x256xf32>
    %c92 = arith.constant 92 : index
    %c0_225 = arith.constant 0 : index
    %c0_226 = arith.constant 0 : index
    %790 = vector.load %arg2[%c92, %c0_225, %c0_226] : memref<144x4x1xf32, #tpu.memory_space<vmem>>, vector<1x4x1xf32>
    %791 = vector.shape_cast %790 : vector<1x4x1xf32> to vector<4x1xf32>
    %792 = vector.extract_strided_slice %789 {offsets = [0, 0], sizes = [1, 256], strides = [1, 1]} : vector<4x256xf32> to vector<1x256xf32>
    %793 = vector.broadcast %791 : vector<4x1xf32> to vector<4x256xf32>
    %794 = vector.broadcast %792 : vector<1x256xf32> to vector<4x256xf32>
    %795 = arith.mulf %793, %794 : vector<4x256xf32>
    %796 = arith.addf %784, %795 : vector<4x256xf32>
    %c93 = arith.constant 93 : index
    %c0_227 = arith.constant 0 : index
    %c0_228 = arith.constant 0 : index
    %797 = vector.load %arg2[%c93, %c0_227, %c0_228] : memref<144x4x1xf32, #tpu.memory_space<vmem>>, vector<1x4x1xf32>
    %798 = vector.shape_cast %797 : vector<1x4x1xf32> to vector<4x1xf32>
    %799 = vector.extract_strided_slice %789 {offsets = [1, 0], sizes = [1, 256], strides = [1, 1]} : vector<4x256xf32> to vector<1x256xf32>
    %800 = vector.broadcast %798 : vector<4x1xf32> to vector<4x256xf32>
    %801 = vector.broadcast %799 : vector<1x256xf32> to vector<4x256xf32>
    %802 = arith.mulf %800, %801 : vector<4x256xf32>
    %803 = arith.addf %796, %802 : vector<4x256xf32>
    %c94 = arith.constant 94 : index
    %c0_229 = arith.constant 0 : index
    %c0_230 = arith.constant 0 : index
    %804 = vector.load %arg2[%c94, %c0_229, %c0_230] : memref<144x4x1xf32, #tpu.memory_space<vmem>>, vector<1x4x1xf32>
    %805 = vector.shape_cast %804 : vector<1x4x1xf32> to vector<4x1xf32>
    %806 = vector.extract_strided_slice %789 {offsets = [2, 0], sizes = [1, 256], strides = [1, 1]} : vector<4x256xf32> to vector<1x256xf32>
    %807 = vector.broadcast %805 : vector<4x1xf32> to vector<4x256xf32>
    %808 = vector.broadcast %806 : vector<1x256xf32> to vector<4x256xf32>
    %809 = arith.mulf %807, %808 : vector<4x256xf32>
    %810 = arith.addf %803, %809 : vector<4x256xf32>
    %c95 = arith.constant 95 : index
    %c0_231 = arith.constant 0 : index
    %c0_232 = arith.constant 0 : index
    %811 = vector.load %arg2[%c95, %c0_231, %c0_232] : memref<144x4x1xf32, #tpu.memory_space<vmem>>, vector<1x4x1xf32>
    %812 = vector.shape_cast %811 : vector<1x4x1xf32> to vector<4x1xf32>
    %813 = vector.extract_strided_slice %789 {offsets = [3, 0], sizes = [1, 256], strides = [1, 1]} : vector<4x256xf32> to vector<1x256xf32>
    %814 = vector.broadcast %812 : vector<4x1xf32> to vector<4x256xf32>
    %815 = vector.broadcast %813 : vector<1x256xf32> to vector<4x256xf32>
    %816 = arith.mulf %814, %815 : vector<4x256xf32>
    %817 = arith.addf %810, %816 : vector<4x256xf32>
    %818 = vector.extract_strided_slice %623 {offsets = [0, 15], sizes = [4, 241], strides = [1, 1]} : vector<4x256xf32> to vector<4x241xf32>
    %819 = vector.extract_strided_slice %623 {offsets = [0, 0], sizes = [4, 15], strides = [1, 1]} : vector<4x256xf32> to vector<4x15xf32>
    %820 = tpu.concatenate %818, %819 in 1 : vector<4x241xf32>, vector<4x15xf32> -> vector<4x256xf32>
    %821 = vector.broadcast %11 : vector<1x256xf32> to vector<4x256xf32>
    %822 = arith.mulf %820, %821 : vector<4x256xf32>
    %c96 = arith.constant 96 : index
    %c0_233 = arith.constant 0 : index
    %c0_234 = arith.constant 0 : index
    %823 = vector.load %arg2[%c96, %c0_233, %c0_234] : memref<144x4x1xf32, #tpu.memory_space<vmem>>, vector<1x4x1xf32>
    %824 = vector.shape_cast %823 : vector<1x4x1xf32> to vector<4x1xf32>
    %825 = vector.extract_strided_slice %822 {offsets = [0, 0], sizes = [1, 256], strides = [1, 1]} : vector<4x256xf32> to vector<1x256xf32>
    %826 = vector.broadcast %824 : vector<4x1xf32> to vector<4x256xf32>
    %827 = vector.broadcast %825 : vector<1x256xf32> to vector<4x256xf32>
    %828 = arith.mulf %826, %827 : vector<4x256xf32>
    %829 = arith.addf %817, %828 : vector<4x256xf32>
    %c97 = arith.constant 97 : index
    %c0_235 = arith.constant 0 : index
    %c0_236 = arith.constant 0 : index
    %830 = vector.load %arg2[%c97, %c0_235, %c0_236] : memref<144x4x1xf32, #tpu.memory_space<vmem>>, vector<1x4x1xf32>
    %831 = vector.shape_cast %830 : vector<1x4x1xf32> to vector<4x1xf32>
    %832 = vector.extract_strided_slice %822 {offsets = [1, 0], sizes = [1, 256], strides = [1, 1]} : vector<4x256xf32> to vector<1x256xf32>
    %833 = vector.broadcast %831 : vector<4x1xf32> to vector<4x256xf32>
    %834 = vector.broadcast %832 : vector<1x256xf32> to vector<4x256xf32>
    %835 = arith.mulf %833, %834 : vector<4x256xf32>
    %836 = arith.addf %829, %835 : vector<4x256xf32>
    %c98 = arith.constant 98 : index
    %c0_237 = arith.constant 0 : index
    %c0_238 = arith.constant 0 : index
    %837 = vector.load %arg2[%c98, %c0_237, %c0_238] : memref<144x4x1xf32, #tpu.memory_space<vmem>>, vector<1x4x1xf32>
    %838 = vector.shape_cast %837 : vector<1x4x1xf32> to vector<4x1xf32>
    %839 = vector.extract_strided_slice %822 {offsets = [2, 0], sizes = [1, 256], strides = [1, 1]} : vector<4x256xf32> to vector<1x256xf32>
    %840 = vector.broadcast %838 : vector<4x1xf32> to vector<4x256xf32>
    %841 = vector.broadcast %839 : vector<1x256xf32> to vector<4x256xf32>
    %842 = arith.mulf %840, %841 : vector<4x256xf32>
    %843 = arith.addf %836, %842 : vector<4x256xf32>
    %c99 = arith.constant 99 : index
    %c0_239 = arith.constant 0 : index
    %c0_240 = arith.constant 0 : index
    %844 = vector.load %arg2[%c99, %c0_239, %c0_240] : memref<144x4x1xf32, #tpu.memory_space<vmem>>, vector<1x4x1xf32>
    %845 = vector.shape_cast %844 : vector<1x4x1xf32> to vector<4x1xf32>
    %846 = vector.extract_strided_slice %822 {offsets = [3, 0], sizes = [1, 256], strides = [1, 1]} : vector<4x256xf32> to vector<1x256xf32>
    %847 = vector.broadcast %845 : vector<4x1xf32> to vector<4x256xf32>
    %848 = vector.broadcast %846 : vector<1x256xf32> to vector<4x256xf32>
    %849 = arith.mulf %847, %848 : vector<4x256xf32>
    %850 = arith.addf %843, %849 : vector<4x256xf32>
    %851 = vector.extract_strided_slice %623 {offsets = [0, 16], sizes = [4, 240], strides = [1, 1]} : vector<4x256xf32> to vector<4x240xf32>
    %852 = vector.extract_strided_slice %623 {offsets = [0, 0], sizes = [4, 16], strides = [1, 1]} : vector<4x256xf32> to vector<4x16xf32>
    %853 = tpu.concatenate %851, %852 in 1 : vector<4x240xf32>, vector<4x16xf32> -> vector<4x256xf32>
    %854 = vector.broadcast %13 : vector<1x256xf32> to vector<4x256xf32>
    %855 = arith.mulf %853, %854 : vector<4x256xf32>
    %c100 = arith.constant 100 : index
    %c0_241 = arith.constant 0 : index
    %c0_242 = arith.constant 0 : index
    %856 = vector.load %arg2[%c100, %c0_241, %c0_242] : memref<144x4x1xf32, #tpu.memory_space<vmem>>, vector<1x4x1xf32>
    %857 = vector.shape_cast %856 : vector<1x4x1xf32> to vector<4x1xf32>
    %858 = vector.extract_strided_slice %855 {offsets = [0, 0], sizes = [1, 256], strides = [1, 1]} : vector<4x256xf32> to vector<1x256xf32>
    %859 = vector.broadcast %857 : vector<4x1xf32> to vector<4x256xf32>
    %860 = vector.broadcast %858 : vector<1x256xf32> to vector<4x256xf32>
    %861 = arith.mulf %859, %860 : vector<4x256xf32>
    %862 = arith.addf %850, %861 : vector<4x256xf32>
    %c101 = arith.constant 101 : index
    %c0_243 = arith.constant 0 : index
    %c0_244 = arith.constant 0 : index
    %863 = vector.load %arg2[%c101, %c0_243, %c0_244] : memref<144x4x1xf32, #tpu.memory_space<vmem>>, vector<1x4x1xf32>
    %864 = vector.shape_cast %863 : vector<1x4x1xf32> to vector<4x1xf32>
    %865 = vector.extract_strided_slice %855 {offsets = [1, 0], sizes = [1, 256], strides = [1, 1]} : vector<4x256xf32> to vector<1x256xf32>
    %866 = vector.broadcast %864 : vector<4x1xf32> to vector<4x256xf32>
    %867 = vector.broadcast %865 : vector<1x256xf32> to vector<4x256xf32>
    %868 = arith.mulf %866, %867 : vector<4x256xf32>
    %869 = arith.addf %862, %868 : vector<4x256xf32>
    %c102 = arith.constant 102 : index
    %c0_245 = arith.constant 0 : index
    %c0_246 = arith.constant 0 : index
    %870 = vector.load %arg2[%c102, %c0_245, %c0_246] : memref<144x4x1xf32, #tpu.memory_space<vmem>>, vector<1x4x1xf32>
    %871 = vector.shape_cast %870 : vector<1x4x1xf32> to vector<4x1xf32>
    %872 = vector.extract_strided_slice %855 {offsets = [2, 0], sizes = [1, 256], strides = [1, 1]} : vector<4x256xf32> to vector<1x256xf32>
    %873 = vector.broadcast %871 : vector<4x1xf32> to vector<4x256xf32>
    %874 = vector.broadcast %872 : vector<1x256xf32> to vector<4x256xf32>
    %875 = arith.mulf %873, %874 : vector<4x256xf32>
    %876 = arith.addf %869, %875 : vector<4x256xf32>
    %c103 = arith.constant 103 : index
    %c0_247 = arith.constant 0 : index
    %c0_248 = arith.constant 0 : index
    %877 = vector.load %arg2[%c103, %c0_247, %c0_248] : memref<144x4x1xf32, #tpu.memory_space<vmem>>, vector<1x4x1xf32>
    %878 = vector.shape_cast %877 : vector<1x4x1xf32> to vector<4x1xf32>
    %879 = vector.extract_strided_slice %855 {offsets = [3, 0], sizes = [1, 256], strides = [1, 1]} : vector<4x256xf32> to vector<1x256xf32>
    %880 = vector.broadcast %878 : vector<4x1xf32> to vector<4x256xf32>
    %881 = vector.broadcast %879 : vector<1x256xf32> to vector<4x256xf32>
    %882 = arith.mulf %880, %881 : vector<4x256xf32>
    %883 = arith.addf %876, %882 : vector<4x256xf32>
    %884 = vector.extract_strided_slice %623 {offsets = [0, 17], sizes = [4, 239], strides = [1, 1]} : vector<4x256xf32> to vector<4x239xf32>
    %885 = vector.extract_strided_slice %623 {offsets = [0, 0], sizes = [4, 17], strides = [1, 1]} : vector<4x256xf32> to vector<4x17xf32>
    %886 = tpu.concatenate %884, %885 in 1 : vector<4x239xf32>, vector<4x17xf32> -> vector<4x256xf32>
    %887 = vector.broadcast %15 : vector<1x256xf32> to vector<4x256xf32>
    %888 = arith.mulf %886, %887 : vector<4x256xf32>
    %c104 = arith.constant 104 : index
    %c0_249 = arith.constant 0 : index
    %c0_250 = arith.constant 0 : index
    %889 = vector.load %arg2[%c104, %c0_249, %c0_250] : memref<144x4x1xf32, #tpu.memory_space<vmem>>, vector<1x4x1xf32>
    %890 = vector.shape_cast %889 : vector<1x4x1xf32> to vector<4x1xf32>
    %891 = vector.extract_strided_slice %888 {offsets = [0, 0], sizes = [1, 256], strides = [1, 1]} : vector<4x256xf32> to vector<1x256xf32>
    %892 = vector.broadcast %890 : vector<4x1xf32> to vector<4x256xf32>
    %893 = vector.broadcast %891 : vector<1x256xf32> to vector<4x256xf32>
    %894 = arith.mulf %892, %893 : vector<4x256xf32>
    %895 = arith.addf %883, %894 : vector<4x256xf32>
    %c105 = arith.constant 105 : index
    %c0_251 = arith.constant 0 : index
    %c0_252 = arith.constant 0 : index
    %896 = vector.load %arg2[%c105, %c0_251, %c0_252] : memref<144x4x1xf32, #tpu.memory_space<vmem>>, vector<1x4x1xf32>
    %897 = vector.shape_cast %896 : vector<1x4x1xf32> to vector<4x1xf32>
    %898 = vector.extract_strided_slice %888 {offsets = [1, 0], sizes = [1, 256], strides = [1, 1]} : vector<4x256xf32> to vector<1x256xf32>
    %899 = vector.broadcast %897 : vector<4x1xf32> to vector<4x256xf32>
    %900 = vector.broadcast %898 : vector<1x256xf32> to vector<4x256xf32>
    %901 = arith.mulf %899, %900 : vector<4x256xf32>
    %902 = arith.addf %895, %901 : vector<4x256xf32>
    %c106 = arith.constant 106 : index
    %c0_253 = arith.constant 0 : index
    %c0_254 = arith.constant 0 : index
    %903 = vector.load %arg2[%c106, %c0_253, %c0_254] : memref<144x4x1xf32, #tpu.memory_space<vmem>>, vector<1x4x1xf32>
    %904 = vector.shape_cast %903 : vector<1x4x1xf32> to vector<4x1xf32>
    %905 = vector.extract_strided_slice %888 {offsets = [2, 0], sizes = [1, 256], strides = [1, 1]} : vector<4x256xf32> to vector<1x256xf32>
    %906 = vector.broadcast %904 : vector<4x1xf32> to vector<4x256xf32>
    %907 = vector.broadcast %905 : vector<1x256xf32> to vector<4x256xf32>
    %908 = arith.mulf %906, %907 : vector<4x256xf32>
    %909 = arith.addf %902, %908 : vector<4x256xf32>
    %c107 = arith.constant 107 : index
    %c0_255 = arith.constant 0 : index
    %c0_256 = arith.constant 0 : index
    %910 = vector.load %arg2[%c107, %c0_255, %c0_256] : memref<144x4x1xf32, #tpu.memory_space<vmem>>, vector<1x4x1xf32>
    %911 = vector.shape_cast %910 : vector<1x4x1xf32> to vector<4x1xf32>
    %912 = vector.extract_strided_slice %888 {offsets = [3, 0], sizes = [1, 256], strides = [1, 1]} : vector<4x256xf32> to vector<1x256xf32>
    %913 = vector.broadcast %911 : vector<4x1xf32> to vector<4x256xf32>
    %914 = vector.broadcast %912 : vector<1x256xf32> to vector<4x256xf32>
    %915 = arith.mulf %913, %914 : vector<4x256xf32>
    %916 = arith.addf %909, %915 : vector<4x256xf32>
    %c2_257 = arith.constant 2 : index
    %c0_258 = arith.constant 0 : index
    %c0_259 = arith.constant 0 : index
    %917 = vector.load %arg4[%c2_257, %c0_258, %c0_259] : memref<4x4x1xf32, #tpu.memory_space<vmem>>, vector<1x4x1xf32>
    %918 = vector.shape_cast %917 : vector<1x4x1xf32> to vector<4x1xf32>
    %919 = vector.broadcast %918 : vector<4x1xf32> to vector<4x256xf32>
    %920 = arith.mulf %916, %919 : vector<4x256xf32>
    %c2_260 = arith.constant 2 : index
    %c0_261 = arith.constant 0 : index
    %c0_262 = arith.constant 0 : index
    %921 = vector.load %arg5[%c2_260, %c0_261, %c0_262] : memref<4x4x1xf32, #tpu.memory_space<vmem>>, vector<1x4x1xf32>
    %922 = vector.shape_cast %921 : vector<1x4x1xf32> to vector<4x1xf32>
    %923 = vector.broadcast %922 : vector<4x1xf32> to vector<4x256xf32>
    %924 = arith.addf %920, %923 : vector<4x256xf32>
    %cst_263 = arith.constant 0.000000e+00 : f32
    %925 = vector.broadcast %cst_263 : f32 to vector<4x256xf32>
    %926 = arith.maximumf %924, %925 : vector<4x256xf32>
    %927 = arith.addf %624, %623 : vector<4x256xf32>
    %928 = vector.extract_strided_slice %926 {offsets = [0, 239], sizes = [4, 17], strides = [1, 1]} : vector<4x256xf32> to vector<4x17xf32>
    %929 = vector.extract_strided_slice %926 {offsets = [0, 0], sizes = [4, 239], strides = [1, 1]} : vector<4x256xf32> to vector<4x239xf32>
    %930 = tpu.concatenate %928, %929 in 1 : vector<4x17xf32>, vector<4x239xf32> -> vector<4x256xf32>
    %931 = vector.broadcast %1 : vector<1x256xf32> to vector<4x256xf32>
    %932 = arith.mulf %930, %931 : vector<4x256xf32>
    %c108 = arith.constant 108 : index
    %c0_264 = arith.constant 0 : index
    %c0_265 = arith.constant 0 : index
    %933 = vector.load %arg2[%c108, %c0_264, %c0_265] : memref<144x4x1xf32, #tpu.memory_space<vmem>>, vector<1x4x1xf32>
    %934 = vector.shape_cast %933 : vector<1x4x1xf32> to vector<4x1xf32>
    %935 = vector.extract_strided_slice %932 {offsets = [0, 0], sizes = [1, 256], strides = [1, 1]} : vector<4x256xf32> to vector<1x256xf32>
    %936 = vector.broadcast %934 : vector<4x1xf32> to vector<4x256xf32>
    %937 = vector.broadcast %935 : vector<1x256xf32> to vector<4x256xf32>
    %938 = arith.mulf %936, %937 : vector<4x256xf32>
    %939 = arith.addf %927, %938 : vector<4x256xf32>
    %c109 = arith.constant 109 : index
    %c0_266 = arith.constant 0 : index
    %c0_267 = arith.constant 0 : index
    %940 = vector.load %arg2[%c109, %c0_266, %c0_267] : memref<144x4x1xf32, #tpu.memory_space<vmem>>, vector<1x4x1xf32>
    %941 = vector.shape_cast %940 : vector<1x4x1xf32> to vector<4x1xf32>
    %942 = vector.extract_strided_slice %932 {offsets = [1, 0], sizes = [1, 256], strides = [1, 1]} : vector<4x256xf32> to vector<1x256xf32>
    %943 = vector.broadcast %941 : vector<4x1xf32> to vector<4x256xf32>
    %944 = vector.broadcast %942 : vector<1x256xf32> to vector<4x256xf32>
    %945 = arith.mulf %943, %944 : vector<4x256xf32>
    %946 = arith.addf %939, %945 : vector<4x256xf32>
    %c110 = arith.constant 110 : index
    %c0_268 = arith.constant 0 : index
    %c0_269 = arith.constant 0 : index
    %947 = vector.load %arg2[%c110, %c0_268, %c0_269] : memref<144x4x1xf32, #tpu.memory_space<vmem>>, vector<1x4x1xf32>
    %948 = vector.shape_cast %947 : vector<1x4x1xf32> to vector<4x1xf32>
    %949 = vector.extract_strided_slice %932 {offsets = [2, 0], sizes = [1, 256], strides = [1, 1]} : vector<4x256xf32> to vector<1x256xf32>
    %950 = vector.broadcast %948 : vector<4x1xf32> to vector<4x256xf32>
    %951 = vector.broadcast %949 : vector<1x256xf32> to vector<4x256xf32>
    %952 = arith.mulf %950, %951 : vector<4x256xf32>
    %953 = arith.addf %946, %952 : vector<4x256xf32>
    %c111 = arith.constant 111 : index
    %c0_270 = arith.constant 0 : index
    %c0_271 = arith.constant 0 : index
    %954 = vector.load %arg2[%c111, %c0_270, %c0_271] : memref<144x4x1xf32, #tpu.memory_space<vmem>>, vector<1x4x1xf32>
    %955 = vector.shape_cast %954 : vector<1x4x1xf32> to vector<4x1xf32>
    %956 = vector.extract_strided_slice %932 {offsets = [3, 0], sizes = [1, 256], strides = [1, 1]} : vector<4x256xf32> to vector<1x256xf32>
    %957 = vector.broadcast %955 : vector<4x1xf32> to vector<4x256xf32>
    %958 = vector.broadcast %956 : vector<1x256xf32> to vector<4x256xf32>
    %959 = arith.mulf %957, %958 : vector<4x256xf32>
    %960 = arith.addf %953, %959 : vector<4x256xf32>
    %961 = vector.extract_strided_slice %926 {offsets = [0, 240], sizes = [4, 16], strides = [1, 1]} : vector<4x256xf32> to vector<4x16xf32>
    %962 = vector.extract_strided_slice %926 {offsets = [0, 0], sizes = [4, 240], strides = [1, 1]} : vector<4x256xf32> to vector<4x240xf32>
    %963 = tpu.concatenate %961, %962 in 1 : vector<4x16xf32>, vector<4x240xf32> -> vector<4x256xf32>
    %964 = vector.broadcast %3 : vector<1x256xf32> to vector<4x256xf32>
    %965 = arith.mulf %963, %964 : vector<4x256xf32>
    %c112 = arith.constant 112 : index
    %c0_272 = arith.constant 0 : index
    %c0_273 = arith.constant 0 : index
    %966 = vector.load %arg2[%c112, %c0_272, %c0_273] : memref<144x4x1xf32, #tpu.memory_space<vmem>>, vector<1x4x1xf32>
    %967 = vector.shape_cast %966 : vector<1x4x1xf32> to vector<4x1xf32>
    %968 = vector.extract_strided_slice %965 {offsets = [0, 0], sizes = [1, 256], strides = [1, 1]} : vector<4x256xf32> to vector<1x256xf32>
    %969 = vector.broadcast %967 : vector<4x1xf32> to vector<4x256xf32>
    %970 = vector.broadcast %968 : vector<1x256xf32> to vector<4x256xf32>
    %971 = arith.mulf %969, %970 : vector<4x256xf32>
    %972 = arith.addf %960, %971 : vector<4x256xf32>
    %c113 = arith.constant 113 : index
    %c0_274 = arith.constant 0 : index
    %c0_275 = arith.constant 0 : index
    %973 = vector.load %arg2[%c113, %c0_274, %c0_275] : memref<144x4x1xf32, #tpu.memory_space<vmem>>, vector<1x4x1xf32>
    %974 = vector.shape_cast %973 : vector<1x4x1xf32> to vector<4x1xf32>
    %975 = vector.extract_strided_slice %965 {offsets = [1, 0], sizes = [1, 256], strides = [1, 1]} : vector<4x256xf32> to vector<1x256xf32>
    %976 = vector.broadcast %974 : vector<4x1xf32> to vector<4x256xf32>
    %977 = vector.broadcast %975 : vector<1x256xf32> to vector<4x256xf32>
    %978 = arith.mulf %976, %977 : vector<4x256xf32>
    %979 = arith.addf %972, %978 : vector<4x256xf32>
    %c114 = arith.constant 114 : index
    %c0_276 = arith.constant 0 : index
    %c0_277 = arith.constant 0 : index
    %980 = vector.load %arg2[%c114, %c0_276, %c0_277] : memref<144x4x1xf32, #tpu.memory_space<vmem>>, vector<1x4x1xf32>
    %981 = vector.shape_cast %980 : vector<1x4x1xf32> to vector<4x1xf32>
    %982 = vector.extract_strided_slice %965 {offsets = [2, 0], sizes = [1, 256], strides = [1, 1]} : vector<4x256xf32> to vector<1x256xf32>
    %983 = vector.broadcast %981 : vector<4x1xf32> to vector<4x256xf32>
    %984 = vector.broadcast %982 : vector<1x256xf32> to vector<4x256xf32>
    %985 = arith.mulf %983, %984 : vector<4x256xf32>
    %986 = arith.addf %979, %985 : vector<4x256xf32>
    %c115 = arith.constant 115 : index
    %c0_278 = arith.constant 0 : index
    %c0_279 = arith.constant 0 : index
    %987 = vector.load %arg2[%c115, %c0_278, %c0_279] : memref<144x4x1xf32, #tpu.memory_space<vmem>>, vector<1x4x1xf32>
    %988 = vector.shape_cast %987 : vector<1x4x1xf32> to vector<4x1xf32>
    %989 = vector.extract_strided_slice %965 {offsets = [3, 0], sizes = [1, 256], strides = [1, 1]} : vector<4x256xf32> to vector<1x256xf32>
    %990 = vector.broadcast %988 : vector<4x1xf32> to vector<4x256xf32>
    %991 = vector.broadcast %989 : vector<1x256xf32> to vector<4x256xf32>
    %992 = arith.mulf %990, %991 : vector<4x256xf32>
    %993 = arith.addf %986, %992 : vector<4x256xf32>
    %994 = vector.extract_strided_slice %926 {offsets = [0, 241], sizes = [4, 15], strides = [1, 1]} : vector<4x256xf32> to vector<4x15xf32>
    %995 = vector.extract_strided_slice %926 {offsets = [0, 0], sizes = [4, 241], strides = [1, 1]} : vector<4x256xf32> to vector<4x241xf32>
    %996 = tpu.concatenate %994, %995 in 1 : vector<4x15xf32>, vector<4x241xf32> -> vector<4x256xf32>
    %997 = vector.broadcast %5 : vector<1x256xf32> to vector<4x256xf32>
    %998 = arith.mulf %996, %997 : vector<4x256xf32>
    %c116 = arith.constant 116 : index
    %c0_280 = arith.constant 0 : index
    %c0_281 = arith.constant 0 : index
    %999 = vector.load %arg2[%c116, %c0_280, %c0_281] : memref<144x4x1xf32, #tpu.memory_space<vmem>>, vector<1x4x1xf32>
    %1000 = vector.shape_cast %999 : vector<1x4x1xf32> to vector<4x1xf32>
    %1001 = vector.extract_strided_slice %998 {offsets = [0, 0], sizes = [1, 256], strides = [1, 1]} : vector<4x256xf32> to vector<1x256xf32>
    %1002 = vector.broadcast %1000 : vector<4x1xf32> to vector<4x256xf32>
    %1003 = vector.broadcast %1001 : vector<1x256xf32> to vector<4x256xf32>
    %1004 = arith.mulf %1002, %1003 : vector<4x256xf32>
    %1005 = arith.addf %993, %1004 : vector<4x256xf32>
    %c117 = arith.constant 117 : index
    %c0_282 = arith.constant 0 : index
    %c0_283 = arith.constant 0 : index
    %1006 = vector.load %arg2[%c117, %c0_282, %c0_283] : memref<144x4x1xf32, #tpu.memory_space<vmem>>, vector<1x4x1xf32>
    %1007 = vector.shape_cast %1006 : vector<1x4x1xf32> to vector<4x1xf32>
    %1008 = vector.extract_strided_slice %998 {offsets = [1, 0], sizes = [1, 256], strides = [1, 1]} : vector<4x256xf32> to vector<1x256xf32>
    %1009 = vector.broadcast %1007 : vector<4x1xf32> to vector<4x256xf32>
    %1010 = vector.broadcast %1008 : vector<1x256xf32> to vector<4x256xf32>
    %1011 = arith.mulf %1009, %1010 : vector<4x256xf32>
    %1012 = arith.addf %1005, %1011 : vector<4x256xf32>
    %c118 = arith.constant 118 : index
    %c0_284 = arith.constant 0 : index
    %c0_285 = arith.constant 0 : index
    %1013 = vector.load %arg2[%c118, %c0_284, %c0_285] : memref<144x4x1xf32, #tpu.memory_space<vmem>>, vector<1x4x1xf32>
    %1014 = vector.shape_cast %1013 : vector<1x4x1xf32> to vector<4x1xf32>
    %1015 = vector.extract_strided_slice %998 {offsets = [2, 0], sizes = [1, 256], strides = [1, 1]} : vector<4x256xf32> to vector<1x256xf32>
    %1016 = vector.broadcast %1014 : vector<4x1xf32> to vector<4x256xf32>
    %1017 = vector.broadcast %1015 : vector<1x256xf32> to vector<4x256xf32>
    %1018 = arith.mulf %1016, %1017 : vector<4x256xf32>
    %1019 = arith.addf %1012, %1018 : vector<4x256xf32>
    %c119 = arith.constant 119 : index
    %c0_286 = arith.constant 0 : index
    %c0_287 = arith.constant 0 : index
    %1020 = vector.load %arg2[%c119, %c0_286, %c0_287] : memref<144x4x1xf32, #tpu.memory_space<vmem>>, vector<1x4x1xf32>
    %1021 = vector.shape_cast %1020 : vector<1x4x1xf32> to vector<4x1xf32>
    %1022 = vector.extract_strided_slice %998 {offsets = [3, 0], sizes = [1, 256], strides = [1, 1]} : vector<4x256xf32> to vector<1x256xf32>
    %1023 = vector.broadcast %1021 : vector<4x1xf32> to vector<4x256xf32>
    %1024 = vector.broadcast %1022 : vector<1x256xf32> to vector<4x256xf32>
    %1025 = arith.mulf %1023, %1024 : vector<4x256xf32>
    %1026 = arith.addf %1019, %1025 : vector<4x256xf32>
    %1027 = vector.extract_strided_slice %926 {offsets = [0, 255], sizes = [4, 1], strides = [1, 1]} : vector<4x256xf32> to vector<4x1xf32>
    %1028 = vector.extract_strided_slice %926 {offsets = [0, 0], sizes = [4, 255], strides = [1, 1]} : vector<4x256xf32> to vector<4x255xf32>
    %1029 = tpu.concatenate %1027, %1028 in 1 : vector<4x1xf32>, vector<4x255xf32> -> vector<4x256xf32>
    %1030 = vector.broadcast %7 : vector<1x256xf32> to vector<4x256xf32>
    %1031 = arith.mulf %1029, %1030 : vector<4x256xf32>
    %c120 = arith.constant 120 : index
    %c0_288 = arith.constant 0 : index
    %c0_289 = arith.constant 0 : index
    %1032 = vector.load %arg2[%c120, %c0_288, %c0_289] : memref<144x4x1xf32, #tpu.memory_space<vmem>>, vector<1x4x1xf32>
    %1033 = vector.shape_cast %1032 : vector<1x4x1xf32> to vector<4x1xf32>
    %1034 = vector.extract_strided_slice %1031 {offsets = [0, 0], sizes = [1, 256], strides = [1, 1]} : vector<4x256xf32> to vector<1x256xf32>
    %1035 = vector.broadcast %1033 : vector<4x1xf32> to vector<4x256xf32>
    %1036 = vector.broadcast %1034 : vector<1x256xf32> to vector<4x256xf32>
    %1037 = arith.mulf %1035, %1036 : vector<4x256xf32>
    %1038 = arith.addf %1026, %1037 : vector<4x256xf32>
    %c121 = arith.constant 121 : index
    %c0_290 = arith.constant 0 : index
    %c0_291 = arith.constant 0 : index
    %1039 = vector.load %arg2[%c121, %c0_290, %c0_291] : memref<144x4x1xf32, #tpu.memory_space<vmem>>, vector<1x4x1xf32>
    %1040 = vector.shape_cast %1039 : vector<1x4x1xf32> to vector<4x1xf32>
    %1041 = vector.extract_strided_slice %1031 {offsets = [1, 0], sizes = [1, 256], strides = [1, 1]} : vector<4x256xf32> to vector<1x256xf32>
    %1042 = vector.broadcast %1040 : vector<4x1xf32> to vector<4x256xf32>
    %1043 = vector.broadcast %1041 : vector<1x256xf32> to vector<4x256xf32>
    %1044 = arith.mulf %1042, %1043 : vector<4x256xf32>
    %1045 = arith.addf %1038, %1044 : vector<4x256xf32>
    %c122 = arith.constant 122 : index
    %c0_292 = arith.constant 0 : index
    %c0_293 = arith.constant 0 : index
    %1046 = vector.load %arg2[%c122, %c0_292, %c0_293] : memref<144x4x1xf32, #tpu.memory_space<vmem>>, vector<1x4x1xf32>
    %1047 = vector.shape_cast %1046 : vector<1x4x1xf32> to vector<4x1xf32>
    %1048 = vector.extract_strided_slice %1031 {offsets = [2, 0], sizes = [1, 256], strides = [1, 1]} : vector<4x256xf32> to vector<1x256xf32>
    %1049 = vector.broadcast %1047 : vector<4x1xf32> to vector<4x256xf32>
    %1050 = vector.broadcast %1048 : vector<1x256xf32> to vector<4x256xf32>
    %1051 = arith.mulf %1049, %1050 : vector<4x256xf32>
    %1052 = arith.addf %1045, %1051 : vector<4x256xf32>
    %c123 = arith.constant 123 : index
    %c0_294 = arith.constant 0 : index
    %c0_295 = arith.constant 0 : index
    %1053 = vector.load %arg2[%c123, %c0_294, %c0_295] : memref<144x4x1xf32, #tpu.memory_space<vmem>>, vector<1x4x1xf32>
    %1054 = vector.shape_cast %1053 : vector<1x4x1xf32> to vector<4x1xf32>
    %1055 = vector.extract_strided_slice %1031 {offsets = [3, 0], sizes = [1, 256], strides = [1, 1]} : vector<4x256xf32> to vector<1x256xf32>
    %1056 = vector.broadcast %1054 : vector<4x1xf32> to vector<4x256xf32>
    %1057 = vector.broadcast %1055 : vector<1x256xf32> to vector<4x256xf32>
    %1058 = arith.mulf %1056, %1057 : vector<4x256xf32>
    %1059 = arith.addf %1052, %1058 : vector<4x256xf32>
    %c124 = arith.constant 124 : index
    %c0_296 = arith.constant 0 : index
    %c0_297 = arith.constant 0 : index
    %1060 = vector.load %arg2[%c124, %c0_296, %c0_297] : memref<144x4x1xf32, #tpu.memory_space<vmem>>, vector<1x4x1xf32>
    %1061 = vector.shape_cast %1060 : vector<1x4x1xf32> to vector<4x1xf32>
    %1062 = vector.extract_strided_slice %926 {offsets = [0, 0], sizes = [1, 256], strides = [1, 1]} : vector<4x256xf32> to vector<1x256xf32>
    %1063 = vector.broadcast %1061 : vector<4x1xf32> to vector<4x256xf32>
    %1064 = vector.broadcast %1062 : vector<1x256xf32> to vector<4x256xf32>
    %1065 = arith.mulf %1063, %1064 : vector<4x256xf32>
    %1066 = arith.addf %1059, %1065 : vector<4x256xf32>
    %c125 = arith.constant 125 : index
    %c0_298 = arith.constant 0 : index
    %c0_299 = arith.constant 0 : index
    %1067 = vector.load %arg2[%c125, %c0_298, %c0_299] : memref<144x4x1xf32, #tpu.memory_space<vmem>>, vector<1x4x1xf32>
    %1068 = vector.shape_cast %1067 : vector<1x4x1xf32> to vector<4x1xf32>
    %1069 = vector.extract_strided_slice %926 {offsets = [1, 0], sizes = [1, 256], strides = [1, 1]} : vector<4x256xf32> to vector<1x256xf32>
    %1070 = vector.broadcast %1068 : vector<4x1xf32> to vector<4x256xf32>
    %1071 = vector.broadcast %1069 : vector<1x256xf32> to vector<4x256xf32>
    %1072 = arith.mulf %1070, %1071 : vector<4x256xf32>
    %1073 = arith.addf %1066, %1072 : vector<4x256xf32>
    %c126 = arith.constant 126 : index
    %c0_300 = arith.constant 0 : index
    %c0_301 = arith.constant 0 : index
    %1074 = vector.load %arg2[%c126, %c0_300, %c0_301] : memref<144x4x1xf32, #tpu.memory_space<vmem>>, vector<1x4x1xf32>
    %1075 = vector.shape_cast %1074 : vector<1x4x1xf32> to vector<4x1xf32>
    %1076 = vector.extract_strided_slice %926 {offsets = [2, 0], sizes = [1, 256], strides = [1, 1]} : vector<4x256xf32> to vector<1x256xf32>
    %1077 = vector.broadcast %1075 : vector<4x1xf32> to vector<4x256xf32>
    %1078 = vector.broadcast %1076 : vector<1x256xf32> to vector<4x256xf32>
    %1079 = arith.mulf %1077, %1078 : vector<4x256xf32>
    %1080 = arith.addf %1073, %1079 : vector<4x256xf32>
    %c127 = arith.constant 127 : index
    %c0_302 = arith.constant 0 : index
    %c0_303 = arith.constant 0 : index
    %1081 = vector.load %arg2[%c127, %c0_302, %c0_303] : memref<144x4x1xf32, #tpu.memory_space<vmem>>, vector<1x4x1xf32>
    %1082 = vector.shape_cast %1081 : vector<1x4x1xf32> to vector<4x1xf32>
    %1083 = vector.extract_strided_slice %926 {offsets = [3, 0], sizes = [1, 256], strides = [1, 1]} : vector<4x256xf32> to vector<1x256xf32>
    %1084 = vector.broadcast %1082 : vector<4x1xf32> to vector<4x256xf32>
    %1085 = vector.broadcast %1083 : vector<1x256xf32> to vector<4x256xf32>
    %1086 = arith.mulf %1084, %1085 : vector<4x256xf32>
    %1087 = arith.addf %1080, %1086 : vector<4x256xf32>
    %1088 = vector.extract_strided_slice %926 {offsets = [0, 1], sizes = [4, 255], strides = [1, 1]} : vector<4x256xf32> to vector<4x255xf32>
    %1089 = vector.extract_strided_slice %926 {offsets = [0, 0], sizes = [4, 1], strides = [1, 1]} : vector<4x256xf32> to vector<4x1xf32>
    %1090 = tpu.concatenate %1088, %1089 in 1 : vector<4x255xf32>, vector<4x1xf32> -> vector<4x256xf32>
    %1091 = vector.broadcast %9 : vector<1x256xf32> to vector<4x256xf32>
    %1092 = arith.mulf %1090, %1091 : vector<4x256xf32>
    %c128 = arith.constant 128 : index
    %c0_304 = arith.constant 0 : index
    %c0_305 = arith.constant 0 : index
    %1093 = vector.load %arg2[%c128, %c0_304, %c0_305] : memref<144x4x1xf32, #tpu.memory_space<vmem>>, vector<1x4x1xf32>
    %1094 = vector.shape_cast %1093 : vector<1x4x1xf32> to vector<4x1xf32>
    %1095 = vector.extract_strided_slice %1092 {offsets = [0, 0], sizes = [1, 256], strides = [1, 1]} : vector<4x256xf32> to vector<1x256xf32>
    %1096 = vector.broadcast %1094 : vector<4x1xf32> to vector<4x256xf32>
    %1097 = vector.broadcast %1095 : vector<1x256xf32> to vector<4x256xf32>
    %1098 = arith.mulf %1096, %1097 : vector<4x256xf32>
    %1099 = arith.addf %1087, %1098 : vector<4x256xf32>
    %c129 = arith.constant 129 : index
    %c0_306 = arith.constant 0 : index
    %c0_307 = arith.constant 0 : index
    %1100 = vector.load %arg2[%c129, %c0_306, %c0_307] : memref<144x4x1xf32, #tpu.memory_space<vmem>>, vector<1x4x1xf32>
    %1101 = vector.shape_cast %1100 : vector<1x4x1xf32> to vector<4x1xf32>
    %1102 = vector.extract_strided_slice %1092 {offsets = [1, 0], sizes = [1, 256], strides = [1, 1]} : vector<4x256xf32> to vector<1x256xf32>
    %1103 = vector.broadcast %1101 : vector<4x1xf32> to vector<4x256xf32>
    %1104 = vector.broadcast %1102 : vector<1x256xf32> to vector<4x256xf32>
    %1105 = arith.mulf %1103, %1104 : vector<4x256xf32>
    %1106 = arith.addf %1099, %1105 : vector<4x256xf32>
    %c130 = arith.constant 130 : index
    %c0_308 = arith.constant 0 : index
    %c0_309 = arith.constant 0 : index
    %1107 = vector.load %arg2[%c130, %c0_308, %c0_309] : memref<144x4x1xf32, #tpu.memory_space<vmem>>, vector<1x4x1xf32>
    %1108 = vector.shape_cast %1107 : vector<1x4x1xf32> to vector<4x1xf32>
    %1109 = vector.extract_strided_slice %1092 {offsets = [2, 0], sizes = [1, 256], strides = [1, 1]} : vector<4x256xf32> to vector<1x256xf32>
    %1110 = vector.broadcast %1108 : vector<4x1xf32> to vector<4x256xf32>
    %1111 = vector.broadcast %1109 : vector<1x256xf32> to vector<4x256xf32>
    %1112 = arith.mulf %1110, %1111 : vector<4x256xf32>
    %1113 = arith.addf %1106, %1112 : vector<4x256xf32>
    %c131 = arith.constant 131 : index
    %c0_310 = arith.constant 0 : index
    %c0_311 = arith.constant 0 : index
    %1114 = vector.load %arg2[%c131, %c0_310, %c0_311] : memref<144x4x1xf32, #tpu.memory_space<vmem>>, vector<1x4x1xf32>
    %1115 = vector.shape_cast %1114 : vector<1x4x1xf32> to vector<4x1xf32>
    %1116 = vector.extract_strided_slice %1092 {offsets = [3, 0], sizes = [1, 256], strides = [1, 1]} : vector<4x256xf32> to vector<1x256xf32>
    %1117 = vector.broadcast %1115 : vector<4x1xf32> to vector<4x256xf32>
    %1118 = vector.broadcast %1116 : vector<1x256xf32> to vector<4x256xf32>
    %1119 = arith.mulf %1117, %1118 : vector<4x256xf32>
    %1120 = arith.addf %1113, %1119 : vector<4x256xf32>
    %1121 = vector.extract_strided_slice %926 {offsets = [0, 15], sizes = [4, 241], strides = [1, 1]} : vector<4x256xf32> to vector<4x241xf32>
    %1122 = vector.extract_strided_slice %926 {offsets = [0, 0], sizes = [4, 15], strides = [1, 1]} : vector<4x256xf32> to vector<4x15xf32>
    %1123 = tpu.concatenate %1121, %1122 in 1 : vector<4x241xf32>, vector<4x15xf32> -> vector<4x256xf32>
    %1124 = vector.broadcast %11 : vector<1x256xf32> to vector<4x256xf32>
    %1125 = arith.mulf %1123, %1124 : vector<4x256xf32>
    %c132 = arith.constant 132 : index
    %c0_312 = arith.constant 0 : index
    %c0_313 = arith.constant 0 : index
    %1126 = vector.load %arg2[%c132, %c0_312, %c0_313] : memref<144x4x1xf32, #tpu.memory_space<vmem>>, vector<1x4x1xf32>
    %1127 = vector.shape_cast %1126 : vector<1x4x1xf32> to vector<4x1xf32>
    %1128 = vector.extract_strided_slice %1125 {offsets = [0, 0], sizes = [1, 256], strides = [1, 1]} : vector<4x256xf32> to vector<1x256xf32>
    %1129 = vector.broadcast %1127 : vector<4x1xf32> to vector<4x256xf32>
    %1130 = vector.broadcast %1128 : vector<1x256xf32> to vector<4x256xf32>
    %1131 = arith.mulf %1129, %1130 : vector<4x256xf32>
    %1132 = arith.addf %1120, %1131 : vector<4x256xf32>
    %c133 = arith.constant 133 : index
    %c0_314 = arith.constant 0 : index
    %c0_315 = arith.constant 0 : index
    %1133 = vector.load %arg2[%c133, %c0_314, %c0_315] : memref<144x4x1xf32, #tpu.memory_space<vmem>>, vector<1x4x1xf32>
    %1134 = vector.shape_cast %1133 : vector<1x4x1xf32> to vector<4x1xf32>
    %1135 = vector.extract_strided_slice %1125 {offsets = [1, 0], sizes = [1, 256], strides = [1, 1]} : vector<4x256xf32> to vector<1x256xf32>
    %1136 = vector.broadcast %1134 : vector<4x1xf32> to vector<4x256xf32>
    %1137 = vector.broadcast %1135 : vector<1x256xf32> to vector<4x256xf32>
    %1138 = arith.mulf %1136, %1137 : vector<4x256xf32>
    %1139 = arith.addf %1132, %1138 : vector<4x256xf32>
    %c134 = arith.constant 134 : index
    %c0_316 = arith.constant 0 : index
    %c0_317 = arith.constant 0 : index
    %1140 = vector.load %arg2[%c134, %c0_316, %c0_317] : memref<144x4x1xf32, #tpu.memory_space<vmem>>, vector<1x4x1xf32>
    %1141 = vector.shape_cast %1140 : vector<1x4x1xf32> to vector<4x1xf32>
    %1142 = vector.extract_strided_slice %1125 {offsets = [2, 0], sizes = [1, 256], strides = [1, 1]} : vector<4x256xf32> to vector<1x256xf32>
    %1143 = vector.broadcast %1141 : vector<4x1xf32> to vector<4x256xf32>
    %1144 = vector.broadcast %1142 : vector<1x256xf32> to vector<4x256xf32>
    %1145 = arith.mulf %1143, %1144 : vector<4x256xf32>
    %1146 = arith.addf %1139, %1145 : vector<4x256xf32>
    %c135 = arith.constant 135 : index
    %c0_318 = arith.constant 0 : index
    %c0_319 = arith.constant 0 : index
    %1147 = vector.load %arg2[%c135, %c0_318, %c0_319] : memref<144x4x1xf32, #tpu.memory_space<vmem>>, vector<1x4x1xf32>
    %1148 = vector.shape_cast %1147 : vector<1x4x1xf32> to vector<4x1xf32>
    %1149 = vector.extract_strided_slice %1125 {offsets = [3, 0], sizes = [1, 256], strides = [1, 1]} : vector<4x256xf32> to vector<1x256xf32>
    %1150 = vector.broadcast %1148 : vector<4x1xf32> to vector<4x256xf32>
    %1151 = vector.broadcast %1149 : vector<1x256xf32> to vector<4x256xf32>
    %1152 = arith.mulf %1150, %1151 : vector<4x256xf32>
    %1153 = arith.addf %1146, %1152 : vector<4x256xf32>
    %1154 = vector.extract_strided_slice %926 {offsets = [0, 16], sizes = [4, 240], strides = [1, 1]} : vector<4x256xf32> to vector<4x240xf32>
    %1155 = vector.extract_strided_slice %926 {offsets = [0, 0], sizes = [4, 16], strides = [1, 1]} : vector<4x256xf32> to vector<4x16xf32>
    %1156 = tpu.concatenate %1154, %1155 in 1 : vector<4x240xf32>, vector<4x16xf32> -> vector<4x256xf32>
    %1157 = vector.broadcast %13 : vector<1x256xf32> to vector<4x256xf32>
    %1158 = arith.mulf %1156, %1157 : vector<4x256xf32>
    %c136 = arith.constant 136 : index
    %c0_320 = arith.constant 0 : index
    %c0_321 = arith.constant 0 : index
    %1159 = vector.load %arg2[%c136, %c0_320, %c0_321] : memref<144x4x1xf32, #tpu.memory_space<vmem>>, vector<1x4x1xf32>
    %1160 = vector.shape_cast %1159 : vector<1x4x1xf32> to vector<4x1xf32>
    %1161 = vector.extract_strided_slice %1158 {offsets = [0, 0], sizes = [1, 256], strides = [1, 1]} : vector<4x256xf32> to vector<1x256xf32>
    %1162 = vector.broadcast %1160 : vector<4x1xf32> to vector<4x256xf32>
    %1163 = vector.broadcast %1161 : vector<1x256xf32> to vector<4x256xf32>
    %1164 = arith.mulf %1162, %1163 : vector<4x256xf32>
    %1165 = arith.addf %1153, %1164 : vector<4x256xf32>
    %c137 = arith.constant 137 : index
    %c0_322 = arith.constant 0 : index
    %c0_323 = arith.constant 0 : index
    %1166 = vector.load %arg2[%c137, %c0_322, %c0_323] : memref<144x4x1xf32, #tpu.memory_space<vmem>>, vector<1x4x1xf32>
    %1167 = vector.shape_cast %1166 : vector<1x4x1xf32> to vector<4x1xf32>
    %1168 = vector.extract_strided_slice %1158 {offsets = [1, 0], sizes = [1, 256], strides = [1, 1]} : vector<4x256xf32> to vector<1x256xf32>
    %1169 = vector.broadcast %1167 : vector<4x1xf32> to vector<4x256xf32>
    %1170 = vector.broadcast %1168 : vector<1x256xf32> to vector<4x256xf32>
    %1171 = arith.mulf %1169, %1170 : vector<4x256xf32>
    %1172 = arith.addf %1165, %1171 : vector<4x256xf32>
    %c138 = arith.constant 138 : index
    %c0_324 = arith.constant 0 : index
    %c0_325 = arith.constant 0 : index
    %1173 = vector.load %arg2[%c138, %c0_324, %c0_325] : memref<144x4x1xf32, #tpu.memory_space<vmem>>, vector<1x4x1xf32>
    %1174 = vector.shape_cast %1173 : vector<1x4x1xf32> to vector<4x1xf32>
    %1175 = vector.extract_strided_slice %1158 {offsets = [2, 0], sizes = [1, 256], strides = [1, 1]} : vector<4x256xf32> to vector<1x256xf32>
    %1176 = vector.broadcast %1174 : vector<4x1xf32> to vector<4x256xf32>
    %1177 = vector.broadcast %1175 : vector<1x256xf32> to vector<4x256xf32>
    %1178 = arith.mulf %1176, %1177 : vector<4x256xf32>
    %1179 = arith.addf %1172, %1178 : vector<4x256xf32>
    %c139 = arith.constant 139 : index
    %c0_326 = arith.constant 0 : index
    %c0_327 = arith.constant 0 : index
    %1180 = vector.load %arg2[%c139, %c0_326, %c0_327] : memref<144x4x1xf32, #tpu.memory_space<vmem>>, vector<1x4x1xf32>
    %1181 = vector.shape_cast %1180 : vector<1x4x1xf32> to vector<4x1xf32>
    %1182 = vector.extract_strided_slice %1158 {offsets = [3, 0], sizes = [1, 256], strides = [1, 1]} : vector<4x256xf32> to vector<1x256xf32>
    %1183 = vector.broadcast %1181 : vector<4x1xf32> to vector<4x256xf32>
    %1184 = vector.broadcast %1182 : vector<1x256xf32> to vector<4x256xf32>
    %1185 = arith.mulf %1183, %1184 : vector<4x256xf32>
    %1186 = arith.addf %1179, %1185 : vector<4x256xf32>
    %1187 = vector.extract_strided_slice %926 {offsets = [0, 17], sizes = [4, 239], strides = [1, 1]} : vector<4x256xf32> to vector<4x239xf32>
    %1188 = vector.extract_strided_slice %926 {offsets = [0, 0], sizes = [4, 17], strides = [1, 1]} : vector<4x256xf32> to vector<4x17xf32>
    %1189 = tpu.concatenate %1187, %1188 in 1 : vector<4x239xf32>, vector<4x17xf32> -> vector<4x256xf32>
    %1190 = vector.broadcast %15 : vector<1x256xf32> to vector<4x256xf32>
    %1191 = arith.mulf %1189, %1190 : vector<4x256xf32>
    %c140 = arith.constant 140 : index
    %c0_328 = arith.constant 0 : index
    %c0_329 = arith.constant 0 : index
    %1192 = vector.load %arg2[%c140, %c0_328, %c0_329] : memref<144x4x1xf32, #tpu.memory_space<vmem>>, vector<1x4x1xf32>
    %1193 = vector.shape_cast %1192 : vector<1x4x1xf32> to vector<4x1xf32>
    %1194 = vector.extract_strided_slice %1191 {offsets = [0, 0], sizes = [1, 256], strides = [1, 1]} : vector<4x256xf32> to vector<1x256xf32>
    %1195 = vector.broadcast %1193 : vector<4x1xf32> to vector<4x256xf32>
    %1196 = vector.broadcast %1194 : vector<1x256xf32> to vector<4x256xf32>
    %1197 = arith.mulf %1195, %1196 : vector<4x256xf32>
    %1198 = arith.addf %1186, %1197 : vector<4x256xf32>
    %c141 = arith.constant 141 : index
    %c0_330 = arith.constant 0 : index
    %c0_331 = arith.constant 0 : index
    %1199 = vector.load %arg2[%c141, %c0_330, %c0_331] : memref<144x4x1xf32, #tpu.memory_space<vmem>>, vector<1x4x1xf32>
    %1200 = vector.shape_cast %1199 : vector<1x4x1xf32> to vector<4x1xf32>
    %1201 = vector.extract_strided_slice %1191 {offsets = [1, 0], sizes = [1, 256], strides = [1, 1]} : vector<4x256xf32> to vector<1x256xf32>
    %1202 = vector.broadcast %1200 : vector<4x1xf32> to vector<4x256xf32>
    %1203 = vector.broadcast %1201 : vector<1x256xf32> to vector<4x256xf32>
    %1204 = arith.mulf %1202, %1203 : vector<4x256xf32>
    %1205 = arith.addf %1198, %1204 : vector<4x256xf32>
    %c142 = arith.constant 142 : index
    %c0_332 = arith.constant 0 : index
    %c0_333 = arith.constant 0 : index
    %1206 = vector.load %arg2[%c142, %c0_332, %c0_333] : memref<144x4x1xf32, #tpu.memory_space<vmem>>, vector<1x4x1xf32>
    %1207 = vector.shape_cast %1206 : vector<1x4x1xf32> to vector<4x1xf32>
    %1208 = vector.extract_strided_slice %1191 {offsets = [2, 0], sizes = [1, 256], strides = [1, 1]} : vector<4x256xf32> to vector<1x256xf32>
    %1209 = vector.broadcast %1207 : vector<4x1xf32> to vector<4x256xf32>
    %1210 = vector.broadcast %1208 : vector<1x256xf32> to vector<4x256xf32>
    %1211 = arith.mulf %1209, %1210 : vector<4x256xf32>
    %1212 = arith.addf %1205, %1211 : vector<4x256xf32>
    %c143 = arith.constant 143 : index
    %c0_334 = arith.constant 0 : index
    %c0_335 = arith.constant 0 : index
    %1213 = vector.load %arg2[%c143, %c0_334, %c0_335] : memref<144x4x1xf32, #tpu.memory_space<vmem>>, vector<1x4x1xf32>
    %1214 = vector.shape_cast %1213 : vector<1x4x1xf32> to vector<4x1xf32>
    %1215 = vector.extract_strided_slice %1191 {offsets = [3, 0], sizes = [1, 256], strides = [1, 1]} : vector<4x256xf32> to vector<1x256xf32>
    %1216 = vector.broadcast %1214 : vector<4x1xf32> to vector<4x256xf32>
    %1217 = vector.broadcast %1215 : vector<1x256xf32> to vector<4x256xf32>
    %1218 = arith.mulf %1216, %1217 : vector<4x256xf32>
    %1219 = arith.addf %1212, %1218 : vector<4x256xf32>
    %c3_336 = arith.constant 3 : index
    %c0_337 = arith.constant 0 : index
    %c0_338 = arith.constant 0 : index
    %1220 = vector.load %arg4[%c3_336, %c0_337, %c0_338] : memref<4x4x1xf32, #tpu.memory_space<vmem>>, vector<1x4x1xf32>
    %1221 = vector.shape_cast %1220 : vector<1x4x1xf32> to vector<4x1xf32>
    %1222 = vector.broadcast %1221 : vector<4x1xf32> to vector<4x256xf32>
    %1223 = arith.mulf %1219, %1222 : vector<4x256xf32>
    %c3_339 = arith.constant 3 : index
    %c0_340 = arith.constant 0 : index
    %c0_341 = arith.constant 0 : index
    %1224 = vector.load %arg5[%c3_339, %c0_340, %c0_341] : memref<4x4x1xf32, #tpu.memory_space<vmem>>, vector<1x4x1xf32>
    %1225 = vector.shape_cast %1224 : vector<1x4x1xf32> to vector<4x1xf32>
    %1226 = vector.broadcast %1225 : vector<4x1xf32> to vector<4x256xf32>
    %1227 = arith.addf %1223, %1226 : vector<4x256xf32>
    %cst_342 = arith.constant 0.000000e+00 : f32
    %1228 = vector.broadcast %cst_342 : f32 to vector<4x256xf32>
    %1229 = arith.maximumf %1227, %1228 : vector<4x256xf32>
    %c0_343 = arith.constant 0 : index
    %c0_344 = arith.constant 0 : index
    %c0_345 = arith.constant 0 : index
    %1230 = vector.load %arg6[%c0_343, %c0_344, %c0_345] : memref<1x4x256xf32, #tpu.memory_space<vmem>>, vector<1x4x256xf32>
    %1231 = vector.shape_cast %1230 : vector<1x4x256xf32> to vector<4x256xf32>
    %1232 = vector.shape_cast %1229 : vector<4x256xf32> to vector<1x4x256xf32>
    tpu.vector_store %arg6[%c0_343, %c0_344, %c0_345], %1232 {strides = array<i32>} : memref<1x4x256xf32, #tpu.memory_space<vmem>>, vector<1x4x256xf32>,
    return
  }
  func.func @transform_0(%arg0: i32) -> (i32, i32, i32) {
    %c0_i32 = arith.constant 0 : i32
    %c0_i32_0 = arith.constant 0 : i32
    %c0_i32_1 = arith.constant 0 : i32
    return %arg0, %c0_i32, %c0_i32_0 : i32, i32, i32
  }
  func.func @transform_1(%arg0: i32) -> (i32, i32, i32) {
    %c0_i32 = arith.constant 0 : i32
    %c0_i32_0 = arith.constant 0 : i32
    %c0_i32_1 = arith.constant 0 : i32
    %c0_i32_2 = arith.constant 0 : i32
    return %c0_i32, %c0_i32_0, %c0_i32_1 : i32, i32, i32
  }
  func.func @transform_2(%arg0: i32) -> (i32, i32, i32) {
    %c0_i32 = arith.constant 0 : i32
    %c0_i32_0 = arith.constant 0 : i32
    %c0_i32_1 = arith.constant 0 : i32
    %c0_i32_2 = arith.constant 0 : i32
    return %c0_i32, %c0_i32_0, %c0_i32_1 : i32, i32, i32
  }
  func.func @transform_3(%arg0: i32) -> (i32, i32, i32) {
    %c0_i32 = arith.constant 0 : i32
    %c0_i32_0 = arith.constant 0 : i32
    %c0_i32_1 = arith.constant 0 : i32
    %c0_i32_2 = arith.constant 0 : i32
    return %c0_i32, %c0_i32_0, %c0_i32_1 : i32, i32, i32
  }
  func.func @transform_4(%arg0: i32) -> (i32, i32, i32) {
    %c0_i32 = arith.constant 0 : i32
    %c0_i32_0 = arith.constant 0 : i32
    %c0_i32_1 = arith.constant 0 : i32
    %c0_i32_2 = arith.constant 0 : i32
    return %c0_i32, %c0_i32_0, %c0_i32_1 : i32, i32, i32
  }
  func.func @transform_5(%arg0: i32) -> (i32, i32, i32) {
    %c0_i32 = arith.constant 0 : i32
    %c0_i32_0 = arith.constant 0 : i32
    %c0_i32_1 = arith.constant 0 : i32
    return %arg0, %c0_i32, %c0_i32_0 : i32, i32, i32
  }
}

</mosaic_0001>

<bundles_post_ra>
// kernel: tpu_custom_call.1
= control target key start
LH: loop header
LB: loop body
LE: loop exit
PB: predicated region body
PF: predicated region fallthrough
CT: control target
= control target key end

     0   :  { %10 = vsyncpa [#allocation3], 0  ;;  %s6008_s0 = inlined_call_operand.vmem [shape: f32[2,4,256], index: 0, kind: input, shape index: {}]   ;;  %s6009_s1 = inlined_call_operand.vmem [shape: f32[144,4,1], index: 1, kind: input, shape index: {}]   ;;  %s6010_s2 = inlined_call_operand.vmem [shape: f32[9,1,256], index: 2, kind: input, shape index: {}]   ;;  %s6011_s3 = inlined_call_operand.vmem [shape: f32[4,4,1], index: 3, kind: input, shape index: {}]   ;;  %s6012_s4 = inlined_call_operand.vmem [shape: f32[4,4,1], index: 4, kind: input, shape index: {}]   ;;  %s6013_s5 = inlined_call_operand.hbm [shape: f32[2,4,256], index: 5, kind: output, shape index: {}]  }
   0x1   :  { %12 = vsyncpa [#allocation3 + $0x1], 0  ;;  %s4393_s18 = smov 0   ;;  %s4395_s19 = smov 0  }
   0x2   :  { %s4397_s20 = smov 0   ;;  %s4399_s21 = smov 0  }
   0x3 LB: > { %s4414_s22 = sadd.s32 4294967295, %s4350_s21   ;;  %s4065_s23 = sadd.s32 4294967294, %s4350_s21   ;;  %s4350_s21 = sphi %s4399_s21, %s6072_s21   ;;  %s4346_s20 = sphi %s4397_s20, %s6071_s20   ;;  %s4342_s19 = sphi %s4395_s19, %s6070_s19   ;;  %s4338_s18 = sphi %s4393_s18, %s6069_s18  }
   0x4   : > { %s4418_s24 = sadd.s32 1, %s4350_s21   ;;  %s135_s25 = sadd.s32 1, %s4346_s20 }
   0x5   : > { %s132_s26 = ssub.s32 %s4350_s21, %s4418_s24  ;;  %p145_p0 = scmp.ne.s32.totalorder %s4346_s20, %s4342_s19 }
   0x6   : > { %p133_p1 = scmp.eq.s32.totalorder %s132_s26, 0  ;;  %p146_p2 = scmp.eq.s32.totalorder %s4414_s22, 1 }
   0x7   : > { %p151_p3 = scmp.ne.s32.totalorder %s4342_s19, %s4338_s18  ;;  %p152_p4 = scmp.eq.s32.totalorder %s4065_s23, 1 }
   0x8   : > { %s4429_s27 = scalar_select %p133_p1, %s4346_s20, %s135_s25  }
   0x9   : > { %p4431_p5 = por %p146_p2, %p145_p0  ;;  %p4435_p6 = por %p152_p4, %p151_p3 }
   0xa   : > { %p4068_p7 = scmp.ge.s32.totalorder %s4350_s21, 1  ;;  %p190_p8 = scmp.lt.s32.totalorder %s4350_s21, 3 }
   0xc   : > { %p191_p9 = pnand %p4068_p7, %p190_p8 }
   0xe   : > { %194 = sbr.rel (%p191_p9) target bundleno = 937 (0x3a9), region = 40 }
  0x15   : > { %v264_v0 = vld [vmem:[%s6009_s1] sm:$0xf]  ;;  %p218_p10 = scmp.lt.s32.totalorder %s4414_s22, 1  ;;  %v4352_v1 = vmov 0   ;;  %v4079_v2 = vld [vmem:[%s6009_s1 + $0x4] sm:$0xf]  ;;  %v252_v48 = vlaneseq }
  0x16   : > { %4284 = vset.pattern.permute.xlu1 %v4352_v1  ;;  %4285 = vset.pattern.permute.xlu0 %v4352_v1  ;;  %s4353_s14 = smov 17   ;;  %v4081_v4 = vld [vmem:[%s6009_s1 + $0xc] sm:$0xf]  ;;  %v4080_v6 = vld [vmem:[%s6009_s1 + $0x8] sm:$0xf]  ;;  %s4354_s25 = smov 16  }
  0x17   : > { %267 = vperm.xlu1 %4284, %v264_v0   ;;  %s219_s7 = scalar_select %p218_p10, %s4414_s22, 1  ;;  %v4082_v7 = vld [vmem:[%s6009_s1 + $0x10] sm:$0xf]  ;;  %v4084_v8 = vld [vmem:[%s6009_s1 + $0x18] sm:$0xf]  ;;  %v4625_v51 = vshrl.u32 %v252_v48, 7 }
  0x18   : > { %v4083_v9 = vld [vmem:[%s6009_s1 + $0x14] sm:$0xf]  ;;  %v4085_v10 = vld [vmem:[%s6009_s1 + $0x1c] sm:$0xf]  ;;  %s6036_s12 = smov 15   ;;  %s4356_s8 = smov 1  }
  0x19   : > { %s4233_s10 = sshll.u32 %s219_s7, 3  ;;  %v4086_v11 = vld [vmem:[%s6009_s1 + $0x20] sm:$0xf]  ;;  %v4088_v12 = vld [vmem:[%s6009_s1 + $0x28] sm:$0xf]  ;;  %s6020_s17 = smov 127  }
  0x1a   : > { %s4452_s13 = scalar_lea.vmem %s6008_s0, %s4233_s10  ;;  %v4087_v13 = vld [vmem:[%s6009_s1 + $0x24] sm:$0xf]  ;;  %v4089_v14 = vld [vmem:[%s6009_s1 + $0x2c] sm:$0xf]  ;;  %v4090_v15 = vld [vmem:[%s6009_s1 + $0x30] sm:$0xf] }
  0x1b   : > { %286 = vperm.xlu1 %4284, %v4079_v2   ;;  %v4455_v3 = vld [vmem:[%s4452_s13] sm:$0xff]  ;;  %v4092_v16 = vld [vmem:[%s6009_s1 + $0x38] sm:$0xf]  ;;  %v4091_v17 = vld [vmem:[%s6009_s1 + $0x34] sm:$0xf]  ;;  %s6018_s15 = smov 113  }
  0x1c   : > { %244 = vrot.lane.b32.xlu0 %v4455_v3, %s4353_s14  ;;  %v4464_v5 = vcombine.high %v4455_v3, %v4455_v3  ;;  %v4094_v18 = vld [vmem:[%s6009_s1 + $0x40] sm:$0xf]  ;;  %v4093_v19 = vld [vmem:[%s6009_s1 + $0x3c] sm:$0xf]  ;;  %v4096_v20 = vld [vmem:[%s6009_s1 + $0x48] sm:$0xf] }
  0x1d   : > { %v4095_v21 = vld [vmem:[%s6009_s1 + $0x44] sm:$0xf]  ;;  %v4097_v22 = vld [vmem:[%s6009_s1 + $0x4c] sm:$0xf]  ;;  %v4098_v23 = vld [vmem:[%s6009_s1 + $0x50] sm:$0xf] }
  0x1e   : > { %v4100_v24 = vld [vmem:[%s6009_s1 + $0x58] sm:$0xf]  ;;  %v4099_v25 = vld [vmem:[%s6009_s1 + $0x54] sm:$0xf]  ;;  %v4101_v26 = vld [vmem:[%s6009_s1 + $0x5c] sm:$0xf] }
  0x1f   : > { %324 = vperm.xlu1 %4284, %v4081_v4   ;;  %v4102_v27 = vld [vmem:[%s6009_s1 + $0x60] sm:$0xf]  ;;  %v4104_v28 = vld [vmem:[%s6009_s1 + $0x68] sm:$0xf]  ;;  %v4103_v29 = vld [vmem:[%s6009_s1 + $0x64] sm:$0xf] }
  0x20   : > { %241 = vrot.lane.b32.xlu0 %v4464_v5, %s4353_s14  ;;  %v4105_v30 = vld [vmem:[%s6009_s1 + $0x6c] sm:$0xf]  ;;  %s6014_s11 = smov 112   ;;  %v4106_v31 = vld [vmem:[%s6009_s1 + $0x70] sm:$0xf]  ;;  %s6016_s16 = smov 111  }
  0x21   : > { %v4108_v32 = vld [vmem:[%s6009_s1 + $0x78] sm:$0xf]  ;;  %v4107_v33 = vld [vmem:[%s6009_s1 + $0x74] sm:$0xf]  ;;  %v4109_v34 = vld [vmem:[%s6009_s1 + $0x7c] sm:$0xf] }
  0x22   : > { %v4110_v35 = vld [vmem:[%s6009_s1 + $0x80] sm:$0xf]  ;;  %v4112_v36 = vld [vmem:[%s6009_s1 + $0x88] sm:$0xf]  ;;  %v4111_v37 = vld [vmem:[%s6009_s1 + $0x84] sm:$0xf] }
  0x23   : > { %339 = vrot.lane.b32.xlu1 %v4464_v5, %s4354_s25  ;;  %v1148_v38 = vld [vmem:[%s6011_s3] sm:$0xf]  ;;  %v4113_v39 = vld [vmem:[%s6009_s1 + $0x8c] sm:$0xf]  ;;  %v4114_v40 = vld [vmem:[%s6009_s1 + $0x90] sm:$0xf] }
  0x24   : > { %305 = vperm.xlu0 %4285, %v4080_v6   ;;  %v1156_v41 = vld [vmem:[%s6012_s4] sm:$0xf]  ;;  %v4116_v42 = vld [vmem:[%s6009_s1 + $0x98] sm:$0xf]  ;;  %v4115_v43 = vld [vmem:[%s6009_s1 + $0x94] sm:$0xf] }
  0x25   : > { %v4118_v44 = vld [vmem:[%s6009_s1 + $0xa0] sm:$0xf]  ;;  %v4117_v45 = vld [vmem:[%s6009_s1 + $0x9c] sm:$0xf]  ;;  %v4120_v46 = vld [vmem:[%s6009_s1 + $0xa8] sm:$0xf] }
  0x26   : > { %v4119_v47 = vld [vmem:[%s6009_s1 + $0xa4] sm:$0xf]  ;;  %v4122_v49 = vld [vmem:[%s6009_s1 + $0xb0] sm:$0xf]  ;;  %v4121_v52 = vld [vmem:[%s6009_s1 + $0xac] sm:$0xf] }
  0x27   : > { %366 = vperm.xlu1 %4284, %v4082_v7   ;;  %v4124_v53 = vld [vmem:[%s6009_s1 + $0xb8] sm:$0xf]  ;;  %v4634_v54 = vsub.s32 0, %v4625_v51  ;;  %v4637_v55 = vsub.s32 1, %v4625_v51  ;;  %v4123_v56 = vld [vmem:[%s6009_s1 + $0xb4] sm:$0xf] }
  0x28   : > { %342 = vrot.lane.b32.xlu0 %v4455_v3, %s4354_s25  ;;  %v223_v57 = vld [vmem:[%s6010_s2] sm:$0x3]  ;;  %vm246_vm0 = vcmask 138240   ;;  %v4125_v63 = vld [vmem:[%s6009_s1 + $0xbc] sm:$0xf]  ;;  %vm344_vm1 = vcmask 130048  }
  0x29   : > { %v4126_v60 = vld [vmem:[%s6009_s1 + $0xc0] sm:$0xf]  ;;  %v4649_v61 = vrot.slane %v223_v57, %v4634_v54  ;;  %v4652_v62 = vrot.slane %v223_v57, %v4637_v55  ;;  %v4128_v4 = vld [vmem:[%s6009_s1 + $0xc8] sm:$0xf]  ;;  %v4127_v7 = vld [vmem:[%s6009_s1 + $0xc4] sm:$0xf] }
  0x2a   : > { %vm443_vm2 = vcmask 121856   ;;  %vm542_vm3 = vcmask 7168   ;;  %vm756_vm4 = vcmask 1039360   ;;  %vm855_vm5 = vcmask 924672   ;;  %s6050_s30 = smov 112   ;;  %s6051_s23 = smov 111  }
  0x2b   : > { %404 = vperm.xlu1 %4284, %v4084_v8   ;;  %vm954_vm6 = vcmask 916480   ;;  %vm1053_vm7 = vcmask 908288  }
  0x2c   : > { %385 = vperm.xlu0 %4285, %v4083_v9   ;;  %v4668_v9 = vsub.s32 2, %v4625_v51 }
  0x2f   : > { %438 = vrot.lane.b32.xlu1 %v4464_v5, %s6036_s12 }
  0x30   : > { %423 = vperm.xlu0 %4285, %v4085_v10  }
  0x33   : > { %465 = vperm.xlu1 %4284, %v4086_v11  }
  0x34   : > { %441 = vrot.lane.b32.xlu0 %v4455_v3, %s6036_s12 }
  0x37   : > { %503 = vperm.xlu1 %4284, %v4088_v12  }
  0x38   : > { %484 = vperm.xlu0 %4285, %v4087_v13  }
  0x3b   : > { %537 = vrot.lane.b32.xlu1 %v4464_v5, %s4356_s8 }
  0x3c   : > { %522 = vperm.xlu0 %4285, %v4089_v14   ;;  %v4129_v14 = vld [vmem:[%s6009_s1 + $0xcc] sm:$0xf] }
  0x3f   : > { %564 = vperm.xlu1 %4284, %v4090_v15   ;;  %v4072_v15 = vld [vmem:[%s6010_s2 + $0x2] sm:$0x3] }
  0x40   : > { %540 = vrot.lane.b32.xlu0 %v4455_v3, %s4356_s8 }
  0x43   : > { %602 = vperm.xlu1 %4284, %v4092_v16  }
  0x44   : > { %583 = vperm.xlu0 %4285, %v4091_v17  }
  0x47   : > { %640 = vperm.xlu1 %4284, %v4094_v18  }
  0x48   : > { %621 = vperm.xlu0 %4285, %v4093_v19  }
  0x4b   : > { %698 = vperm.xlu1 %4284, %v4096_v20  }
  0x4c   : > { %669 = vperm.xlu0 %4285, %v4095_v21  }
  0x4f   : > { %752 = vrot.lane.b32.xlu1 %v4455_v3, %s6020_s17 }
  0x50   : > { %727 = vperm.xlu0 %4285, %v4097_v22   ;;  %v4683_v22 = vsub.s32 3, %v4625_v51 }
  0x53   : > { %779 = vperm.xlu1 %4284, %v4098_v23   ;;  %v4686_v23 = vrot.slane %v4072_v15, %v4634_v54 }
  0x54   : > { %754 = vrot.lane.b32.xlu0 %v4464_v5, %s6020_s17 }
  0x55   : > { %6041 = vst [vmem:[#allocation5_spill] sm:$0xff] %v4686_v23 }
  0x57   : > { %817 = vperm.xlu1 %4284, %v4100_v24   ;;  %v4689_v24 = vrot.slane %v4072_v15, %v4637_v55 }
  0x58   : > { %798 = vperm.xlu0 %4285, %v4099_v25  }
  0x59   : > { %6042 = vst [vmem:[#allocation6_spill] sm:$0xff] %v4689_v24 }
  0x5b   : > { %851 = vrot.lane.b32.xlu1 %v4455_v3, %s6018_s15 }
  0x5c   : > { %836 = vperm.xlu0 %4285, %v4101_v26  }
  0x5f   : > { %878 = vperm.xlu1 %4284, %v4102_v27  }
  0x60   : > { %853 = vrot.lane.b32.xlu0 %v4464_v5, %s6018_s15  ;;  %s6055_s15 = smov 127  }
  0x63   : > { %916 = vperm.xlu1 %4284, %v4104_v28  }
  0x64   : > { %897 = vperm.xlu0 %4285, %v4103_v29  }
  0x67   : > { %950 = vrot.lane.b32.xlu1 %v4455_v3, %s6014_s11 }
  0x68   : > { %935 = vperm.xlu0 %4285, %v4105_v30  }
  0x6b   : > { %977 = vperm.xlu1 %4284, %v4106_v31  }
  0x6c   : > { %952 = vrot.lane.b32.xlu0 %v4464_v5, %s6014_s11  ;;  %s6049_s11 = smov 113  }
  0x6f   : > { %1015 = vperm.xlu1 %4284, %v4108_v32  }
  0x70   : > { %996 = vperm.xlu0 %4285, %v4107_v33  }
  0x73   : > { %1049 = vrot.lane.b32.xlu1 %v4455_v3, %s6016_s16 }
  0x74   : > { %1034 = vperm.xlu0 %4285, %v4109_v34  }
  0x77   : > { %1076 = vperm.xlu1 %4284, %v4110_v35  }
  0x78   : > { %1051 = vrot.lane.b32.xlu0 %v4464_v5, %s6016_s16  ;;  %s4234_s16 = sshll.u32 %s4414_s22, 7  ;;  %s4362_s22 = smov [#allocation2]  }
  0x79   : > { %s5966_s6 = scalar_lea.hbm %s6013_s5, %s4234_s16 }
  0x7b   : > { %1114 = vperm.xlu1 %4284, %v4112_v36  }
  0x7c   : > { %1095 = vperm.xlu0 %4285, %v4111_v37  }
  0x7f   : > { %1151 = vperm.xlu1 %4284, %v1148_v38  }
  0x80   : > { %1133 = vperm.xlu0 %4285, %v4113_v39  }
  0x83   : > { %1184 = vperm.xlu1 %4284, %v4114_v40  }
  0x84   : > { %1159 = vperm.xlu0 %4285, %v1156_v41  }
  0x87   : > { %1228 = vperm.xlu1 %4284, %v4116_v42  }
  0x88   : > { %1206 = vperm.xlu0 %4285, %v4115_v43  }
  0x8b   : > { %1283 = vperm.xlu1 %4284, %v4118_v44  }
  0x8c   : > { %1250 = vperm.xlu0 %4285, %v4117_v45  }
  0x8e   : > { %v245_v50 = vpop.permute.xlu0 %244 }
  0x8f   : > { %1327 = vperm.xlu1 %4284, %v4120_v46  }
  0x90   : > { %1305 = vperm.xlu0 %4285, %v4119_v47  }
  0x92   : > { %v242_v59 = vpop.permute.xlu0 %241 }
  0x93   : > { %1382 = vperm.xlu1 %4284, %v4122_v49   ;;  %v247_v0 = vsel %vm246_vm0, %v245_v50, %v242_v59  ;;  %v250_v1 = vsel %vm246_vm0, %v242_v59, %v245_v50  ;;  %v4073_v59 = vld [vmem:[%s6010_s2 + $0x4] sm:$0x3] }
  0x94   : > { %1349 = vperm.xlu0 %4285, %v4121_v52   ;;  %v262_v5 = vmul.f32 %v4649_v61, %v250_v1  ;;  %v263_v6 = vmul.f32 %v4652_v62, %v247_v0 }
  0x96   : > { %v268_v58 = vpop.permute.xlu1 %267  ;;  %v273_v10 = vrot.slane %v262_v5, %v4634_v54  ;;  %v277_v11 = vrot.slane %v263_v6, %v4634_v54  ;;  %v292_v12 = vrot.slane %v262_v5, %v4637_v55  ;;  %v296_v13 = vrot.slane %v263_v6, %v4637_v55 }
  0x97   : > { %1426 = vperm.xlu1 %4284, %v4124_v53   ;;  %v311_v19 = vrot.slane %v262_v5, %v4668_v9  ;;  %v315_v20 = vrot.slane %v263_v6, %v4668_v9  ;;  %v330_v33 = vrot.slane %v262_v5, %v4683_v22  ;;  %v334_v34 = vrot.slane %v263_v6, %v4683_v22 }
  0x98   : > { %1404 = vperm.xlu0 %4285, %v4123_v56   ;;  %v278_v25 = vmul.f32 %v273_v10, %v268_v58  ;;  %v279_v26 = vmul.f32 %v277_v11, %v268_v58  ;;  %v4707_v6 = vrot.slane %v4073_v59, %v4634_v54 }
  0x9a   : > { %v287_v2 = vpop.permute.xlu1 %286 }
  0x9b   : > { %1481 = vperm.xlu1 %4284, %v4126_v60   ;;  %v297_v17 = vmul.f32 %v292_v12, %v287_v2  ;;  %v298_v18 = vmul.f32 %v296_v13, %v287_v2 }
  0x9c   : > { %1448 = vperm.xlu0 %4285, %v4125_v63  }
  0x9d   : > { %v299_v30 = vadd.f32 %v297_v17, %v278_v25  ;;  %v300_v31 = vadd.f32 %v298_v18, %v279_v26 }
  0x9e   : > { %v325_v8 = vpop.permute.xlu1 %324 }
  0x9f   : > { %1525 = vperm.xlu1 %4284, %v4128_v4   ;;  %v335_v42 = vmul.f32 %v330_v33, %v325_v8  ;;  %v336_v43 = vmul.f32 %v334_v34, %v325_v8 }
  0xa0   : > { %1503 = vperm.xlu0 %4285, %v4127_v7   ;;  %v4710_v7 = vrot.slane %v4073_v59, %v4637_v55 }
  0xa2   : > { %v340_v16 = vpop.permute.xlu1 %339 }
  0xa3   : > { %v306_v21 = vpop.permute.xlu0 %305 }
  0xa4   : > { %1547 = vperm.xlu0 %4285, %v4129_v14   ;;  %v316_v27 = vmul.f32 %v311_v19, %v306_v21  ;;  %v317_v28 = vmul.f32 %v315_v20, %v306_v21 }
  0xa6   : > { %v367_v29 = vpop.permute.xlu1 %366  ;;  %v318_v37 = vadd.f32 %v316_v27, %v299_v30  ;;  %v319_v38 = vadd.f32 %v317_v28, %v300_v31 }
  0xa7   : > { %v343_v32 = vpop.permute.xlu0 %342 }
  0xa8   : > { %v345_v35 = vsel %vm344_vm1, %v343_v32, %v340_v16  ;;  %v348_v36 = vsel %vm344_vm1, %v340_v16, %v343_v32  ;;  %v337_v49 = vadd.f32 %v335_v42, %v318_v37  ;;  %v338_v50 = vadd.f32 %v336_v43, %v319_v38 }
  0xa9   : > { %v360_v39 = vmul.f32 %v4686_v23, %v348_v36  ;;  %v361_v40 = vmul.f32 %v4689_v24, %v345_v35 }
  0xaa   : > { %v405_v41 = vpop.permute.xlu1 %404 }
  0xab   : > { %v372_v44 = vrot.slane %v360_v39, %v4634_v54  ;;  %v376_v45 = vrot.slane %v361_v40, %v4634_v54  ;;  %v386_v46 = vpop.permute.xlu0 %385  ;;  %v391_v47 = vrot.slane %v360_v39, %v4637_v55  ;;  %v395_v48 = vrot.slane %v361_v40, %v4637_v55 }
  0xac   : > { %v410_v56 = vrot.slane %v360_v39, %v4668_v9  ;;  %v414_v57 = vrot.slane %v361_v40, %v4668_v9  ;;  %v429_v13 = vrot.slane %v360_v39, %v4683_v22  ;;  %v433_v14 = vrot.slane %v361_v40, %v4683_v22  ;;  %v4074_v39 = vld [vmem:[%s6010_s2 + $0x6] sm:$0x3] }
  0xad   : > { %v377_v52 = vmul.f32 %v372_v44, %v367_v29  ;;  %v378_v53 = vmul.f32 %v376_v45, %v367_v29  ;;  %v396_v0 = vmul.f32 %v391_v47, %v386_v46  ;;  %v397_v1 = vmul.f32 %v395_v48, %v386_v46 }
  0xae   : > { %v439_v58 = vpop.permute.xlu1 %438  ;;  %v415_v10 = vmul.f32 %v410_v56, %v405_v41  ;;  %v416_v11 = vmul.f32 %v414_v57, %v405_v41  ;;  %v4728_v47 = vrot.slane %v4074_v39, %v4634_v54  ;;  %v4731_v48 = vrot.slane %v4074_v39, %v4637_v55 }
  0xaf   : > { %v379_v60 = vadd.f32 %v377_v52, %v337_v49  ;;  %v380_v63 = vadd.f32 %v378_v53, %v338_v50  ;;  %v424_v2 = vpop.permute.xlu0 %423 }
  0xb0   : > { %v434_v25 = vmul.f32 %v429_v13, %v424_v2  ;;  %v435_v26 = vmul.f32 %v433_v14, %v424_v2  ;;  %6043 = vst [vmem:[#allocation7_spill] sm:$0xff] %v4731_v48 }
  0xb1   : > { %v398_v4 = vadd.f32 %v396_v0, %v379_v60  ;;  %v399_v5 = vadd.f32 %v397_v1, %v380_v63 }
  0xb2   : > { %v466_v8 = vpop.permute.xlu1 %465 }
  0xb3   : > { %v442_v12 = vpop.permute.xlu0 %441  ;;  %v417_v17 = vadd.f32 %v415_v10, %v398_v4  ;;  %v418_v18 = vadd.f32 %v416_v11, %v399_v5  ;;  %v646_v10 = vrot.slane %v4455_v3, %v4634_v54  ;;  %v4745_v11 = vsub.s32 5, %v4625_v51 }
  0xb4   : > { %v444_v15 = vsel %vm443_vm2, %v442_v12, %v439_v58  ;;  %v447_v16 = vsel %vm443_vm2, %v439_v58, %v442_v12  ;;  %v4736_v58 = vsub.s32 4, %v4625_v51 }
  0xb5   : > { %v459_v19 = vmul.f32 %v4707_v6, %v447_v16  ;;  %v460_v20 = vmul.f32 %v4710_v7, %v444_v15  ;;  %v436_v32 = vadd.f32 %v434_v25, %v417_v17  ;;  %v437_v33 = vadd.f32 %v435_v26, %v418_v18  ;;  %6045 = vst [vmem:[#allocation9_spill] sm:$0xff] %v4745_v11 }
  0xb6   : > { %v504_v21 = vpop.permute.xlu1 %503  ;;  %6044 = vst [vmem:[#allocation8_spill] sm:$0xff] %v4736_v58  ;;  %v650_v15 = vrot.slane %v4455_v3, %v4736_v58 }
  0xb7   : > { %v471_v27 = vrot.slane %v459_v19, %v4634_v54  ;;  %v475_v28 = vrot.slane %v460_v20, %v4634_v54  ;;  %v485_v29 = vpop.permute.xlu0 %484  ;;  %v490_v30 = vrot.slane %v459_v19, %v4637_v55  ;;  %v494_v31 = vrot.slane %v460_v20, %v4637_v55 }
  0xb8   : > { %v509_v36 = vrot.slane %v459_v19, %v4668_v9  ;;  %v513_v37 = vrot.slane %v460_v20, %v4668_v9  ;;  %v528_v53 = vrot.slane %v459_v19, %v4683_v22  ;;  %v532_v56 = vrot.slane %v460_v20, %v4683_v22 }
  0xb9   : > { %v476_v34 = vmul.f32 %v471_v27, %v466_v8  ;;  %v477_v35 = vmul.f32 %v475_v28, %v466_v8  ;;  %v495_v42 = vmul.f32 %v490_v30, %v485_v29  ;;  %v496_v43 = vmul.f32 %v494_v31, %v485_v29 }
  0xba   : > { %v538_v38 = vpop.permute.xlu1 %537  ;;  %v514_v49 = vmul.f32 %v509_v36, %v504_v21  ;;  %v515_v50 = vmul.f32 %v513_v37, %v504_v21  ;;  %v656_v27 = vrot.slane %v646_v10, %v4634_v54  ;;  %v4757_v29 = vsub.s32 6, %v4625_v51 }
  0xbb   : > { %v478_v40 = vadd.f32 %v476_v34, %v436_v32  ;;  %v479_v41 = vadd.f32 %v477_v35, %v437_v33  ;;  %v523_v44 = vpop.permute.xlu0 %522  ;;  %v675_v30 = vrot.slane %v4455_v3, %v4637_v55  ;;  %v679_v31 = vrot.slane %v4455_v3, %v4745_v11 }
  0xbc   : > { %v533_v4 = vmul.f32 %v528_v53, %v523_v44  ;;  %v534_v5 = vmul.f32 %v532_v56, %v523_v44  ;;  %6046 = vst [vmem:[#allocation10_spill] sm:$0xff] %v4757_v29  ;;  %v660_v37 = vrot.slane %v650_v15, %v4634_v54  ;;  %v733_v10 = vrot.slane %v4455_v3, %v4683_v22 }
  0xbd   : > { %v497_v45 = vadd.f32 %v495_v42, %v478_v40  ;;  %v498_v46 = vadd.f32 %v496_v43, %v479_v41  ;;  %v704_v40 = vrot.slane %v4455_v3, %v4668_v9 }
  0xbe   : > { %v565_v52 = vpop.permute.xlu1 %564 }
  0xbf   : > { %v541_v57 = vpop.permute.xlu0 %540  ;;  %v516_v59 = vadd.f32 %v514_v49, %v497_v45  ;;  %v517_v60 = vadd.f32 %v515_v50, %v498_v46  ;;  %v708_v45 = vrot.slane %v4455_v3, %v4757_v29  ;;  %v685_v49 = vrot.slane %v675_v30, %v4637_v55 }
  0xc0   : > { %v543_v63 = vsel %vm542_vm3, %v541_v57, %v538_v38  ;;  %v546_v0 = vsel %vm542_vm3, %v538_v38, %v541_v57  ;;  %v689_v50 = vrot.slane %v679_v31, %v4637_v55 }
  0xc1   : > { %v558_v1 = vmul.f32 %v4728_v47, %v546_v0  ;;  %v559_v2 = vmul.f32 %v4731_v48, %v543_v63  ;;  %v535_v16 = vadd.f32 %v533_v4, %v516_v59  ;;  %v536_v17 = vadd.f32 %v534_v5, %v517_v60 }
  0xc2   : > { %v603_v8 = vpop.permute.xlu1 %602  ;;  %v714_v4 = vrot.slane %v704_v40, %v4668_v9  ;;  %v718_v5 = vrot.slane %v708_v45, %v4668_v9 }
  0xc3   : > { %v570_v12 = vrot.slane %v558_v1, %v4634_v54  ;;  %v574_v13 = vrot.slane %v559_v2, %v4634_v54  ;;  %v584_v14 = vpop.permute.xlu0 %583  ;;  %v589_v18 = vrot.slane %v558_v1, %v4637_v55  ;;  %v593_v19 = vrot.slane %v559_v2, %v4637_v55 }
  0xc4   : > { %v608_v20 = vrot.slane %v558_v1, %v4668_v9  ;;  %v612_v21 = vrot.slane %v559_v2, %v4668_v9  ;;  %v627_v38 = vrot.slane %v558_v1, %v4683_v22  ;;  %v631_v39 = vrot.slane %v559_v2, %v4683_v22 }
  0xc5   : > { %v575_v25 = vmul.f32 %v570_v12, %v565_v52  ;;  %v576_v26 = vmul.f32 %v574_v13, %v565_v52  ;;  %v594_v34 = vmul.f32 %v589_v18, %v584_v14  ;;  %v595_v35 = vmul.f32 %v593_v19, %v584_v14  ;;  %v4075_v13 = vld [vmem:[%s6010_s2 + $0xa] sm:$0x3] }
  0xc6   : > { %v641_v28 = vpop.permute.xlu1 %640  ;;  %v613_v41 = vmul.f32 %v608_v20, %v603_v8  ;;  %v614_v42 = vmul.f32 %v612_v21, %v603_v8  ;;  %v4773_v52 = vsub.s32 7, %v4625_v51  ;;  %v4785_v21 = vrot.slane %v4075_v13, %v4634_v54 }
  0xc7   : > { %v577_v32 = vadd.f32 %v575_v25, %v535_v16  ;;  %v578_v33 = vadd.f32 %v576_v26, %v536_v17  ;;  %v622_v36 = vpop.permute.xlu0 %621  ;;  %v661_v63 = vmul.f32 %v656_v27, %v641_v28  ;;  %v662_v0 = vmul.f32 %v660_v37, %v641_v28 }
  0xc8   : > { %6047 = vst [vmem:[#allocation11_spill] sm:$0xff] %v4773_v52  ;;  %v632_v57 = vmul.f32 %v627_v38, %v622_v36  ;;  %v633_v59 = vmul.f32 %v631_v39, %v622_v36  ;;  %v737_v12 = vrot.slane %v4455_v3, %v4773_v52  ;;  %v4788_v25 = vrot.slane %v4075_v13, %v4637_v55 }
  0xc9   : > { %v596_v43 = vadd.f32 %v594_v34, %v577_v32  ;;  %v597_v44 = vadd.f32 %v595_v35, %v578_v33  ;;  %v743_v28 = vrot.slane %v733_v10, %v4683_v22 }
  0xca   : > { %v699_v46 = vpop.permute.xlu1 %698  ;;  %v747_v30 = vrot.slane %v737_v12, %v4683_v22 }
  0xcb   : > { %v615_v53 = vadd.f32 %v613_v41, %v596_v43  ;;  %v616_v56 = vadd.f32 %v614_v42, %v597_v44  ;;  %v670_v60 = vpop.permute.xlu0 %669  ;;  %v719_v3 = vmul.f32 %v714_v4, %v699_v46  ;;  %v720_v27 = vmul.f32 %v718_v5, %v699_v46 }
  0xcc   : > { %v690_v16 = vmul.f32 %v685_v49, %v670_v60  ;;  %v691_v17 = vmul.f32 %v689_v50, %v670_v60  ;;  %v4076_v60 = vld [vmem:[%s6010_s2 + $0xc] sm:$0x3] }
  0xcd   : > { %v634_v1 = vadd.f32 %v632_v57, %v615_v53  ;;  %v635_v2 = vadd.f32 %v633_v59, %v616_v56  ;;  %v4806_v10 = vrot.slane %v4076_v60, %v4634_v54  ;;  %v4809_v12 = vrot.slane %v4076_v60, %v4637_v55 }
  0xce   : > { %v753_v8 = vpop.permute.xlu1 %752 }
  0xcf   : > { %v663_v14 = vadd.f32 %v661_v63, %v634_v1  ;;  %v664_v15 = vadd.f32 %v662_v0, %v635_v2  ;;  %v728_v18 = vpop.permute.xlu0 %727 }
  0xd0   : > { %v748_v39 = vmul.f32 %v743_v28, %v728_v18  ;;  %v749_v40 = vmul.f32 %v747_v30, %v728_v18 }
  0xd1   : > { %v692_v19 = vadd.f32 %v690_v16, %v663_v14  ;;  %v693_v20 = vadd.f32 %v691_v17, %v664_v15 }
  0xd2   : > { %v780_v26 = vpop.permute.xlu1 %779 }
  0xd3   : > { %v755_v31 = vpop.permute.xlu0 %754  ;;  %v721_v34 = vadd.f32 %v719_v3, %v692_v19  ;;  %v722_v35 = vadd.f32 %v720_v27, %v693_v20 }
  0xd4   : > { %v757_v32 = vsel %vm756_vm4, %v753_v8, %v755_v31  ;;  %v761_v33 = vsel %vm756_vm4, %v755_v31, %v753_v8 }
  0xd5   : > { %v773_v36 = vmul.f32 %v4785_v21, %v757_v32  ;;  %v774_v37 = vmul.f32 %v4788_v25, %v761_v33  ;;  %v750_v46 = vadd.f32 %v748_v39, %v721_v34  ;;  %v751_v49 = vadd.f32 %v749_v40, %v722_v35 }
  0xd6   : > { %v818_v38 = vpop.permute.xlu1 %817 }
  0xd7   : > { %v785_v41 = vrot.slane %v773_v36, %v4634_v54  ;;  %v789_v42 = vrot.slane %v774_v37, %v4634_v54  ;;  %v799_v43 = vpop.permute.xlu0 %798  ;;  %v804_v44 = vrot.slane %v773_v36, %v4637_v55  ;;  %v808_v45 = vrot.slane %v774_v37, %v4637_v55 }
  0xd8   : > { %v823_v56 = vrot.slane %v773_v36, %v4668_v9  ;;  %v827_v57 = vrot.slane %v774_v37, %v4668_v9  ;;  %v842_v17 = vrot.slane %v773_v36, %v4683_v22  ;;  %v846_v18 = vrot.slane %v774_v37, %v4683_v22 }
  0xd9   : > { %v790_v50 = vmul.f32 %v785_v41, %v780_v26  ;;  %v791_v53 = vmul.f32 %v789_v42, %v780_v26  ;;  %v809_v1 = vmul.f32 %v804_v44, %v799_v43  ;;  %v810_v2 = vmul.f32 %v808_v45, %v799_v43  ;;  %v4077_v45 = vld [vmem:[%s6010_s2 + $0xe] sm:$0x3] }
  0xda   : > { %v852_v59 = vpop.permute.xlu1 %851  ;;  %v828_v14 = vmul.f32 %v823_v56, %v818_v38  ;;  %v829_v15 = vmul.f32 %v827_v57, %v818_v38  ;;  %v4827_v60 = vrot.slane %v4077_v45, %v4634_v54 }
  0xdb   : > { %v792_v63 = vadd.f32 %v790_v50, %v750_v46  ;;  %v793_v0 = vadd.f32 %v791_v53, %v751_v49  ;;  %v837_v4 = vpop.permute.xlu0 %836 }
  0xdc   : > { %v847_v31 = vmul.f32 %v842_v17, %v837_v4  ;;  %v848_v32 = vmul.f32 %v846_v18, %v837_v4 }
  0xdd   : > { %v811_v5 = vadd.f32 %v809_v1, %v792_v63  ;;  %v812_v8 = vadd.f32 %v810_v2, %v793_v0  ;;  %v4830_v63 = vrot.slane %v4077_v45, %v4637_v55 }
  0xde   : > { %v879_v13 = vpop.permute.xlu1 %878 }
  0xdf   : > { %v854_v16 = vpop.permute.xlu0 %853  ;;  %v830_v26 = vadd.f32 %v828_v14, %v811_v5  ;;  %v831_v3 = vadd.f32 %v829_v15, %v812_v8 }
  0xe0   : > { %v856_v19 = vsel %vm855_vm5, %v852_v59, %v854_v16  ;;  %v860_v20 = vsel %vm855_vm5, %v854_v16, %v852_v59 }
  0xe1   : > { %v872_v27 = vmul.f32 %v4806_v10, %v856_v19  ;;  %v873_v28 = vmul.f32 %v4809_v12, %v860_v20  ;;  %v849_v38 = vadd.f32 %v847_v31, %v830_v26  ;;  %v850_v39 = vadd.f32 %v848_v32, %v831_v3 }
  0xe2   : > { %v917_v30 = vpop.permute.xlu1 %916 }
  0xe3   : > { %v884_v33 = vrot.slane %v872_v27, %v4634_v54  ;;  %v888_v34 = vrot.slane %v873_v28, %v4634_v54  ;;  %v898_v35 = vpop.permute.xlu0 %897  ;;  %v903_v36 = vrot.slane %v872_v27, %v4637_v55  ;;  %v907_v37 = vrot.slane %v873_v28, %v4637_v55 }
  0xe4   : > { %v922_v42 = vrot.slane %v872_v27, %v4668_v9  ;;  %v926_v43 = vrot.slane %v873_v28, %v4668_v9  ;;  %v941_v5 = vrot.slane %v872_v27, %v4683_v22  ;;  %v945_v8 = vrot.slane %v873_v28, %v4683_v22 }
  0xe5   : > { %v889_v40 = vmul.f32 %v884_v33, %v879_v13  ;;  %v890_v41 = vmul.f32 %v888_v34, %v879_v13  ;;  %v908_v50 = vmul.f32 %v903_v36, %v898_v35  ;;  %v909_v53 = vmul.f32 %v907_v37, %v898_v35 }
  0xe6   : > { %v951_v44 = vpop.permute.xlu1 %950  ;;  %v927_v1 = vmul.f32 %v922_v42, %v917_v30  ;;  %v928_v2 = vmul.f32 %v926_v43, %v917_v30 }
  0xe7   : > { %v891_v46 = vadd.f32 %v889_v40, %v849_v38  ;;  %v892_v49 = vadd.f32 %v890_v41, %v850_v39  ;;  %v936_v56 = vpop.permute.xlu0 %935  ;;  %v4078_v38 = vld [vmem:[%s6010_s2 + $0x10] sm:$0x3] }
  0xe8   : > { %v946_v20 = vmul.f32 %v941_v5, %v936_v56  ;;  %v947_v26 = vmul.f32 %v945_v8, %v936_v56 }
  0xe9   : > { %v910_v57 = vadd.f32 %v908_v50, %v891_v46  ;;  %v911_v59 = vadd.f32 %v909_v53, %v892_v49  ;;  %v4848_v49 = vrot.slane %v4078_v38, %v4634_v54  ;;  %v4851_v50 = vrot.slane %v4078_v38, %v4637_v55 }
  0xea   : > { %v978_v0 = vpop.permute.xlu1 %977 }
  0xeb   : > { %v953_v4 = vpop.permute.xlu0 %952  ;;  %v929_v15 = vadd.f32 %v927_v1, %v910_v57  ;;  %v930_v16 = vadd.f32 %v928_v2, %v911_v59 }
  0xec   : > { %v955_v13 = vsel %vm954_vm6, %v951_v44, %v953_v4  ;;  %v959_v14 = vsel %vm954_vm6, %v953_v4, %v951_v44 }
  0xed   : > { %v971_v17 = vmul.f32 %v4827_v60, %v955_v13  ;;  %v972_v18 = vmul.f32 %v4830_v63, %v959_v14  ;;  %v948_v32 = vadd.f32 %v946_v20, %v929_v15  ;;  %v949_v33 = vadd.f32 %v947_v26, %v930_v16 }
  0xee   : > { %v1016_v19 = vpop.permute.xlu1 %1015 }
  0xef   : > { %v983_v3 = vrot.slane %v971_v17, %v4634_v54  ;;  %v987_v30 = vrot.slane %v972_v18, %v4634_v54  ;;  %v997_v27 = vpop.permute.xlu0 %996  ;;  %v1002_v28 = vrot.slane %v971_v17, %v4637_v55  ;;  %v1006_v31 = vrot.slane %v972_v18, %v4637_v55 }
  0xf0   : > { %v1021_v36 = vrot.slane %v971_v17, %v4668_v9  ;;  %v1025_v37 = vrot.slane %v972_v18, %v4668_v9  ;;  %v1040_v57 = vrot.slane %v971_v17, %v4683_v22  ;;  %v1044_v59 = vrot.slane %v972_v18, %v4683_v22 }
  0xf1   : > { %v988_v34 = vmul.f32 %v983_v3, %v978_v0  ;;  %v989_v35 = vmul.f32 %v987_v30, %v978_v0  ;;  %v1007_v41 = vmul.f32 %v1002_v28, %v997_v27  ;;  %v1008_v42 = vmul.f32 %v1006_v31, %v997_v27 }
  0xf2   : > { %v1050_v44 = vpop.permute.xlu1 %1049  ;;  %v1026_v53 = vmul.f32 %v1021_v36, %v1016_v19  ;;  %v1027_v56 = vmul.f32 %v1025_v37, %v1016_v19 }
  0xf3   : > { %v990_v39 = vadd.f32 %v988_v34, %v948_v32  ;;  %v991_v40 = vadd.f32 %v989_v35, %v949_v33  ;;  %v1035_v43 = vpop.permute.xlu0 %1034 }
  0xf4   : > { %v1045_v14 = vmul.f32 %v1040_v57, %v1035_v43  ;;  %v1046_v15 = vmul.f32 %v1044_v59, %v1035_v43 }
  0xf5   : > { %v1009_v45 = vadd.f32 %v1007_v41, %v990_v39  ;;  %v1010_v46 = vadd.f32 %v1008_v42, %v991_v40 }
  0xf6   : > { %v1077_v16 = vpop.permute.xlu1 %1076 }
  0xf7   : > { %v1052_v0 = vpop.permute.xlu0 %1051  ;;  %v1028_v1 = vadd.f32 %v1026_v53, %v1009_v45  ;;  %v1029_v2 = vadd.f32 %v1027_v56, %v1010_v46 }
  0xf8   : > { %v1054_v4 = vsel %vm1053_vm7, %v1050_v44, %v1052_v0  ;;  %v1058_v5 = vsel %vm1053_vm7, %v1052_v0, %v1050_v44 }
  0xf9   : > { %v1070_v8 = vmul.f32 %v4848_v49, %v1054_v4  ;;  %v1071_v13 = vmul.f32 %v4851_v50, %v1058_v5  ;;  %v1047_v18 = vadd.f32 %v1045_v14, %v1028_v1  ;;  %v1048_v26 = vadd.f32 %v1046_v15, %v1029_v2  ;;  %v4130_v15 = vld [vmem:[%s6009_s1 + $0xd0] sm:$0xf] }
  0xfa   : > { %v1115_v37 = vpop.permute.xlu1 %1114 }
  0xfb   : > { %v1082_v19 = vrot.slane %v1070_v8, %v4634_v54  ;;  %v1086_v17 = vrot.slane %v1071_v13, %v4634_v54  ;;  %v1096_v20 = vpop.permute.xlu0 %1095  ;;  %v1101_v3 = vrot.slane %v1070_v8, %v4637_v55  ;;  %v1105_v30 = vrot.slane %v1071_v13, %v4637_v55 }
  0xfc   : > { %v1120_v27 = vrot.slane %v1070_v8, %v4668_v9  ;;  %v1124_v28 = vrot.slane %v1071_v13, %v4668_v9  ;;  %v1139_v38 = vrot.slane %v1070_v8, %v4683_v22  ;;  %v1143_v39 = vrot.slane %v1071_v13, %v4683_v22 }
  0xfd   : > { %v1087_v31 = vmul.f32 %v1082_v19, %v1077_v16  ;;  %v1088_v32 = vmul.f32 %v1086_v17, %v1077_v16  ;;  %v1106_v35 = vmul.f32 %v1101_v3, %v1096_v20  ;;  %v1107_v36 = vmul.f32 %v1105_v30, %v1096_v20  ;;  %v4131_v16 = vld [vmem:[%s6009_s1 + $0xd4] sm:$0xf]  ;;  %v4132_v17 = vld [vmem:[%s6009_s1 + $0xd8] sm:$0xf]  ;;  %v4133_v20 = vld [vmem:[%s6009_s1 + $0xdc] sm:$0xf] }
  0xfe   : > { %v1125_v41 = vmul.f32 %v1120_v27, %v1115_v37  ;;  %v1126_v42 = vmul.f32 %v1124_v28, %v1115_v37  ;;  %v1152_v0 = vpop.permute.xlu1 %1151  ;;  %v4136_v3 = vld [vmem:[%s6009_s1 + $0xe8] sm:$0xf]  ;;  %v4137_v30 = vld [vmem:[%s6009_s1 + $0xec] sm:$0xf]  ;;  %v4138_v27 = vld [vmem:[%s6009_s1 + $0xf0] sm:$0xf] }
  0xff   : > { %v1089_v33 = vadd.f32 %v1087_v31, %v1047_v18  ;;  %v1090_v34 = vadd.f32 %v1088_v32, %v1048_v26  ;;  %v1134_v40 = vpop.permute.xlu0 %1133  ;;  %v4134_v18 = vld [vmem:[%s6009_s1 + $0xe0] sm:$0xf]  ;;  %v4135_v26 = vld [vmem:[%s6009_s1 + $0xe4] sm:$0xf]  ;;  %v4139_v28 = vld [vmem:[%s6009_s1 + $0xf4] sm:$0xf] }
 0x100   : > { %v1144_v53 = vmul.f32 %v1139_v38, %v1134_v40  ;;  %v1145_v56 = vmul.f32 %v1143_v39, %v1134_v40  ;;  %v4140_v31 = vld [vmem:[%s6009_s1 + $0xf8] sm:$0xf]  ;;  %v4141_v32 = vld [vmem:[%s6009_s1 + $0xfc] sm:$0xf]  ;;  %v4146_v37 = vld [vmem:[%s6009_s1 + $0x110] sm:$0xf] }
 0x101   : > { %v1108_v43 = vadd.f32 %v1106_v35, %v1089_v33  ;;  %v1109_v44 = vadd.f32 %v1107_v36, %v1090_v34  ;;  %v4142_v33 = vld [vmem:[%s6009_s1 + $0x100] sm:$0xf]  ;;  %v4143_v34 = vld [vmem:[%s6009_s1 + $0x104] sm:$0xf]  ;;  %v4144_v35 = vld [vmem:[%s6009_s1 + $0x108] sm:$0xf] }
 0x102   : > { %v4145_v36 = vld [vmem:[%s6009_s1 + $0x10c] sm:$0xf]  ;;  %v4147_v38 = vld [vmem:[%s6009_s1 + $0x114] sm:$0xf]  ;;  %v4148_v39 = vld [vmem:[%s6009_s1 + $0x118] sm:$0xf] }
 0x103   : > { %v1127_v45 = vadd.f32 %v1125_v41, %v1108_v43  ;;  %v1128_v46 = vadd.f32 %v1126_v42, %v1109_v44  ;;  %v1160_v4 = vpop.permute.xlu0 %1159  ;;  %v4149_v40 = vld [vmem:[%s6009_s1 + $0x11c] sm:$0xf]  ;;  %v4965_v41 = vpop.permute.xlu1 %1184  ;;  %v4150_v43 = vld [vmem:[%s6011_s3 + $0x4] sm:$0xf] }
 0x104   : > { %v4151_v44 = vld [vmem:[%s6012_s4 + $0x4] sm:$0xf] }
 0x105   : > { %v1146_v57 = vadd.f32 %v1144_v53, %v1127_v45  ;;  %v1147_v59 = vadd.f32 %v1145_v56, %v1128_v46  ;;  %v4152_v45 = vld [vmem:[%s6009_s1 + $0x120] sm:$0xf]  ;;  %v4153_v46 = vld [vmem:[%s6009_s1 + $0x124] sm:$0xf] }
 0x107   : > { %v1154_v1 = vmul.f32 %v1152_v0, %v1146_v57  ;;  %v1155_v2 = vmul.f32 %v1152_v0, %v1147_v59  ;;  %v4967_v42 = vpop.permute.xlu0 %1206  ;;  %v4981_v53 = vpop.permute.xlu1 %1228  ;;  %v4154_v57 = vld [vmem:[%s6009_s1 + $0x128] sm:$0xf]  ;;  %v4155_v59 = vld [vmem:[%s6009_s1 + $0x12c] sm:$0xf] }
 0x109   : > { %v1162_v5 = vadd.f32 %v1160_v4, %v1154_v1  ;;  %v1163_v14 = vadd.f32 %v1160_v4, %v1155_v2  ;;  %v4156_v2 = vld [vmem:[%s6009_s1 + $0x130] sm:$0xf]  ;;  %v4157_v4 = vld [vmem:[%s6009_s1 + $0x134] sm:$0xf] }
 0x10b   : > { %v4867_v8 = vmax.f32 %v1162_v5, 0.0  ;;  %v4869_v13 = vmax.f32 %v1163_v14, 0.0  ;;  %v4983_v56 = vpop.permute.xlu0 %1250  ;;  %v4991_v0 = vpop.permute.xlu1 %1283  ;;  %v4158_v5 = vld [vmem:[%s6009_s1 + $0x138] sm:$0xf]  ;;  %v4159_v14 = vld [vmem:[%s6009_s1 + $0x13c] sm:$0xf] }
 0x10d   : > { %6048 = vst [vmem:[#allocation12_spill] sm:$0xff] %v4869_v13  ;;  %1168 = vrot.lane.b32.xlu1 %v4869_v13, %s4353_s14  ;;  %1172 = vrot.lane.b32.xlu0 %v4867_v8, %s4353_s14 }
 0x10f   : > { %v4993_v1 = vpop.permute.xlu0 %1305 }
 0x111   : > { %1569 = vperm.xlu1 %4284, %v4130_v15   ;;  %1591 = vperm.xlu0 %4285, %v4131_v16   ;;  %v5007_v15 = vpop.permute.xlu1 %1327 }
 0x113   : > { %v5009_v16 = vpop.permute.xlu0 %1349 }
 0x115   : > { %1268 = vrot.lane.b32.xlu1 %v4869_v13, %s4354_s25  ;;  %1271 = vrot.lane.b32.xlu0 %v4867_v8, %s4354_s25 }
 0x119   : > { %1613 = vperm.xlu1 %4284, %v4132_v17   ;;  %1635 = vperm.xlu0 %4285, %v4133_v20   ;;  %v4160_v17 = vld [vmem:[%s6009_s1 + $0x140] sm:$0xf]  ;;  %v4161_v20 = vld [vmem:[%s6009_s1 + $0x144] sm:$0xf] }
 0x11d   : > { %1367 = vrot.lane.b32.xlu1 %v4869_v13, %s6036_s12  ;;  %1370 = vrot.lane.b32.xlu0 %v4867_v8, %s6036_s12 }
 0x121   : > { %1668 = vperm.xlu1 %4284, %v4134_v18   ;;  %1690 = vperm.xlu0 %4285, %v4135_v26   ;;  %v5017_v18 = vpop.permute.xlu1 %1382  ;;  %v5019_v26 = vpop.permute.xlu0 %1404 }
 0x125   : > { %1466 = vrot.lane.b32.xlu1 %v4869_v13, %s4356_s8  ;;  %1469 = vrot.lane.b32.xlu0 %v4867_v8, %s4356_s8 }
 0x129   : > { %1712 = vperm.xlu1 %4284, %v4136_v3   ;;  %1734 = vperm.xlu0 %4285, %v4137_v30   ;;  %v4162_v3 = vld [vmem:[%s6009_s1 + $0x148] sm:$0xf]  ;;  %v4163_v30 = vld [vmem:[%s6009_s1 + $0x14c] sm:$0xf] }
 0x12d   : > { %1767 = vperm.xlu1 %4284, %v4138_v27   ;;  %1789 = vperm.xlu0 %4285, %v4139_v28   ;;  %v4164_v27 = vld [vmem:[%s6009_s1 + $0x150] sm:$0xf]  ;;  %v4165_v28 = vld [vmem:[%s6009_s1 + $0x154] sm:$0xf] }
 0x131   : > { %1811 = vperm.xlu1 %4284, %v4140_v31   ;;  %1833 = vperm.xlu0 %4285, %v4141_v32   ;;  %v5033_v31 = vpop.permute.xlu1 %1426  ;;  %v5035_v32 = vpop.permute.xlu0 %1448 }
 0x135   : > { %1653 = vrot.lane.b32.xlu1 %v4867_v8, %s6020_s17  ;;  %1655 = vrot.lane.b32.xlu0 %v4869_v13, %s6020_s17  ;;  %s6065_s17 = smov 15  }
 0x139   : > { %1866 = vperm.xlu1 %4284, %v4142_v33   ;;  %1888 = vperm.xlu0 %4285, %v4143_v34   ;;  %v4166_v33 = vld [vmem:[%s6009_s1 + $0x158] sm:$0xf]  ;;  %v4167_v34 = vld [vmem:[%s6009_s1 + $0x15c] sm:$0xf] }
 0x13d   : > { %1752 = vrot.lane.b32.xlu1 %v4867_v8, %s6049_s11  ;;  %1754 = vrot.lane.b32.xlu0 %v4869_v13, %s6049_s11 }
 0x141   : > { %1910 = vperm.xlu1 %4284, %v4144_v35   ;;  %1932 = vperm.xlu0 %4285, %v4145_v36   ;;  %v5043_v35 = vpop.permute.xlu1 %1481  ;;  %v5045_v36 = vpop.permute.xlu0 %1503 }
 0x145   : > { %1851 = vrot.lane.b32.xlu1 %v4867_v8, %s6050_s30  ;;  %1853 = vrot.lane.b32.xlu0 %v4869_v13, %s6050_s30 }
 0x149   : > { %1965 = vperm.xlu1 %4284, %v4146_v37   ;;  %1987 = vperm.xlu0 %4285, %v4147_v38   ;;  %v5047_v37 = vpop.permute.xlu1 %1525  ;;  %v5049_v38 = vpop.permute.xlu0 %1547 }
 0x14d   : > { %1950 = vrot.lane.b32.xlu1 %v4867_v8, %s6051_s23  ;;  %1952 = vrot.lane.b32.xlu0 %v4869_v13, %s6051_s23 }
 0x151   : > { %2009 = vperm.xlu1 %4284, %v4148_v39   ;;  %2031 = vperm.xlu0 %4285, %v4149_v40  }
 0x155   : > { %2053 = vperm.xlu1 %4284, %v4150_v43   ;;  %2068 = vperm.xlu0 %4285, %v4151_v44  }
 0x159   : > { %2100 = vperm.xlu1 %4284, %v4152_v45   ;;  %2122 = vperm.xlu0 %4285, %v4153_v46  }
 0x15d   : > { %2144 = vperm.xlu1 %4284, %v4154_v57   ;;  %2166 = vperm.xlu0 %4285, %v4155_v59  }
 0x161   : > { %2199 = vperm.xlu1 %4284, %v4156_v2   ;;  %2221 = vperm.xlu0 %4285, %v4157_v4  }
 0x165   : > { %2243 = vperm.xlu1 %4284, %v4158_v5   ;;  %2265 = vperm.xlu0 %4285, %v4159_v14  }
 0x169   : > { %2298 = vperm.xlu1 %4284, %v4160_v17   ;;  %2320 = vperm.xlu0 %4285, %v4161_v20  }
 0x16d   : > { %2342 = vperm.xlu1 %4284, %v4162_v3   ;;  %2364 = vperm.xlu0 %4285, %v4163_v30  }
 0x171   : > { %2397 = vperm.xlu1 %4284, %v4164_v27   ;;  %2419 = vperm.xlu0 %4285, %v4165_v28  }
 0x175   : > { %2441 = vperm.xlu1 %4284, %v4166_v33   ;;  %2463 = vperm.xlu0 %4285, %v4167_v34   ;;  %v1575_v33 = vrot.slane %v4867_v8, %v4634_v54  ;;  %v5071_v34 = vld [vmem:[%s4452_s13] sm:$0xff] }
 0x176   : > { %6052 = vst [vmem:[#allocation13_spill] sm:$0xff] %v5071_v34 }
 0x17f   : > { %v1169_v39 = vpop.permute.xlu1 %1168  ;;  %v1173_v40 = vpop.permute.xlu0 %1172 }
 0x180   : > { %v1174_v43 = vsel %vm246_vm0, %v1173_v40, %v1169_v39  ;;  %v1177_v44 = vsel %vm246_vm0, %v1169_v39, %v1173_v40 }
 0x181   : > { %v1178_v45 = vmul.f32 %v1177_v44, %v4649_v61  ;;  %v1179_v46 = vmul.f32 %v1174_v43, %v4652_v62  ;;  %v1601_v43 = vrot.slane %v4869_v13, %v4637_v55 }
 0x183   : > { %v1190_v57 = vrot.slane %v1178_v45, %v4634_v54  ;;  %v1194_v59 = vrot.slane %v1179_v46, %v4634_v54  ;;  %v1212_v5 = vrot.slane %v1178_v45, %v4637_v55  ;;  %v1216_v14 = vrot.slane %v1179_v46, %v4637_v55 }
 0x184   : > { %v1234_v30 = vrot.slane %v1178_v45, %v4668_v9  ;;  %v1238_v27 = vrot.slane %v1179_v46, %v4668_v9  ;;  %v1256_v28 = vrot.slane %v1178_v45, %v4683_v22  ;;  %v1260_v40 = vrot.slane %v1179_v46, %v4683_v22 }
 0x185   : > { %v1195_v2 = vmul.f32 %v1190_v57, %v4965_v41  ;;  %v1196_v4 = vmul.f32 %v1194_v59, %v4965_v41  ;;  %v1217_v20 = vmul.f32 %v1212_v5, %v4967_v42  ;;  %v1218_v3 = vmul.f32 %v1216_v14, %v4967_v42 }
 0x186   : > { %v1579_v41 = vrot.slane %v4869_v13, %v4634_v54  ;;  %v1597_v42 = vrot.slane %v4867_v8, %v4637_v55  ;;  %v1239_v45 = vmul.f32 %v1234_v30, %v4981_v53  ;;  %v1240_v57 = vmul.f32 %v1238_v27, %v4981_v53 }
 0x187   : > { %v1199_v17 = vcombine.low %v1195_v2, %v1196_v4  ;;  %v1221_v44 = vcombine.low %v1217_v20, %v1218_v3  ;;  %v1262_v52 = vmul.f32 %v1260_v40, %v4983_v56 }
 0x188   : > { %v1243_v27 = vcombine.low %v1239_v45, %v1240_v57  ;;  %v1645_v45 = vrot.slane %v4869_v13, %v4683_v22 }
 0x189   : > { %v1201_v39 = vadd.f32 %v5071_v34, %v1199_v17  ;;  %v1261_v17 = vmul.f32 %v1256_v28, %v4983_v56  ;;  %v1619_v56 = vrot.slane %v4867_v8, %v4668_v9 }
 0x18b   : > { %v1223_v19 = vadd.f32 %v1221_v44, %v1201_v39  ;;  %v1623_v39 = vrot.slane %v4869_v13, %v4668_v9  ;;  %v1641_v44 = vrot.slane %v4867_v8, %v4683_v22 }
 0x18d   : > { %v1245_v40 = vadd.f32 %v1243_v27, %v1223_v19 }
 0x190   : > { %v1570_v59 = vpop.permute.xlu1 %1569  ;;  %v1592_v2 = vpop.permute.xlu0 %1591 }
 0x191   : > { %v5081_v4 = vmul.f32 %v1575_v33, %v1570_v59  ;;  %v5083_v5 = vmul.f32 %v1579_v41, %v1570_v59  ;;  %v5085_v14 = vmul.f32 %v1597_v42, %v1592_v2  ;;  %v5087_v46 = vmul.f32 %v1601_v43, %v1592_v2 }
 0x192   : > { %v1265_v43 = vcombine.low %v1261_v17, %v1262_v52 }
 0x194   : > { %v1269_v3 = vpop.permute.xlu1 %1268  ;;  %v1272_v30 = vpop.permute.xlu0 %1271  ;;  %v1267_v11 = vadd.f32 %v1265_v43, %v1245_v40 }
 0x195   : > { %v1273_v33 = vsel %vm344_vm1, %v1272_v30, %v1269_v3  ;;  %v1276_v41 = vsel %vm344_vm1, %v1269_v3, %v1272_v30 }
 0x196   : > { %v1277_v42 = vmul.f32 %v1276_v41, %v4686_v23  ;;  %v1278_v28 = vmul.f32 %v1273_v33, %v4689_v24 }
 0x198   : > { %v1289_v57 = vrot.slane %v1277_v42, %v4634_v54  ;;  %v1293_v59 = vrot.slane %v1278_v28, %v4634_v54  ;;  %v1311_v2 = vrot.slane %v1277_v42, %v4637_v55  ;;  %v1315_v3 = vrot.slane %v1278_v28, %v4637_v55  ;;  %v1614_v30 = vpop.permute.xlu1 %1613  ;;  %v1636_v33 = vpop.permute.xlu0 %1635 }
 0x199   : > { %v1333_v41 = vrot.slane %v1277_v42, %v4668_v9  ;;  %v1337_v52 = vrot.slane %v1278_v28, %v4668_v9  ;;  %v1355_v19 = vrot.slane %v1277_v42, %v4683_v22  ;;  %v1359_v17 = vrot.slane %v1278_v28, %v4683_v22 }
 0x19a   : > { %v1294_v27 = vmul.f32 %v1289_v57, %v4991_v0  ;;  %v1295_v53 = vmul.f32 %v1293_v59, %v4991_v0  ;;  %v1316_v20 = vmul.f32 %v1311_v2, %v4993_v1  ;;  %v1317_v29 = vmul.f32 %v1315_v3, %v4993_v1 }
 0x19b   : > { %v1338_v58 = vmul.f32 %v1333_v41, %v5007_v15  ;;  %v1339_v24 = vmul.f32 %v1337_v52, %v5007_v15  ;;  %v1360_v23 = vmul.f32 %v1355_v19, %v5009_v16  ;;  %v1361_v42 = vmul.f32 %v1359_v17, %v5009_v16 }
 0x19c   : > { %v1298_v34 = vcombine.low %v1294_v27, %v1295_v53  ;;  %v5123_v13 = vmul.f32 %v1619_v56, %v1614_v30  ;;  %v5125_v28 = vmul.f32 %v1623_v39, %v1614_v30  ;;  %v1368_v57 = vpop.permute.xlu1 %1367  ;;  %v1371_v0 = vpop.permute.xlu0 %1370  ;;  %v1320_v59 = vcombine.low %v1316_v20, %v1317_v29 }
 0x19d   : > { %v5127_v2 = vmul.f32 %v1641_v44, %v1636_v33  ;;  %v5129_v1 = vmul.f32 %v1645_v45, %v1636_v33  ;;  %v1372_v43 = vsel %vm443_vm2, %v1371_v0, %v1368_v57  ;;  %v1375_v53 = vsel %vm443_vm2, %v1368_v57, %v1371_v0 }
 0x19e   : > { %v1300_v40 = vadd.f32 %v1298_v34, %v1267_v11  ;;  %v1628_v15 = vcombine.low %v5123_v13, %v5125_v28  ;;  %v1376_v56 = vmul.f32 %v1375_v53, %v4707_v6  ;;  %v1377_v39 = vmul.f32 %v1372_v43, %v4710_v7 }
 0x19f   : > { %v1650_v16 = vcombine.low %v5127_v2, %v5129_v1  ;;  %v1342_v20 = vcombine.low %v1338_v58, %v1339_v24  ;;  %v1364_v44 = vcombine.low %v1360_v23, %v1361_v42 }
 0x1a0   : > { %v1322_v29 = vadd.f32 %v1320_v59, %v1300_v40  ;;  %v5139_v45 = vpop.permute.xlu1 %1668  ;;  %v5141_v11 = vpop.permute.xlu0 %1690  ;;  %v1388_v34 = vrot.slane %v1376_v56, %v4634_v54  ;;  %v1392_v3 = vrot.slane %v1377_v39, %v4634_v54  ;;  %v1410_v30 = vrot.slane %v1376_v56, %v4637_v55 }
 0x1a1   : > { %v1414_v33 = vrot.slane %v1377_v39, %v4637_v55  ;;  %v1432_v52 = vrot.slane %v1376_v56, %v4668_v9  ;;  %v1436_v19 = vrot.slane %v1377_v39, %v4668_v9  ;;  %v1454_v24 = vrot.slane %v1376_v56, %v4683_v22 }
 0x1a2   : > { %v1344_v41 = vadd.f32 %v1342_v20, %v1322_v29  ;;  %v1393_v23 = vmul.f32 %v1388_v34, %v5017_v18  ;;  %v1394_v58 = vmul.f32 %v1392_v3, %v5017_v18  ;;  %v1415_v17 = vmul.f32 %v1410_v30, %v5019_v26 }
 0x1a3   : > { %v1416_v27 = vmul.f32 %v1414_v33, %v5019_v26  ;;  %v1437_v57 = vmul.f32 %v1432_v52, %v5033_v31  ;;  %v1438_v0 = vmul.f32 %v1436_v19, %v5033_v31  ;;  %v1458_v59 = vrot.slane %v1377_v39, %v4683_v22 }
 0x1a4   : > { %v1366_v42 = vadd.f32 %v1364_v44, %v1344_v41  ;;  %v1467_v40 = vpop.permute.xlu1 %1466  ;;  %v1470_v43 = vpop.permute.xlu0 %1469  ;;  %v1397_v53 = vcombine.low %v1393_v23, %v1394_v58  ;;  %v1459_v29 = vmul.f32 %v1454_v24, %v5035_v32 }
 0x1a5   : > { %v1471_v56 = vsel %vm542_vm3, %v1470_v43, %v1467_v40  ;;  %v1460_v18 = vmul.f32 %v1458_v59, %v5035_v32  ;;  %v1474_v20 = vsel %vm542_vm3, %v1467_v40, %v1470_v43  ;;  %v1419_v34 = vcombine.low %v1415_v17, %v1416_v27 }
 0x1a6   : > { %v1476_v26 = vmul.f32 %v1471_v56, %v4731_v48  ;;  %v1399_v44 = vadd.f32 %v1397_v53, %v1366_v42  ;;  %v1475_v3 = vmul.f32 %v1474_v20, %v4728_v47  ;;  %v1441_v31 = vcombine.low %v1437_v57, %v1438_v0 }
 0x1a7   : > { %v1463_v58 = vcombine.low %v1459_v29, %v1460_v18 }
 0x1a8   : > { %v1491_v39 = vrot.slane %v1476_v26, %v4634_v54  ;;  %v1513_v30 = vrot.slane %v1476_v26, %v4637_v55  ;;  %v1535_v33 = vrot.slane %v1476_v26, %v4668_v9  ;;  %v1713_v41 = vpop.permute.xlu1 %1712  ;;  %v1735_v52 = vpop.permute.xlu0 %1734  ;;  %v1421_v19 = vadd.f32 %v1419_v34, %v1399_v44 }
 0x1a9   : > { %v1487_v32 = vrot.slane %v1475_v3, %v4634_v54  ;;  %v1509_v24 = vrot.slane %v1475_v3, %v4637_v55  ;;  %v1531_v23 = vrot.slane %v1475_v3, %v4668_v9  ;;  %v1553_v59 = vrot.slane %v1475_v3, %v4683_v22 }
 0x1aa   : > { %v1493_v17 = vmul.f32 %v1491_v39, %v5043_v35  ;;  %v1515_v27 = vmul.f32 %v1513_v30, %v5045_v36  ;;  %v1443_v42 = vadd.f32 %v1441_v31, %v1421_v19  ;;  %v1557_v40 = vrot.slane %v1476_v26, %v4683_v22 }
 0x1ab   : > { %v1492_v57 = vmul.f32 %v1487_v32, %v5043_v35  ;;  %v1514_v0 = vmul.f32 %v1509_v24, %v5045_v36  ;;  %v1536_v29 = vmul.f32 %v1531_v23, %v5047_v37  ;;  %v1537_v18 = vmul.f32 %v1535_v33, %v5047_v37 }
 0x1ac   : > { %v5175_v43 = vpop.permute.xlu1 %1767  ;;  %v5177_v53 = vpop.permute.xlu0 %1789  ;;  %v1465_v56 = vadd.f32 %v1463_v58, %v1443_v42  ;;  %v1558_v35 = vmul.f32 %v1553_v59, %v5049_v38  ;;  %v1559_v36 = vmul.f32 %v1557_v40, %v5049_v38  ;;  %v6053_v38 = vcombine.low %v5081_v4, %v5083_v5 }
 0x1ad   : > { %v1496_v20 = vcombine.low %v1492_v57, %v1493_v17  ;;  %v1518_v34 = vcombine.low %v1514_v0, %v1515_v27  ;;  %v1540_v39 = vcombine.low %v1536_v29, %v1537_v18 }
 0x1ae   : > { %v1562_v19 = vcombine.low %v1558_v35, %v1559_v36 }
 0x1af   : > { %v1498_v44 = vadd.f32 %v1496_v20, %v1465_v56  ;;  %v6054_v20 = vcombine.low %v5085_v14, %v5087_v46 }
 0x1b0   : > { %v5183_v31 = vpop.permute.xlu1 %1811  ;;  %v5185_v3 = vpop.permute.xlu0 %1833 }
 0x1b1   : > { %v1520_v26 = vadd.f32 %v1518_v34, %v1498_v44 }
 0x1b3   : > { %v1542_v30 = vadd.f32 %v1540_v39, %v1520_v26 }
 0x1b4   : > { %v1654_v32 = vpop.permute.xlu1 %1653  ;;  %v1656_v24 = vpop.permute.xlu0 %1655 }
 0x1b5   : > { %v1564_v58 = vadd.f32 %v1562_v19, %v1542_v30  ;;  %v1657_v23 = vsel %vm756_vm4, %v1654_v32, %v1656_v24  ;;  %v1661_v37 = vsel %vm756_vm4, %v1656_v24, %v1654_v32 }
 0x1b6   : > { %v1662_v33 = vmul.f32 %v1657_v23, %v4785_v21  ;;  %v1663_v17 = vmul.f32 %v1661_v37, %v4788_v25 }
 0x1b7   : > { %v1586_v27 = vadd.f32 %v6053_v38, %v1564_v58 }
 0x1b8   : > { %v1674_v42 = vrot.slane %v1662_v33, %v4634_v54  ;;  %v1678_v57 = vrot.slane %v1663_v17, %v4634_v54  ;;  %v1696_v0 = vrot.slane %v1662_v33, %v4637_v55  ;;  %v1700_v59 = vrot.slane %v1663_v17, %v4637_v55  ;;  %v5198_v40 = vpop.permute.xlu1 %1866  ;;  %v5200_v56 = vpop.permute.xlu0 %1888 }
 0x1b9   : > { %v1608_v29 = vadd.f32 %v6054_v20, %v1586_v27  ;;  %v1718_v18 = vrot.slane %v1662_v33, %v4668_v9  ;;  %v1722_v4 = vrot.slane %v1663_v17, %v4668_v9  ;;  %v1740_v34 = vrot.slane %v1662_v33, %v4683_v22 }
 0x1ba   : > { %v1679_v5 = vmul.f32 %v1674_v42, %v5139_v45  ;;  %v1680_v44 = vmul.f32 %v1678_v57, %v5139_v45  ;;  %v1701_v36 = vmul.f32 %v1696_v0, %v5141_v11  ;;  %v1702_v26 = vmul.f32 %v1700_v59, %v5141_v11 }
 0x1bb   : > { %v1630_v35 = vadd.f32 %v1628_v15, %v1608_v29  ;;  %v1744_v14 = vrot.slane %v1663_v17, %v4683_v22  ;;  %v1723_v39 = vmul.f32 %v1718_v18, %v1713_v41  ;;  %v1724_v30 = vmul.f32 %v1722_v4, %v1713_v41 }
 0x1bc   : > { %v1683_v46 = vcombine.low %v1679_v5, %v1680_v44  ;;  %v1753_v19 = vpop.permute.xlu1 %1752  ;;  %v1755_v32 = vpop.permute.xlu0 %1754  ;;  %v1745_v58 = vmul.f32 %v1740_v34, %v1735_v52  ;;  %v1705_v23 = vcombine.low %v1701_v36, %v1702_v26 }
 0x1bd   : > { %v1652_v45 = vadd.f32 %v1650_v16, %v1630_v35  ;;  %v1756_v24 = vsel %vm855_vm5, %v1753_v19, %v1755_v32  ;;  %v1746_v13 = vmul.f32 %v1744_v14, %v1735_v52  ;;  %v1760_v28 = vsel %vm855_vm5, %v1755_v32, %v1753_v19 }
 0x1be   : > { %v1761_v15 = vmul.f32 %v1756_v24, %v4806_v10  ;;  %v1762_v37 = vmul.f32 %v1760_v28, %v4809_v12  ;;  %v1727_v33 = vcombine.low %v1723_v39, %v1724_v30 }
 0x1bf   : > { %v1685_v11 = vadd.f32 %v1683_v46, %v1652_v45  ;;  %v1749_v57 = vcombine.low %v1745_v58, %v1746_v13 }
 0x1c0   : > { %v1773_v41 = vrot.slane %v1761_v15, %v4634_v54  ;;  %v1795_v17 = vrot.slane %v1761_v15, %v4637_v55  ;;  %v1817_v2 = vrot.slane %v1761_v15, %v4668_v9  ;;  %v1911_v1 = vpop.permute.xlu1 %1910  ;;  %v1933_v16 = vpop.permute.xlu0 %1932  ;;  %v1777_v52 = vrot.slane %v1762_v37, %v4634_v54 }
 0x1c1   : > { %v1707_v38 = vadd.f32 %v1705_v23, %v1685_v11  ;;  %v1799_v27 = vrot.slane %v1762_v37, %v4637_v55  ;;  %v1821_v42 = vrot.slane %v1762_v37, %v4668_v9  ;;  %v1839_v59 = vrot.slane %v1761_v15, %v4683_v22 }
 0x1c2   : > { %v1778_v0 = vmul.f32 %v1773_v41, %v5175_v43  ;;  %v1843_v20 = vrot.slane %v1762_v37, %v4683_v22  ;;  %v1779_v18 = vmul.f32 %v1777_v52, %v5175_v43  ;;  %v1800_v4 = vmul.f32 %v1795_v17, %v5177_v53 }
 0x1c3   : > { %v1729_v29 = vadd.f32 %v1727_v33, %v1707_v38  ;;  %v1801_v5 = vmul.f32 %v1799_v27, %v5177_v53  ;;  %v1822_v44 = vmul.f32 %v1817_v2, %v5183_v31  ;;  %v1823_v34 = vmul.f32 %v1821_v42, %v5183_v31 }
 0x1c4   : > { %v1852_v35 = vpop.permute.xlu1 %1851  ;;  %v1854_v36 = vpop.permute.xlu0 %1853  ;;  %v1782_v14 = vcombine.low %v1778_v0, %v1779_v18  ;;  %v1844_v46 = vmul.f32 %v1839_v59, %v5185_v3  ;;  %v1845_v39 = vmul.f32 %v1843_v20, %v5185_v3 }
 0x1c5   : > { %v1751_v26 = vadd.f32 %v1749_v57, %v1729_v29  ;;  %v1855_v30 = vsel %vm954_vm6, %v1852_v35, %v1854_v36  ;;  %v1859_v43 = vsel %vm954_vm6, %v1854_v36, %v1852_v35  ;;  %v1804_v32 = vcombine.low %v1800_v4, %v1801_v5 }
 0x1c6   : > { %v1860_v53 = vmul.f32 %v1855_v30, %v4827_v60  ;;  %v1861_v45 = vmul.f32 %v1859_v43, %v4830_v63  ;;  %v1826_v24 = vcombine.low %v1822_v44, %v1823_v34  ;;  %v1848_v17 = vcombine.low %v1844_v46, %v1845_v39 }
 0x1c7   : > { %v1784_v19 = vadd.f32 %v1782_v14, %v1751_v26  ;;  %v4361_v26 = vmov 839922192  }
 0x1c8   : > { %v1966_v31 = vpop.permute.xlu1 %1965  ;;  %v1988_v58 = vpop.permute.xlu0 %1987  ;;  %v1872_v28 = vrot.slane %v1860_v53, %v4634_v54  ;;  %v1876_v15 = vrot.slane %v1861_v45, %v4634_v54  ;;  %v1894_v3 = vrot.slane %v1860_v53, %v4637_v55  ;;  %v1898_v11 = vrot.slane %v1861_v45, %v4637_v55 }
 0x1c9   : > { %v1806_v13 = vadd.f32 %v1804_v32, %v1784_v19  ;;  %v1916_v23 = vrot.slane %v1860_v53, %v4668_v9  ;;  %v1920_v37 = vrot.slane %v1861_v45, %v4668_v9  ;;  %v1938_v33 = vrot.slane %v1860_v53, %v4683_v22 }
 0x1ca   : > { %v1877_v2 = vmul.f32 %v1872_v28, %v5198_v40  ;;  %v1878_v38 = vmul.f32 %v1876_v15, %v5198_v40  ;;  %v1899_v52 = vmul.f32 %v1894_v3, %v5200_v56  ;;  %v1900_v27 = vmul.f32 %v1898_v11, %v5200_v56 }
 0x1cb   : > { %v1828_v41 = vadd.f32 %v1826_v24, %v1806_v13  ;;  %v1942_v42 = vrot.slane %v1861_v45, %v4683_v22  ;;  %v1921_v18 = vmul.f32 %v1916_v23, %v1911_v1  ;;  %v1922_v4 = vmul.f32 %v1920_v37, %v1911_v1 }
 0x1cc   : > { %v1951_v57 = vpop.permute.xlu1 %1950  ;;  %v1953_v0 = vpop.permute.xlu0 %1952  ;;  %v1881_v20 = vcombine.low %v1877_v2, %v1878_v38  ;;  %v1943_v5 = vmul.f32 %v1938_v33, %v1933_v16  ;;  %v1903_v56 = vcombine.low %v1899_v52, %v1900_v27  ;;  %v2056_v14 = vunpack.c.l.s4 %v4361_v26  ;;  %v4169_v26 = vld [vmem:[%s6009_s1 + $0x164] sm:$0xf] }
 0x1cd   : > { %v1850_v59 = vadd.f32 %v1848_v17, %v1828_v41  ;;  %v1954_v29 = vsel %vm1053_vm7, %v1951_v57, %v1953_v0  ;;  %v1958_v44 = vsel %vm1053_vm7, %v1953_v0, %v1951_v57  ;;  %v1944_v35 = vmul.f32 %v1942_v42, %v1933_v16 }
 0x1ce   : > { %v1959_v40 = vmul.f32 %v1954_v29, %v4848_v49  ;;  %v1960_v36 = vmul.f32 %v1958_v44, %v4851_v50  ;;  %v1925_v43 = vcombine.low %v1921_v18, %v1922_v4  ;;  %v2057_v38 = vunpack.c.0.s8 %v2056_v14  ;;  %v4171_v14 = vld [vmem:[%s6009_s1 + $0x16c] sm:$0xf] }
 0x1cf   : > { %v1883_v34 = vadd.f32 %v1881_v20, %v1850_v59  ;;  %v1947_v13 = vcombine.low %v1943_v5, %v1944_v35 }
 0x1d0   : > { %v1971_v46 = vrot.slane %v1959_v40, %v4634_v54  ;;  %v1975_v39 = vrot.slane %v1960_v36, %v4634_v54  ;;  %v1993_v30 = vrot.slane %v1959_v40, %v4637_v55  ;;  %v1997_v1 = vrot.slane %v1960_v36, %v4637_v55  ;;  %v2010_v24 = vpop.permute.xlu1 %2009  ;;  %v2032_v33 = vpop.permute.xlu0 %2031 }
 0x1d1   : > { %v1905_v19 = vadd.f32 %v1903_v56, %v1883_v34  ;;  %v2015_v32 = vrot.slane %v1959_v40, %v4668_v9  ;;  %v2019_v16 = vrot.slane %v1960_v36, %v4668_v9  ;;  %v2037_v28 = vrot.slane %v1959_v40, %v4683_v22  ;;  %v4170_v56 = vld [vmem:[%s6009_s1 + $0x168] sm:$0xf] }
 0x1d2   : > { %v1976_v53 = vmul.f32 %v1971_v46, %v1966_v31  ;;  %v1977_v45 = vmul.f32 %v1975_v39, %v1966_v31  ;;  %v1998_v3 = vmul.f32 %v1993_v30, %v1988_v58  ;;  %v1999_v11 = vmul.f32 %v1997_v1, %v1988_v58  ;;  %v4173_v46 = vld [vmem:[%s6009_s1 + $0x174] sm:$0xf]  ;;  %v4175_v39 = vld [vmem:[%s6009_s1 + $0x17c] sm:$0xf]  ;;  %v4172_v30 = vld [vmem:[%s6009_s1 + $0x170] sm:$0xf] }
 0x1d3   : > { %v1927_v15 = vadd.f32 %v1925_v43, %v1905_v19  ;;  %v2041_v23 = vrot.slane %v1960_v36, %v4683_v22  ;;  %v2020_v17 = vmul.f32 %v2015_v32, %v2010_v24  ;;  %v2021_v2 = vmul.f32 %v2019_v16, %v2010_v24  ;;  %v4168_v36 = vld [vmem:[%s6009_s1 + $0x160] sm:$0xf]  ;;  %v4177_v1 = vld [vmem:[%s6009_s1 + $0x184] sm:$0xf]  ;;  %v4174_v43 = vld [vmem:[%s6009_s1 + $0x178] sm:$0xf] }
 0x1d4   : > { %v1980_v37 = vcombine.low %v1976_v53, %v1977_v45  ;;  %v2002_v27 = vcombine.low %v1998_v3, %v1999_v11  ;;  %v2042_v42 = vmul.f32 %v2037_v28, %v2032_v33  ;;  %v5268_v59 = vsub.s32 %v2057_v38, %v4625_v51  ;;  %v2054_v20 = vpop.permute.xlu1 %2053  ;;  %v2069_v18 = vpop.permute.xlu0 %2068  ;;  %v4179_v19 = vld [vmem:[%s6009_s1 + $0x18c] sm:$0xf]  ;;  %v4176_v32 = vld [vmem:[%s6009_s1 + $0x180] sm:$0xf]  ;;  %v4178_v16 = vld [vmem:[%s6009_s1 + $0x188] sm:$0xf] }
 0x1d5   : > { %v1949_v41 = vadd.f32 %v1947_v13, %v1927_v15  ;;  %v2043_v57 = vmul.f32 %v2041_v23, %v2032_v33  ;;  %v2024_v0 = vcombine.low %v2020_v17, %v2021_v2  ;;  %v4180_v53 = vld [vmem:[%s6009_s1 + $0x190] sm:$0xf]  ;;  %v4181_v45 = vld [vmem:[%s6009_s1 + $0x194] sm:$0xf]  ;;  %v4182_v24 = vld [vmem:[%s6009_s1 + $0x198] sm:$0xf] }
 0x1d6   : > { %v2061_v5 = vrot.slane %v2054_v20, %v5268_v59  ;;  %v2076_v34 = vrot.slane %v2069_v18, %v5268_v59  ;;  %v4183_v13 = vld [vmem:[%s6009_s1 + $0x19c] sm:$0xf]  ;;  %v4184_v28 = vld [vmem:[%s6009_s1 + $0x1a0] sm:$0xf]  ;;  %v4185_v15 = vld [vmem:[%s6009_s1 + $0x1a4] sm:$0xf] }
 0x1d7   : > { %v1982_v52 = vadd.f32 %v1980_v37, %v1949_v41  ;;  %v2046_v58 = vcombine.low %v2042_v42, %v2043_v57  ;;  %v4187_v3 = vld [vmem:[%s6009_s1 + $0x1ac] sm:$0xf]  ;;  %v4186_v11 = vld [vmem:[%s6009_s1 + $0x1a8] sm:$0xf]  ;;  %v4191_v17 = vld [vmem:[%s6009_s1 + $0x1b4] sm:$0xf] }
 0x1d8   : > { %v4189_v23 = vld [vmem:[%s6012_s4 + $0x8] sm:$0xf]  ;;  %v2101_v37 = vpop.permute.xlu1 %2100  ;;  %v5363_v33 = vpop.permute.xlu0 %2122  ;;  %v4190_v2 = vld [vmem:[%s6009_s1 + $0x1b0] sm:$0xf]  ;;  %v4192_v42 = vld [vmem:[%s6009_s1 + $0x1b8] sm:$0xf] }
 0x1d9   : > { %v2004_v31 = vadd.f32 %v2002_v27, %v1982_v52  ;;  %v4188_v41 = vld [vmem:[%s6011_s3 + $0x8] sm:$0xf]  ;;  %v4193_v27 = vld [vmem:[%s6009_s1 + $0x1bc] sm:$0xf]  ;;  %v4195_v57 = vld [vmem:[%s6009_s1 + $0x1c4] sm:$0xf] }
 0x1da   : > { %v4194_v20 = vld [vmem:[%s6009_s1 + $0x1c0] sm:$0xf] }
 0x1db   : > { %v2026_v29 = vadd.f32 %v2024_v0, %v2004_v31 }
 0x1dc   : > { %v5374_v38 = vpop.permute.xlu1 %2144  ;;  %v5376_v52 = vpop.permute.xlu0 %2166 }
 0x1dd   : > { %v2048_v4 = vadd.f32 %v2046_v58, %v2026_v29  ;;  %v4197_v29 = vld [vmem:[%s6009_s1 + $0x1cc] sm:$0xf]  ;;  %v4196_v58 = vld [vmem:[%s6009_s1 + $0x1c8] sm:$0xf] }
 0x1df   : > { %v2063_v44 = vmul.f32 %v2061_v5, %v2048_v4  ;;  %v4199_v5 = vld [vmem:[%s6009_s1 + $0x1d4] sm:$0xf] }
 0x1e0   : > { %v5387_v31 = vpop.permute.xlu1 %2199  ;;  %v5389_v0 = vpop.permute.xlu0 %2221 }
 0x1e1   : > { %v2078_v35 = vadd.f32 %v2076_v34, %v2063_v44  ;;  %v4198_v44 = vld [vmem:[%s6009_s1 + $0x1d0] sm:$0xf]  ;;  %v4201_v34 = vld [vmem:[%s6009_s1 + $0x1dc] sm:$0xf] }
 0x1e3   : > { %v5272_v40 = vmax.f32 %v2078_v35, 0.0 }
 0x1e4   : > { %v5400_v18 = vpop.permute.xlu1 %2243  ;;  %v5402_v4 = vpop.permute.xlu0 %2265 }
 0x1e5   : > { %2088 = vrot.lane.b32.xlu0 %v5272_v40, %s4353_s14  ;;  %v2084_v51 = vcombine.high %v5272_v40, %v5272_v40 }
 0x1e7   : > { %2085 = vrot.lane.b32.xlu1 %v2084_v51, %s4353_s14 }
 0x1e8   : > { %v5413_v35 = vpop.permute.xlu1 %2298 }
 0x1e9   : > { %2187 = vrot.lane.b32.xlu0 %v5272_v40, %s4354_s25 }
 0x1eb   : > { %2485 = vperm.xlu1 %4284, %v4168_v36   ;;  %v4200_v36 = vld [vmem:[%s6009_s1 + $0x1d8] sm:$0xf] }
 0x1ed   : > { %2286 = vrot.lane.b32.xlu0 %v5272_v40, %s6036_s12 }
 0x1ef   : > { %2184 = vrot.lane.b32.xlu1 %v2084_v51, %s4354_s25 }
 0x1f1   : > { %2385 = vrot.lane.b32.xlu0 %v5272_v40, %s4356_s8 }
 0x1f3   : > { %2549 = vperm.xlu1 %4284, %v4170_v56   ;;  %v4203_v56 = vld [vmem:[%s6009_s1 + $0x1e4] sm:$0xf] }
 0x1f5   : > { %2517 = vperm.xlu0 %4285, %v4169_v26   ;;  %v4202_v26 = vld [vmem:[%s6009_s1 + $0x1e0] sm:$0xf] }
 0x1f7   : > { %2283 = vrot.lane.b32.xlu1 %v2084_v51, %s6036_s12 }
 0x1f9   : > { %2581 = vperm.xlu0 %4285, %v4171_v14   ;;  %v5426_v14 = vpop.permute.xlu1 %2342 }
 0x1fb   : > { %2609 = vrot.lane.b32.xlu1 %v5272_v40, %s6055_s15 }
 0x1fd   : > { %2646 = vperm.xlu0 %4285, %v4173_v46  }
 0x1ff   : > { %2382 = vrot.lane.b32.xlu1 %v2084_v51, %s4356_s8 }
 0x201   : > { %2690 = vperm.xlu0 %4285, %v4175_v39   ;;  %v5430_v39 = vpop.permute.xlu1 %2397 }
 0x203   : > { %2624 = vperm.xlu1 %4284, %v4172_v30  }
 0x205   : > { %2745 = vperm.xlu0 %4285, %v4177_v1   ;;  %v5434_v1 = vpop.permute.xlu1 %2441 }
 0x207   : > { %2668 = vperm.xlu1 %4284, %v4174_v43  }
 0x209   : > { %2789 = vperm.xlu0 %4285, %v4179_v19  }
 0x20b   : > { %2708 = vrot.lane.b32.xlu1 %v5272_v40, %s6049_s11 }
 0x20d   : > { %2611 = vrot.lane.b32.xlu0 %v2084_v51, %s6055_s15 }
 0x20f   : > { %2723 = vperm.xlu1 %4284, %v4176_v32  }
 0x211   : > { %2807 = vrot.lane.b32.xlu0 %v5272_v40, %s6050_s30 }
 0x213   : > { %2767 = vperm.xlu1 %4284, %v4178_v16  }
 0x215   : > { %2710 = vrot.lane.b32.xlu0 %v2084_v51, %s6049_s11 }
 0x217   : > { %2822 = vperm.xlu1 %4284, %v4180_v53  }
 0x219   : > { %2844 = vperm.xlu0 %4285, %v4181_v45  }
 0x21b   : > { %2866 = vperm.xlu1 %4284, %v4182_v24  }
 0x21d   : > { %2888 = vperm.xlu0 %4285, %v4183_v13  }
 0x21f   : > { %2809 = vrot.lane.b32.xlu1 %v2084_v51, %s6050_s30 }
 0x221   : > { %2906 = vrot.lane.b32.xlu0 %v5272_v40, %s6051_s23 }
 0x223   : > { %2921 = vperm.xlu1 %4284, %v4184_v28  }
 0x225   : > { %2943 = vperm.xlu0 %4285, %v4185_v15  }
 0x227   : > { %2908 = vrot.lane.b32.xlu1 %v2084_v51, %s6051_s23  ;;  %v5415_v51 = vpop.permute.xlu0 %2320 }
 0x229   : > { %2987 = vperm.xlu0 %4285, %v4187_v3  }
 0x22b   : > { %2965 = vperm.xlu1 %4284, %v4186_v11   ;;  %v5428_v46 = vpop.permute.xlu0 %2364 }
 0x22d   : > { %3024 = vperm.xlu0 %4285, %v4189_v23  }
 0x22f   : > { %3009 = vperm.xlu1 %4284, %v4188_v41   ;;  %v5432_v30 = vpop.permute.xlu0 %2419 }
 0x231   : > { %3076 = vperm.xlu0 %4285, %v4191_v17  }
 0x233   : > { %3054 = vperm.xlu1 %4284, %v4190_v2   ;;  %v5436_v43 = vpop.permute.xlu0 %2463  ;;  %v6056_v2 = vld [vmem:[#allocation12_spill] sm:$0xff] }
 0x235   : > { %3120 = vperm.xlu0 %4285, %v4193_v27   ;;  %v6057_v27 = vcombine.low %v4867_v8, %v6056_v2 }
 0x237   : > { %3098 = vperm.xlu1 %4284, %v4192_v42   ;;  %v6058_v42 = vld [vmem:[#allocation13_spill] sm:$0xff] }
 0x239   : > { %3175 = vperm.xlu0 %4285, %v4195_v57   ;;  %v5450_v57 = vadd.f32 %v6058_v42, %v6057_v27 }
 0x23b   : > { %3153 = vperm.xlu1 %4284, %v4194_v20  }
 0x23d   : > { %3219 = vperm.xlu0 %4285, %v4197_v29  }
 0x23f   : > { %3197 = vperm.xlu1 %4284, %v4196_v58  }
 0x241   : > { %3274 = vperm.xlu0 %4285, %v4199_v5  }
 0x243   : > { %3252 = vperm.xlu1 %4284, %v4198_v44  }
 0x245   : > { %3318 = vperm.xlu0 %4285, %v4201_v34  }
 0x247   : > { %3296 = vperm.xlu1 %4284, %v4200_v36  }
 0x249   : > { %3373 = vperm.xlu0 %4285, %v4203_v56  }
 0x24b   : > { %3351 = vperm.xlu1 %4284, %v4202_v26  }
 0x257   : > { %v2089_v19 = vpop.permute.xlu0 %2088 }
 0x259   : > { %v2086_v32 = vpop.permute.xlu1 %2085 }
 0x25a   : > { %v2090_v16 = vsel %vm246_vm0, %v2089_v19, %v2086_v32  ;;  %v2093_v53 = vsel %vm246_vm0, %v2086_v32, %v2089_v19 }
 0x25b   : > { %v2094_v45 = vmul.f32 %v2093_v53, %v4649_v61  ;;  %v2095_v24 = vmul.f32 %v2090_v16, %v4652_v62  ;;  %v2188_v41 = vpop.permute.xlu0 %2187 }
 0x25d   : > { %v2106_v13 = vrot.slane %v2094_v45, %v4634_v54  ;;  %v2110_v28 = vrot.slane %v2095_v24, %v4634_v54  ;;  %v2128_v11 = vrot.slane %v2094_v45, %v4637_v55  ;;  %v2132_v23 = vrot.slane %v2095_v24, %v4637_v55 }
 0x25e   : > { %v2150_v58 = vrot.slane %v2094_v45, %v4668_v9  ;;  %v2172_v44 = vrot.slane %v2094_v45, %v4683_v22  ;;  %v2176_v34 = vrot.slane %v2095_v24, %v4683_v22 }
 0x25f   : > { %v2111_v15 = vmul.f32 %v2106_v13, %v2101_v37  ;;  %v2112_v3 = vmul.f32 %v2110_v28, %v2101_v37  ;;  %v2133_v20 = vmul.f32 %v2128_v11, %v5363_v33  ;;  %v2134_v29 = vmul.f32 %v2132_v23, %v5363_v33  ;;  %v2287_v36 = vpop.permute.xlu0 %2286  ;;  %v6060_v11 = vld [vmem:[#allocation6_spill] sm:$0xff] }
 0x260   : > { %v2154_v37 = vrot.slane %v2095_v24, %v4668_v9  ;;  %v2155_v26 = vmul.f32 %v2150_v58, %v5374_v38  ;;  %v2177_v33 = vmul.f32 %v2172_v44, %v5376_v52  ;;  %v2178_v16 = vmul.f32 %v2176_v34, %v5376_v52 }
 0x261   : > { %v2115_v17 = vcombine.low %v2111_v15, %v2112_v3  ;;  %v2137_v8 = vcombine.low %v2133_v20, %v2134_v29  ;;  %v6059_v15 = vld [vmem:[#allocation5_spill] sm:$0xff] }
 0x262   : > { %v2156_v19 = vmul.f32 %v2154_v37, %v5374_v38  ;;  %v2181_v2 = vcombine.low %v2177_v33, %v2178_v16 }
 0x263   : > { %v2117_v5 = vadd.f32 %v2115_v17, %v5450_v57  ;;  %v5467_v24 = vpop.permute.xlu0 %2385 }
 0x264   : > { %v2159_v13 = vcombine.low %v2155_v26, %v2156_v19 }
 0x265   : > { %v2139_v32 = vadd.f32 %v2137_v8, %v2117_v5 }
 0x267   : > { %v2161_v17 = vadd.f32 %v2159_v13, %v2139_v32 }
 0x269   : > { %v2183_v19 = vadd.f32 %v2181_v2, %v2161_v17 }
 0x26a   : > { %v5459_v56 = vpop.permute.xlu1 %2485 }
 0x26e   : > { %v2185_v53 = vpop.permute.xlu1 %2184 }
 0x26f   : > { %v2189_v28 = vsel %vm344_vm1, %v2188_v41, %v2185_v53  ;;  %v2192_v45 = vsel %vm344_vm1, %v2185_v53, %v2188_v41 }
 0x270   : > { %v2193_v3 = vmul.f32 %v2192_v45, %v6059_v15  ;;  %v2194_v23 = vmul.f32 %v2189_v28, %v6060_v11 }
 0x272   : > { %v2205_v38 = vrot.slane %v2193_v3, %v4634_v54  ;;  %v2209_v27 = vrot.slane %v2194_v23, %v4634_v54  ;;  %v2227_v52 = vrot.slane %v2193_v3, %v4637_v55  ;;  %v2231_v42 = vrot.slane %v2194_v23, %v4637_v55  ;;  %v5475_v20 = vpop.permute.xlu1 %2549 }
 0x273   : > { %v2249_v41 = vrot.slane %v2193_v3, %v4668_v9  ;;  %v2253_v29 = vrot.slane %v2194_v23, %v4668_v9  ;;  %v2271_v58 = vrot.slane %v2193_v3, %v4683_v22  ;;  %v2275_v37 = vrot.slane %v2194_v23, %v4683_v22 }
 0x274   : > { %v2210_v5 = vmul.f32 %v2205_v38, %v5387_v31  ;;  %v2211_v44 = vmul.f32 %v2209_v27, %v5387_v31  ;;  %v2232_v34 = vmul.f32 %v2227_v52, %v5389_v0  ;;  %v2233_v8 = vmul.f32 %v2231_v42, %v5389_v0  ;;  %v5485_v26 = vpop.permute.xlu0 %2517 }
 0x275   : > { %v2254_v32 = vmul.f32 %v2249_v41, %v5400_v18  ;;  %v2255_v16 = vmul.f32 %v2253_v29, %v5400_v18  ;;  %v2276_v53 = vmul.f32 %v2271_v58, %v5402_v4  ;;  %v2277_v13 = vmul.f32 %v2275_v37, %v5402_v4 }
 0x276   : > { %v2214_v33 = vcombine.low %v2210_v5, %v2211_v44  ;;  %v2284_v28 = vpop.permute.xlu1 %2283  ;;  %v2236_v3 = vcombine.low %v2232_v34, %v2233_v8 }
 0x277   : > { %v2288_v31 = vsel %vm443_vm2, %v2287_v36, %v2284_v28  ;;  %v2291_v23 = vsel %vm443_vm2, %v2284_v28, %v2287_v36  ;;  %v2258_v27 = vcombine.low %v2254_v32, %v2255_v16  ;;  %v2280_v18 = vcombine.low %v2276_v53, %v2277_v13 }
 0x278   : > { %v2216_v45 = vadd.f32 %v2214_v33, %v2183_v19  ;;  %v5493_v0 = vpop.permute.xlu0 %2581  ;;  %v2292_v17 = vmul.f32 %v2291_v23, %v4707_v6  ;;  %v2293_v2 = vmul.f32 %v2288_v31, %v4710_v7 }
 0x27a   : > { %v2238_v38 = vadd.f32 %v2236_v3, %v2216_v45  ;;  %v5497_v52 = vpop.permute.xlu1 %2609  ;;  %v2304_v4 = vrot.slane %v2292_v17, %v4634_v54  ;;  %v2308_v42 = vrot.slane %v2293_v2, %v4634_v54  ;;  %v2326_v41 = vrot.slane %v2292_v17, %v4637_v55  ;;  %v6061_v3 = vld [vmem:[#allocation8_spill] sm:$0xff] }
 0x27b   : > { %v2330_v29 = vrot.slane %v2293_v2, %v4637_v55  ;;  %v2348_v58 = vrot.slane %v2292_v17, %v4668_v9  ;;  %v2352_v37 = vrot.slane %v2293_v2, %v4668_v9  ;;  %v2370_v5 = vrot.slane %v2292_v17, %v4683_v22 }
 0x27c   : > { %v2260_v36 = vadd.f32 %v2258_v27, %v2238_v38  ;;  %v5506_v44 = vpop.permute.xlu0 %2646  ;;  %v2309_v34 = vmul.f32 %v2304_v4, %v5413_v35  ;;  %v2310_v8 = vmul.f32 %v2308_v42, %v5413_v35  ;;  %v2331_v19 = vmul.f32 %v2326_v41, %v5415_v51 }
 0x27d   : > { %v2332_v32 = vmul.f32 %v2330_v29, %v5415_v51  ;;  %v2353_v16 = vmul.f32 %v2348_v58, %v5426_v14  ;;  %v2354_v53 = vmul.f32 %v2352_v37, %v5426_v14  ;;  %v2374_v13 = vrot.slane %v2293_v2, %v4683_v22  ;;  %v6062_v29 = vld [vmem:[#allocation9_spill] sm:$0xff] }
 0x27e   : > { %v2282_v33 = vadd.f32 %v2280_v18, %v2260_v36  ;;  %v2383_v28 = vpop.permute.xlu1 %2382  ;;  %v2491_v45 = vrot.slane %v5272_v40, %v4634_v54  ;;  %v2495_v31 = vrot.slane %v5272_v40, %v6061_v3  ;;  %v2313_v23 = vcombine.low %v2309_v34, %v2310_v8 }
 0x27f   : > { %v2375_v35 = vmul.f32 %v2370_v5, %v5428_v46  ;;  %v2555_v51 = vrot.slane %v5272_v40, %v4668_v9  ;;  %v2376_v17 = vmul.f32 %v2374_v13, %v5428_v46  ;;  %v2387_v14 = vsel %vm542_vm3, %v5467_v24, %v2383_v28 }
 0x280   : > { %v2390_v2 = vsel %vm542_vm3, %v2383_v28, %v5467_v24  ;;  %v5527_v38 = vpop.permute.xlu0 %2690  ;;  %v2315_v27 = vadd.f32 %v2313_v23, %v2282_v33  ;;  %v2335_v18 = vcombine.low %v2331_v19, %v2332_v32  ;;  %v2392_v42 = vmul.f32 %v2387_v14, %v4731_v48 }
 0x281   : > { %v2391_v4 = vmul.f32 %v2390_v2, %v4728_v47  ;;  %v2523_v41 = vrot.slane %v5272_v40, %v4637_v55  ;;  %v2527_v46 = vrot.slane %v5272_v40, %v6062_v29  ;;  %v2357_v36 = vcombine.low %v2353_v16, %v2354_v53 }
 0x282   : > { %v2379_v58 = vcombine.low %v2375_v35, %v2376_v17  ;;  %v5535_v37 = vpop.permute.xlu1 %2624  ;;  %v2337_v5 = vadd.f32 %v2335_v18, %v2315_v27  ;;  %v2407_v34 = vrot.slane %v2392_v42, %v4634_v54  ;;  %v2429_v19 = vrot.slane %v2392_v42, %v4637_v55  ;;  %v6063_v17 = vld [vmem:[#allocation10_spill] sm:$0xff] }
 0x283   : > { %v2403_v24 = vrot.slane %v2391_v4, %v4634_v54  ;;  %v2425_v8 = vrot.slane %v2391_v4, %v4637_v55  ;;  %v2447_v32 = vrot.slane %v2391_v4, %v4668_v9  ;;  %v2451_v33 = vrot.slane %v2392_v42, %v4668_v9 }
 0x284   : > { %v2469_v13 = vrot.slane %v2391_v4, %v4683_v22  ;;  %v5544_v28 = vpop.permute.xlu0 %2745  ;;  %v2359_v16 = vadd.f32 %v2357_v36, %v2337_v5  ;;  %v2409_v23 = vmul.f32 %v2407_v34, %v5430_v39  ;;  %v2559_v14 = vrot.slane %v5272_v40, %v6063_v17 }
 0x285   : > { %v2408_v53 = vmul.f32 %v2403_v24, %v5430_v39  ;;  %v2430_v35 = vmul.f32 %v2425_v8, %v5432_v30  ;;  %v2587_v2 = vrot.slane %v5272_v40, %v4683_v22  ;;  %v2431_v27 = vmul.f32 %v2429_v19, %v5432_v30 }
 0x286   : > { %v2473_v18 = vrot.slane %v2392_v42, %v4683_v22  ;;  %v5555_v4 = vpop.permute.xlu1 %2668  ;;  %v2381_v29 = vadd.f32 %v2379_v58, %v2359_v16  ;;  %v2452_v5 = vmul.f32 %v2447_v32, %v5434_v1  ;;  %v2453_v39 = vmul.f32 %v2451_v33, %v5434_v1  ;;  %v6064_v33 = vld [vmem:[#allocation11_spill] sm:$0xff] }
 0x287   : > { %v2412_v36 = vcombine.low %v2408_v53, %v2409_v23  ;;  %v2501_v24 = vrot.slane %v2491_v45, %v4634_v54  ;;  %v2505_v34 = vrot.slane %v2495_v31, %v4634_v54  ;;  %v2533_v8 = vrot.slane %v2523_v41, %v4637_v55 }
 0x288   : > { %v2537_v17 = vrot.slane %v2527_v46, %v4637_v55  ;;  %v5563_v48 = vpop.permute.xlu0 %2789  ;;  %v2434_v42 = vcombine.low %v2430_v35, %v2431_v27  ;;  %v2474_v19 = vmul.f32 %v2469_v13, %v5436_v43  ;;  %v2475_v58 = vmul.f32 %v2473_v18, %v5436_v43 }
 0x289   : > { %v2414_v30 = vadd.f32 %v2412_v36, %v2381_v29  ;;  %v2506_v32 = vmul.f32 %v2501_v24, %v5459_v56  ;;  %v2507_v1 = vmul.f32 %v2505_v34, %v5459_v56  ;;  %v2591_v45 = vrot.slane %v5272_v40, %v6064_v33 }
 0x28a   : > { %v2709_v31 = vpop.permute.xlu1 %2708  ;;  %v2538_v41 = vmul.f32 %v2533_v8, %v5485_v26  ;;  %v2539_v46 = vmul.f32 %v2537_v17, %v5485_v26  ;;  %v2456_v53 = vcombine.low %v2452_v5, %v2453_v39  ;;  %v2565_v29 = vrot.slane %v2555_v51, %v4668_v9 }
 0x28b   : > { %v2436_v16 = vadd.f32 %v2434_v42, %v2414_v30  ;;  %v2569_v13 = vrot.slane %v2559_v14, %v4668_v9  ;;  %v2597_v43 = vrot.slane %v2587_v2, %v4683_v22  ;;  %v2478_v27 = vcombine.low %v2474_v19, %v2475_v58 }
 0x28c   : > { %v2612_v23 = vpop.permute.xlu0 %2611  ;;  %v2570_v36 = vmul.f32 %v2565_v29, %v5475_v20  ;;  %v2510_v5 = vcombine.low %v2506_v32, %v2507_v1  ;;  %v2542_v2 = vcombine.low %v2538_v41, %v2539_v46  ;;  %v2601_v39 = vrot.slane %v2591_v45, %v4683_v22 }
 0x28d   : > { %v2458_v35 = vadd.f32 %v2456_v53, %v2436_v16  ;;  %v2613_v56 = vsel %vm756_vm4, %v5497_v52, %v2612_v23  ;;  %v2617_v18 = vsel %vm756_vm4, %v2612_v23, %v5497_v52  ;;  %v2571_v26 = vmul.f32 %v2569_v13, %v5475_v20 }
 0x28e   : > { %v2618_v17 = vmul.f32 %v2613_v56, %v4785_v21  ;;  %v2619_v51 = vmul.f32 %v2617_v18, %v4788_v25  ;;  %v2724_v14 = vpop.permute.xlu1 %2723  ;;  %v2602_v20 = vmul.f32 %v2597_v43, %v5493_v0  ;;  %v2603_v19 = vmul.f32 %v2601_v39, %v5493_v0 }
 0x28f   : > { %v2480_v24 = vadd.f32 %v2478_v27, %v2458_v35  ;;  %v2574_v1 = vcombine.low %v2570_v36, %v2571_v26 }
 0x290   : > { %v2630_v34 = vrot.slane %v2618_v17, %v4634_v54  ;;  %v2634_v8 = vrot.slane %v2619_v51, %v4634_v54  ;;  %v2652_v52 = vrot.slane %v2618_v17, %v4637_v55  ;;  %v2656_v30 = vrot.slane %v2619_v51, %v4637_v55  ;;  %v2808_v42 = vpop.permute.xlu0 %2807 }
 0x291   : > { %v2512_v58 = vadd.f32 %v2510_v5, %v2480_v24  ;;  %v2674_v32 = vrot.slane %v2618_v17, %v4668_v9  ;;  %v2678_v46 = vrot.slane %v2619_v51, %v4668_v9  ;;  %v2696_v43 = vrot.slane %v2618_v17, %v4683_v22 }
 0x292   : > { %v2635_v45 = vmul.f32 %v2630_v34, %v5535_v37  ;;  %v2636_v41 = vmul.f32 %v2634_v8, %v5535_v37  ;;  %v2768_v16 = vpop.permute.xlu1 %2767  ;;  %v2657_v29 = vmul.f32 %v2652_v52, %v5506_v44  ;;  %v2658_v13 = vmul.f32 %v2656_v30, %v5506_v44 }
 0x293   : > { %v2544_v53 = vadd.f32 %v2542_v2, %v2512_v58  ;;  %v2700_v0 = vrot.slane %v2619_v51, %v4683_v22  ;;  %v2606_v35 = vcombine.low %v2602_v20, %v2603_v19  ;;  %v2679_v56 = vmul.f32 %v2674_v32, %v5555_v4 }
 0x294   : > { %v2711_v23 = vpop.permute.xlu0 %2710  ;;  %v2639_v37 = vcombine.low %v2635_v45, %v2636_v41  ;;  %v2680_v36 = vmul.f32 %v2678_v46, %v5555_v4  ;;  %v2661_v39 = vcombine.low %v2657_v29, %v2658_v13  ;;  %v2701_v17 = vmul.f32 %v2696_v43, %v5527_v38 }
 0x295   : > { %v2576_v27 = vadd.f32 %v2574_v1, %v2544_v53  ;;  %v2712_v18 = vsel %vm855_vm5, %v2709_v31, %v2711_v23  ;;  %v2716_v26 = vsel %vm855_vm5, %v2711_v23, %v2709_v31  ;;  %v2702_v24 = vmul.f32 %v2700_v0, %v5527_v38 }
 0x296   : > { %v2717_v5 = vmul.f32 %v2712_v18, %v4806_v10  ;;  %v2823_v2 = vpop.permute.xlu1 %2822  ;;  %v2718_v51 = vmul.f32 %v2716_v26, %v4809_v12  ;;  %v2683_v1 = vcombine.low %v2679_v56, %v2680_v36 }
 0x297   : > { %v2608_v44 = vadd.f32 %v2606_v35, %v2576_v27  ;;  %v2705_v38 = vcombine.low %v2701_v17, %v2702_v24 }
 0x298   : > { %v2729_v34 = vrot.slane %v2717_v5, %v4634_v54  ;;  %v2751_v8 = vrot.slane %v2717_v5, %v4637_v55  ;;  %v2773_v52 = vrot.slane %v2717_v5, %v4668_v9  ;;  %v2845_v4 = vpop.permute.xlu0 %2844  ;;  %v2733_v31 = vrot.slane %v2718_v51, %v4634_v54 }
 0x299   : > { %v2641_v30 = vadd.f32 %v2639_v37, %v2608_v44  ;;  %v2755_v20 = vrot.slane %v2718_v51, %v4637_v55  ;;  %v2777_v19 = vrot.slane %v2718_v51, %v4668_v9  ;;  %v2795_v53 = vrot.slane %v2717_v5, %v4683_v22 }
 0x29a   : > { %v2867_v58 = vpop.permute.xlu1 %2866  ;;  %v2734_v45 = vmul.f32 %v2729_v34, %v2724_v14  ;;  %v2735_v41 = vmul.f32 %v2733_v31, %v2724_v14  ;;  %v2756_v46 = vmul.f32 %v2751_v8, %v5544_v28  ;;  %v2799_v29 = vrot.slane %v2718_v51, %v4683_v22 }
 0x29b   : > { %v2663_v32 = vadd.f32 %v2661_v39, %v2641_v30  ;;  %v2757_v43 = vmul.f32 %v2755_v20, %v5544_v28  ;;  %v2778_v0 = vmul.f32 %v2773_v52, %v2768_v16  ;;  %v2779_v23 = vmul.f32 %v2777_v19, %v2768_v16 }
 0x29c   : > { %v2889_v35 = vpop.permute.xlu0 %2888  ;;  %v2738_v37 = vcombine.low %v2734_v45, %v2735_v41  ;;  %v2800_v36 = vmul.f32 %v2795_v53, %v5563_v48  ;;  %v2801_v26 = vmul.f32 %v2799_v29, %v5563_v48 }
 0x29d   : > { %v2685_v13 = vadd.f32 %v2683_v1, %v2663_v32  ;;  %v2760_v28 = vcombine.low %v2756_v46, %v2757_v43  ;;  %v2782_v17 = vcombine.low %v2778_v0, %v2779_v23 }
 0x29e   : > { %v2810_v27 = vpop.permute.xlu1 %2809  ;;  %v2804_v31 = vcombine.low %v2800_v36, %v2801_v26 }
 0x29f   : > { %v2707_v18 = vadd.f32 %v2705_v38, %v2685_v13  ;;  %v2811_v56 = vsel %vm954_vm6, %v2808_v42, %v2810_v27  ;;  %v2815_v14 = vsel %vm954_vm6, %v2810_v27, %v2808_v42 }
 0x2a0   : > { %v2816_v5 = vmul.f32 %v2811_v56, %v4827_v60  ;;  %v2817_v44 = vmul.f32 %v2815_v14, %v4830_v63  ;;  %v2907_v32 = vpop.permute.xlu0 %2906 }
 0x2a1   : > { %v2740_v39 = vadd.f32 %v2738_v37, %v2707_v18 }
 0x2a2   : > { %v2828_v16 = vrot.slane %v2816_v5, %v4634_v54  ;;  %v2832_v51 = vrot.slane %v2817_v44, %v4634_v54  ;;  %v2850_v24 = vrot.slane %v2816_v5, %v4637_v55  ;;  %v2854_v34 = vrot.slane %v2817_v44, %v4637_v55  ;;  %v2922_v42 = vpop.permute.xlu1 %2921 }
 0x2a3   : > { %v2762_v8 = vadd.f32 %v2760_v28, %v2740_v39  ;;  %v2872_v52 = vrot.slane %v2816_v5, %v4668_v9  ;;  %v2876_v48 = vrot.slane %v2817_v44, %v4668_v9  ;;  %v2894_v30 = vrot.slane %v2816_v5, %v4683_v22 }
 0x2a4   : > { %v2833_v20 = vmul.f32 %v2828_v16, %v2823_v2  ;;  %v2834_v19 = vmul.f32 %v2832_v51, %v2823_v2  ;;  %v2855_v45 = vmul.f32 %v2850_v24, %v2845_v4  ;;  %v2856_v41 = vmul.f32 %v2854_v34, %v2845_v4  ;;  %v2944_v36 = vpop.permute.xlu0 %2943 }
 0x2a5   : > { %v2784_v1 = vadd.f32 %v2782_v17, %v2762_v8  ;;  %v2898_v38 = vrot.slane %v2817_v44, %v4683_v22  ;;  %v2877_v53 = vmul.f32 %v2872_v52, %v2867_v58  ;;  %v2878_v29 = vmul.f32 %v2876_v48, %v2867_v58 }
 0x2a6   : > { %v2837_v46 = vcombine.low %v2833_v20, %v2834_v19  ;;  %v2899_v13 = vmul.f32 %v2894_v30, %v2889_v35  ;;  %v2909_v43 = vpop.permute.xlu1 %2908  ;;  %v2859_v56 = vcombine.low %v2855_v45, %v2856_v41 }
 0x2a7   : > { %v2806_v0 = vadd.f32 %v2804_v31, %v2784_v1  ;;  %v2900_v23 = vmul.f32 %v2898_v38, %v2889_v35  ;;  %v2910_v27 = vsel %vm1053_vm7, %v2907_v32, %v2909_v43  ;;  %v2914_v18 = vsel %vm1053_vm7, %v2909_v43, %v2907_v32 }
 0x2a8   : > { %v2915_v37 = vmul.f32 %v2910_v27, %v4848_v49  ;;  %v2916_v14 = vmul.f32 %v2914_v18, %v4851_v50  ;;  %v2881_v4 = vcombine.low %v2877_v53, %v2878_v29  ;;  %v2988_v1 = vpop.permute.xlu0 %2987 }
 0x2a9   : > { %v2839_v2 = vadd.f32 %v2837_v46, %v2806_v0  ;;  %v2903_v5 = vcombine.low %v2899_v13, %v2900_v23 }
 0x2aa   : > { %v2927_v26 = vrot.slane %v2915_v37, %v4634_v54  ;;  %v2949_v58 = vrot.slane %v2915_v37, %v4637_v55  ;;  %v2931_v44 = vrot.slane %v2916_v14, %v4634_v54  ;;  %v2953_v35 = vrot.slane %v2916_v14, %v4637_v55  ;;  %v2966_v24 = vpop.permute.xlu1 %2965 }
 0x2ab   : > { %v2861_v39 = vadd.f32 %v2859_v56, %v2839_v2  ;;  %v2971_v28 = vrot.slane %v2915_v37, %v4668_v9  ;;  %v2993_v16 = vrot.slane %v2915_v37, %v4683_v22  ;;  %v2997_v51 = vrot.slane %v2916_v14, %v4683_v22 }
 0x2ac   : > { %v2932_v17 = vmul.f32 %v2927_v26, %v2922_v42  ;;  %v2975_v34 = vrot.slane %v2916_v14, %v4668_v9  ;;  %v2933_v8 = vmul.f32 %v2931_v44, %v2922_v42  ;;  %v2954_v48 = vmul.f32 %v2949_v58, %v2944_v36  ;;  %v3025_v23 = vpop.permute.xlu0 %3024  ;;  %v4207_v26 = vld [vmem:[%s6009_s1 + $0x1f4] sm:$0xf]  ;;  %v4206_v58 = vld [vmem:[%s6009_s1 + $0x1f0] sm:$0xf]  ;;  %v4208_v44 = vld [vmem:[%s6009_s1 + $0x1f8] sm:$0xf] }
 0x2ad   : > { %v2883_v52 = vadd.f32 %v2881_v4, %v2861_v39  ;;  %v2955_v30 = vmul.f32 %v2953_v35, %v2944_v36  ;;  %v2976_v19 = vmul.f32 %v2971_v28, %v2966_v24  ;;  %v2998_v45 = vmul.f32 %v2993_v16, %v2988_v1  ;;  %v4204_v4 = vld [vmem:[%s6009_s1 + $0x1e8] sm:$0xf]  ;;  %v4205_v36 = vld [vmem:[%s6009_s1 + $0x1ec] sm:$0xf]  ;;  %v4210_v35 = vld [vmem:[%s6009_s1 + $0x200] sm:$0xf] }
 0x2ae   : > { %v2936_v20 = vcombine.low %v2932_v17, %v2933_v8  ;;  %v2977_v32 = vmul.f32 %v2975_v34, %v2966_v24  ;;  %v2999_v41 = vmul.f32 %v2997_v51, %v2988_v1  ;;  %v3010_v13 = vpop.permute.xlu1 %3009  ;;  %v3032_v18 = vrot.slane %v3025_v23, %v5268_v59  ;;  %v4211_v39 = vld [vmem:[%s6009_s1 + $0x204] sm:$0xf]  ;;  %v4212_v28 = vld [vmem:[%s6009_s1 + $0x208] sm:$0xf]  ;;  %v4213_v17 = vld [vmem:[%s6009_s1 + $0x20c] sm:$0xf] }
 0x2af   : > { %v2905_v31 = vadd.f32 %v2903_v5, %v2883_v52  ;;  %v2958_v46 = vcombine.low %v2954_v48, %v2955_v30  ;;  %v3017_v42 = vrot.slane %v3010_v13, %v5268_v59  ;;  %v4209_v5 = vld [vmem:[%s6009_s1 + $0x1fc] sm:$0xf]  ;;  %v4214_v16 = vld [vmem:[%s6009_s1 + $0x210] sm:$0xf]  ;;  %v4216_v51 = vld [vmem:[%s6009_s1 + $0x218] sm:$0xf] }
 0x2b0   : > { %v2980_v29 = vcombine.low %v2976_v19, %v2977_v32  ;;  %v3002_v43 = vcombine.low %v2998_v45, %v2999_v41  ;;  %v4215_v24 = vld [vmem:[%s6009_s1 + $0x214] sm:$0xf]  ;;  %v4217_v34 = vld [vmem:[%s6009_s1 + $0x21c] sm:$0xf]  ;;  %v4218_v8 = vld [vmem:[%s6009_s1 + $0x220] sm:$0xf] }
 0x2b1   : > { %v2938_v38 = vadd.f32 %v2936_v20, %v2905_v31  ;;  %v4219_v52 = vld [vmem:[%s6009_s1 + $0x224] sm:$0xf]  ;;  %v4220_v48 = vld [vmem:[%s6009_s1 + $0x228] sm:$0xf]  ;;  %v4221_v30 = vld [vmem:[%s6009_s1 + $0x22c] sm:$0xf] }
 0x2b2   : > { %v4222_v31 = vld [vmem:[%s6009_s1 + $0x230] sm:$0xf]  ;;  %v4223_v20 = vld [vmem:[%s6009_s1 + $0x234] sm:$0xf]  ;;  %v4225_v19 = vld [vmem:[%s6009_s1 + $0x23c] sm:$0xf]  ;;  %v3055_v41 = vpop.permute.xlu1 %3054 }
 0x2b3   : > { %v2960_v53 = vadd.f32 %v2958_v46, %v2938_v38  ;;  %v4224_v32 = vld [vmem:[%s6009_s1 + $0x238] sm:$0xf]  ;;  %v4227_v1 = vld [vmem:[%s6012_s4 + $0xc] sm:$0xf]  ;;  %v3077_v38 = vpop.permute.xlu0 %3076 }
 0x2b4   : > { %v4226_v45 = vld [vmem:[%s6011_s3 + $0xc] sm:$0xf] }
 0x2b5   : > { %v2982_v0 = vadd.f32 %v2980_v29, %v2960_v53 }
 0x2b6   : > { %v3099_v46 = vpop.permute.xlu1 %3098 }
 0x2b7   : > { %v3004_v27 = vadd.f32 %v3002_v43, %v2982_v0  ;;  %v3121_v53 = vpop.permute.xlu0 %3120 }
 0x2b9   : > { %v3019_v37 = vmul.f32 %v3017_v42, %v3004_v27 }
 0x2ba   : > { %v3154_v29 = vpop.permute.xlu1 %3153 }
 0x2bb   : > { %v3034_v2 = vadd.f32 %v3032_v18, %v3019_v37  ;;  %v3176_v13 = vpop.permute.xlu0 %3175 }
 0x2bd   : > { %v5645_v56 = vmax.f32 %v3034_v2, 0.0 }
 0x2be   : > { %v5745_v43 = vpop.permute.xlu1 %3197 }
 0x2bf   : > { %3339 = vrot.lane.b32.xlu1 %v5645_v56, %s4356_s8  ;;  %3042 = vrot.lane.b32.xlu0 %v5645_v56, %s4353_s14  ;;  %v3038_v14 = vcombine.high %v5645_v56, %v5645_v56  ;;  %v5747_v0 = vpop.permute.xlu0 %3219 }
 0x2c2   : > { %v5749_v23 = vpop.permute.xlu1 %3252 }
 0x2c3   : > { %3141 = vrot.lane.b32.xlu0 %v5645_v56, %s4354_s25  ;;  %3039 = vrot.lane.b32.xlu1 %v3038_v14, %s4353_s14  ;;  %v5751_v27 = vpop.permute.xlu0 %3274 }
 0x2c6   : > { %v5753_v42 = vpop.permute.xlu1 %3296 }
 0x2c7   : > { %3240 = vrot.lane.b32.xlu0 %v5645_v56, %s6065_s17  ;;  %3395 = vperm.xlu1 %4284, %v4204_v4   ;;  %v5755_v18 = vpop.permute.xlu0 %3318 }
 0x2ca   : > { %v5757_v37 = vpop.permute.xlu1 %3351 }
 0x2cb   : > { %3417 = vperm.xlu0 %4285, %v4205_v36   ;;  %3138 = vrot.lane.b32.xlu1 %v3038_v14, %s4354_s25  ;;  %v5759_v2 = vpop.permute.xlu0 %3373 }
 0x2cf   : > { %3471 = vperm.xlu0 %4285, %v4207_v26   ;;  %3439 = vperm.xlu1 %4284, %v4206_v58  }
 0x2d3   : > { %3535 = vperm.xlu0 %4285, %v4209_v5   ;;  %3237 = vrot.lane.b32.xlu1 %v3038_v14, %s6065_s17 }
 0x2d7   : > { %3563 = vrot.lane.b32.xlu0 %v5645_v56, %s6055_s15  ;;  %3503 = vperm.xlu1 %4284, %v4208_v44  }
 0x2db   : > { %3336 = vrot.lane.b32.xlu0 %v3038_v14, %s4356_s8  ;;  %3578 = vperm.xlu1 %4284, %v4210_v35  }
 0x2df   : > { %3600 = vperm.xlu0 %4285, %v4211_v39   ;;  %3622 = vperm.xlu1 %4284, %v4212_v28  }
 0x2e3   : > { %3644 = vperm.xlu0 %4285, %v4213_v17   ;;  %3677 = vperm.xlu1 %4284, %v4214_v16  }
 0x2e7   : > { %3662 = vrot.lane.b32.xlu0 %v5645_v56, %s6049_s11  ;;  %3721 = vperm.xlu1 %4284, %v4216_v51  }
 0x2eb   : > { %3699 = vperm.xlu0 %4285, %v4215_v24   ;;  %3565 = vrot.lane.b32.xlu1 %v3038_v14, %s6055_s15 }
 0x2ef   : > { %3743 = vperm.xlu0 %4285, %v4217_v34   ;;  %3776 = vperm.xlu1 %4284, %v4218_v8   ;;  %v3036_v8 = vadd.f32 %v5450_v57, %v5272_v40 }
 0x2f3   : > { %3761 = vrot.lane.b32.xlu0 %v5645_v56, %s6050_s30  ;;  %3664 = vrot.lane.b32.xlu1 %v3038_v14, %s6049_s11 }
 0x2f7   : > { %3798 = vperm.xlu0 %4285, %v4219_v52   ;;  %3820 = vperm.xlu1 %4284, %v4220_v48  }
 0x2fb   : > { %3842 = vperm.xlu0 %4285, %v4221_v30   ;;  %3763 = vrot.lane.b32.xlu1 %v3038_v14, %s6050_s30  ;;  %s4292_s30 = sshll.u32 %s4362_s22, 4  ;;  %s4293_s30 = int_to_ptr.vmem [resolvable:$false] %s4292_s30 }
 0x2fc   : > { %s4294_s17 = scalar_lea.vmem %s4293_s30, 256 }
 0x2ff   : > { %3860 = vrot.lane.b32.xlu0 %v5645_v56, %s6051_s23  ;;  %3875 = vperm.xlu1 %4284, %v4222_v31  }
 0x303   : > { %3897 = vperm.xlu0 %4285, %v4223_v20   ;;  %3862 = vrot.lane.b32.xlu1 %v3038_v14, %s6051_s23  ;;  %s215_s23 = sand.u32 1, %s4342_s19  }
 0x304   : > { %s4069_s13 = sshll.u32 %s215_s23, 3  ;;  %s3992_s7 = scalar_lea.sflag [#allocation3], %s215_s23 }
 0x305   : > { %s217_s8 = scalar_lea.vmem [#allocation2], %s4069_s13 }
 0x306   : > { %s4006_s26 = sshll.u32 %s217_s8, 4  ;;  %s5968_s26 = int_to_ptr.vmem [resolvable:$true] %s4006_s26 }
 0x307   : > { %3941 = vperm.xlu0 %4285, %v4225_v19   ;;  %3919 = vperm.xlu1 %4284, %v4224_v32   ;;  %s4288_s12 = scalar_lea.vmem %s5968_s26, 128  ;;  %p4295_p0 = scmp.lt.s32.totalorder %s5968_s26, %s4293_s30 }
 0x308   : > { %p4289_p11 = scmp.ne.s32.totalorder %s5968_s26, %s4288_s12  ;;  %p4296_p1 = scmp.lt.s32.totalorder %s4294_s17, %s4288_s12 }
 0x30a   : > { %p4290_p12 = pnand %p4289_p11, %p4431_p5  ;;  %p4297_p2 = por %p4296_p1, %p4295_p0 }
 0x30b   : > { %3978 = vperm.xlu0 %4285, %v4227_v1   ;;  %3963 = vperm.xlu1 %4284, %v4226_v45  }
 0x30c   : > { %p4291_p13 = pneg %p4290_p12 }
 0x30e   : > { %p4298_p3 = pnand %p4297_p2, %p4291_p13 }
 0x331   : > { %v5761_v14 = vpop.permute.xlu1 %3339  ;;  %v3043_v4 = vpop.permute.xlu0 %3042 }
 0x335   : > { %v3040_v36 = vpop.permute.xlu1 %3039  ;;  %v3142_v24 = vpop.permute.xlu0 %3141 }
 0x336   : > { %v3044_v26 = vsel %vm246_vm0, %v3043_v4, %v3040_v36  ;;  %v3047_v58 = vsel %vm246_vm0, %v3040_v36, %v3043_v4 }
 0x337   : > { %v3048_v5 = vmul.f32 %v3047_v58, %v4649_v61  ;;  %v3049_v44 = vmul.f32 %v3044_v26, %v4652_v62 }
 0x339   : > { %v3060_v35 = vrot.slane %v3048_v5, %v4634_v54  ;;  %v3064_v39 = vrot.slane %v3049_v44, %v4634_v54  ;;  %v3082_v16 = vrot.slane %v3048_v5, %v4637_v55  ;;  %v3086_v51 = vrot.slane %v3049_v44, %v4637_v55  ;;  %v3241_v19 = vpop.permute.xlu0 %3240 }
 0x33a   : > { %v3104_v61 = vrot.slane %v3048_v5, %v4668_v9  ;;  %v3108_v62 = vrot.slane %v3049_v44, %v4668_v9  ;;  %v3126_v31 = vrot.slane %v3048_v5, %v4683_v22  ;;  %v3130_v20 = vrot.slane %v3049_v44, %v4683_v22 }
 0x33b   : > { %v3065_v28 = vmul.f32 %v3060_v35, %v3055_v41  ;;  %v3066_v17 = vmul.f32 %v3064_v39, %v3055_v41  ;;  %v3087_v52 = vmul.f32 %v3082_v16, %v3077_v38  ;;  %v3088_v48 = vmul.f32 %v3086_v51, %v3077_v38 }
 0x33c   : > { %v3109_v45 = vmul.f32 %v3104_v61, %v3099_v46  ;;  %v3110_v41 = vmul.f32 %v3108_v62, %v3099_v46  ;;  %v3131_v36 = vmul.f32 %v3126_v31, %v3121_v53  ;;  %v3132_v40 = vmul.f32 %v3130_v20, %v3121_v53 }
 0x33d   : > { %v3069_v34 = vcombine.low %v3065_v28, %v3066_v17  ;;  %v3091_v1 = vcombine.low %v3087_v52, %v3088_v48 }
 0x33e   : > { %v3113_v26 = vcombine.low %v3109_v45, %v3110_v41  ;;  %v3135_v28 = vcombine.low %v3131_v36, %v3132_v40 }
 0x33f   : > { %v3071_v30 = vadd.f32 %v3069_v34, %v3036_v8 }
 0x341   : > { %v3093_v4 = vadd.f32 %v3091_v1, %v3071_v30 }
 0x343   : > { %v3115_v39 = vadd.f32 %v3113_v26, %v3093_v4 }
 0x345   : > { %v3137_v30 = vadd.f32 %v3135_v28, %v3115_v39 }
 0x346   : > { %v5777_v32 = vpop.permute.xlu1 %3395 }
 0x34a   : > { %v3139_v57 = vpop.permute.xlu1 %3138  ;;  %v5779_v38 = vpop.permute.xlu0 %3417 }
 0x34b   : > { %v3143_v58 = vsel %vm344_vm1, %v3142_v24, %v3139_v57  ;;  %v3146_v35 = vsel %vm344_vm1, %v3139_v57, %v3142_v24 }
 0x34c   : > { %v3147_v5 = vmul.f32 %v3146_v35, %v6059_v15  ;;  %v3148_v44 = vmul.f32 %v3143_v58, %v6060_v11 }
 0x34e   : > { %v3159_v17 = vrot.slane %v3147_v5, %v4634_v54  ;;  %v3163_v46 = vrot.slane %v3148_v44, %v4634_v54  ;;  %v3181_v53 = vrot.slane %v3147_v5, %v4637_v55  ;;  %v3185_v16 = vrot.slane %v3148_v44, %v4637_v55  ;;  %v5789_v51 = vpop.permute.xlu1 %3439  ;;  %v5791_v34 = vpop.permute.xlu0 %3471 }
 0x34f   : > { %v3203_v24 = vrot.slane %v3147_v5, %v4668_v9  ;;  %v3207_v15 = vrot.slane %v3148_v44, %v4668_v9  ;;  %v3225_v11 = vrot.slane %v3147_v5, %v4683_v22  ;;  %v3229_v8 = vrot.slane %v3148_v44, %v4683_v22 }
 0x350   : > { %v3164_v52 = vmul.f32 %v3159_v17, %v3154_v29  ;;  %v3165_v48 = vmul.f32 %v3163_v46, %v3154_v29  ;;  %v3186_v61 = vmul.f32 %v3181_v53, %v3176_v13  ;;  %v3187_v62 = vmul.f32 %v3185_v16, %v3176_v13 }
 0x351   : > { %v3208_v31 = vmul.f32 %v3203_v24, %v5745_v43  ;;  %v3209_v1 = vmul.f32 %v3207_v15, %v5745_v43  ;;  %v3230_v45 = vmul.f32 %v3225_v11, %v5747_v0  ;;  %v3231_v41 = vmul.f32 %v3229_v8, %v5747_v0 }
 0x352   : > { %v3168_v20 = vcombine.low %v3164_v52, %v3165_v48  ;;  %v3238_v4 = vpop.permute.xlu1 %3237  ;;  %v5801_v36 = vpop.permute.xlu0 %3535  ;;  %v3190_v57 = vcombine.low %v3186_v61, %v3187_v62 }
 0x353   : > { %v3242_v26 = vsel %vm443_vm2, %v3241_v19, %v3238_v4  ;;  %v3245_v29 = vsel %vm443_vm2, %v3238_v4, %v3241_v19  ;;  %v3212_v5 = vcombine.low %v3208_v31, %v3209_v1  ;;  %v3234_v43 = vcombine.low %v3230_v45, %v3231_v41 }
 0x354   : > { %v3170_v40 = vadd.f32 %v3168_v20, %v3137_v30  ;;  %v3246_v13 = vmul.f32 %v3245_v29, %v4707_v6  ;;  %v3247_v58 = vmul.f32 %v3242_v26, %v4710_v7  ;;  %v3445_v4 = vrot.slane %v5645_v56, %v4634_v54 }
 0x356   : > { %v3192_v35 = vadd.f32 %v3190_v57, %v3170_v40  ;;  %v5807_v44 = vpop.permute.xlu1 %3503  ;;  %v5809_v39 = vpop.permute.xlu0 %3563  ;;  %v3258_v0 = vrot.slane %v3246_v13, %v4634_v54  ;;  %v3262_v28 = vrot.slane %v3247_v58, %v4634_v54  ;;  %v3280_v17 = vrot.slane %v3246_v13, %v4637_v55  ;;  %v6066_v57 = vld [vmem:[#allocation7_spill] sm:$0xff] }
 0x357   : > { %v3284_v46 = vrot.slane %v3247_v58, %v4637_v55  ;;  %v3302_v6 = vrot.slane %v3246_v13, %v4668_v9  ;;  %v3306_v7 = vrot.slane %v3247_v58, %v4668_v9  ;;  %v3324_v53 = vrot.slane %v3246_v13, %v4683_v22 }
 0x358   : > { %v3214_v19 = vadd.f32 %v3212_v5, %v3192_v35  ;;  %v3263_v16 = vmul.f32 %v3258_v0, %v5749_v23  ;;  %v3264_v24 = vmul.f32 %v3262_v28, %v5749_v23  ;;  %v3285_v15 = vmul.f32 %v3280_v17, %v5751_v27 }
 0x359   : > { %v3286_v11 = vmul.f32 %v3284_v46, %v5751_v27  ;;  %v3328_v52 = vrot.slane %v3247_v58, %v4683_v22  ;;  %v3307_v30 = vmul.f32 %v3302_v6, %v5753_v42  ;;  %v3308_v31 = vmul.f32 %v3306_v7, %v5753_v42 }
 0x35a   : > { %v3236_v8 = vadd.f32 %v3234_v43, %v3214_v19  ;;  %v5823_v48 = vpop.permute.xlu1 %3578  ;;  %v3337_v61 = vpop.permute.xlu0 %3336  ;;  %v3267_v62 = vcombine.low %v3263_v16, %v3264_v24  ;;  %v3329_v20 = vmul.f32 %v3324_v53, %v5755_v18  ;;  %v3449_v40 = vrot.slane %v5645_v56, %v6061_v3 }
 0x35b   : > { %v3330_v1 = vmul.f32 %v3328_v52, %v5755_v18  ;;  %v3289_v45 = vcombine.low %v3285_v15, %v3286_v11  ;;  %v3341_v27 = vsel %vm542_vm3, %v5761_v14, %v3337_v61  ;;  %v3344_v41 = vsel %vm542_vm3, %v3337_v61, %v5761_v14  ;;  %v6067_v15 = vld [vmem:[#allocation9_spill] sm:$0xff] }
 0x35c   : > { %v3269_v23 = vadd.f32 %v3267_v62, %v3236_v8  ;;  %v3345_v42 = vmul.f32 %v3344_v41, %v4728_v47  ;;  %v3346_v26 = vmul.f32 %v3341_v27, %v6066_v57  ;;  %v3477_v13 = vrot.slane %v5645_v56, %v4637_v55 }
 0x35d   : > { %v3311_v35 = vcombine.low %v3307_v30, %v3308_v31  ;;  %v3333_v14 = vcombine.low %v3329_v20, %v3330_v1  ;;  %v3481_v11 = vrot.slane %v5645_v56, %v6067_v15  ;;  %v3541_v52 = vrot.slane %v5645_v56, %v4683_v22 }
 0x35e   : > { %v5839_v29 = vpop.permute.xlu1 %3622  ;;  %v5841_v18 = vpop.permute.xlu0 %3600  ;;  %v3291_v58 = vadd.f32 %v3289_v45, %v3269_v23  ;;  %v3357_v5 = vrot.slane %v3345_v42, %v4634_v54  ;;  %v3361_v43 = vrot.slane %v3346_v26, %v4634_v54  ;;  %v3379_v3 = vrot.slane %v3345_v42, %v4637_v55  ;;  %v6068_v23 = vld [vmem:[#allocation10_spill] sm:$0xff] }
 0x35f   : > { %v3383_v47 = vrot.slane %v3346_v26, %v4637_v55  ;;  %v3401_v28 = vrot.slane %v3345_v42, %v4668_v9  ;;  %v3405_v17 = vrot.slane %v3346_v26, %v4668_v9  ;;  %v3423_v46 = vrot.slane %v3345_v42, %v4683_v22 }
 0x360   : > { %v3313_v0 = vadd.f32 %v3311_v35, %v3291_v58  ;;  %v3362_v19 = vmul.f32 %v3357_v5, %v5757_v37  ;;  %v3363_v6 = vmul.f32 %v3361_v43, %v5757_v37  ;;  %v3384_v7 = vmul.f32 %v3379_v3, %v5759_v2 }
 0x361   : > { %v3385_v53 = vmul.f32 %v3383_v47, %v5759_v2  ;;  %v3427_v61 = vrot.slane %v3346_v26, %v4683_v22  ;;  %v3545_v37 = vrot.slane %v5645_v56, %v6064_v33  ;;  %v3406_v30 = vmul.f32 %v3401_v28, %v5777_v32 }
 0x362   : > { %v5856_v16 = vpop.permute.xlu1 %3677  ;;  %v5858_v24 = vpop.permute.xlu0 %3644  ;;  %v3335_v8 = vadd.f32 %v3333_v14, %v3313_v0  ;;  %v3366_v62 = vcombine.low %v3362_v19, %v3363_v6  ;;  %v3407_v2 = vmul.f32 %v3405_v17, %v5777_v32  ;;  %v3455_v31 = vrot.slane %v3445_v4, %v4634_v54 }
 0x363   : > { %v3459_v20 = vrot.slane %v3449_v40, %v4634_v54  ;;  %v3509_v1 = vrot.slane %v5645_v56, %v4668_v9  ;;  %v3513_v45 = vrot.slane %v5645_v56, %v6068_v23  ;;  %v3388_v41 = vcombine.low %v3384_v7, %v3385_v53 }
 0x364   : > { %v3368_v27 = vadd.f32 %v3366_v62, %v3335_v8  ;;  %v3428_v42 = vmul.f32 %v3423_v46, %v5779_v38  ;;  %v3429_v33 = vmul.f32 %v3427_v61, %v5779_v38  ;;  %v3487_v32 = vrot.slane %v3477_v13, %v4637_v55 }
 0x365   : > { %v3491_v4 = vrot.slane %v3481_v11, %v4637_v55  ;;  %v3460_v40 = vmul.f32 %v3455_v31, %v5789_v51  ;;  %v3461_v58 = vmul.f32 %v3459_v20, %v5789_v51  ;;  %v3410_v14 = vcombine.low %v3406_v30, %v3407_v2 }
 0x366   : > { %v5877_v57 = vpop.permute.xlu1 %3721  ;;  %v3663_v26 = vpop.permute.xlu0 %3662  ;;  %v3390_v35 = vadd.f32 %v3388_v41, %v3368_v27  ;;  %v3492_v56 = vmul.f32 %v3487_v32, %v5791_v34  ;;  %v3519_v43 = vrot.slane %v3509_v1, %v4668_v9  ;;  %v3523_v38 = vrot.slane %v3513_v45, %v4668_v9 }
 0x367   : > { %v3493_v5 = vmul.f32 %v3491_v4, %v5791_v34  ;;  %v3551_v3 = vrot.slane %v3541_v52, %v4683_v22  ;;  %v3555_v13 = vrot.slane %v3545_v37, %v4683_v22  ;;  %v3432_v0 = vcombine.low %v3428_v42, %v3429_v33 }
 0x368   : > { %v3412_v47 = vadd.f32 %v3410_v14, %v3390_v35  ;;  %v3524_v51 = vmul.f32 %v3519_v43, %v5807_v44  ;;  %v3525_v46 = vmul.f32 %v3523_v38, %v5807_v44  ;;  %v3464_v6 = vcombine.low %v3460_v40, %v3461_v58 }
 0x369   : > { %v3496_v11 = vcombine.low %v3492_v56, %v3493_v5  ;;  %v3556_v8 = vmul.f32 %v3551_v3, %v5801_v36  ;;  %v3557_v52 = vmul.f32 %v3555_v13, %v5801_v36 }
 0x36a   : > { %v3566_v28 = vpop.permute.xlu1 %3565  ;;  %v3700_v17 = vpop.permute.xlu0 %3699  ;;  %v3434_v7 = vadd.f32 %v3432_v0, %v3412_v47  ;;  %v3528_v2 = vcombine.low %v3524_v51, %v3525_v46 }
 0x36b   : > { %v3567_v19 = vsel %vm756_vm4, %v5809_v39, %v3566_v28  ;;  %v3571_v34 = vsel %vm756_vm4, %v3566_v28, %v5809_v39  ;;  %v3560_v41 = vcombine.low %v3556_v8, %v3557_v52 }
 0x36c   : > { %v3572_v53 = vmul.f32 %v3567_v19, %v4785_v21  ;;  %v3573_v15 = vmul.f32 %v3571_v34, %v4788_v25  ;;  %v3466_v61 = vadd.f32 %v3464_v6, %v3434_v7 }
 0x36e   : > { %v3584_v44 = vrot.slane %v3572_v53, %v4634_v54  ;;  %v3588_v37 = vrot.slane %v3573_v15, %v4634_v54  ;;  %v3606_v62 = vrot.slane %v3572_v53, %v4637_v55  ;;  %v5902_v30 = vpop.permute.xlu1 %3776  ;;  %v3744_v39 = vpop.permute.xlu0 %3743  ;;  %v3610_v21 = vrot.slane %v3573_v15, %v4637_v55 }
 0x36f   : > { %v3628_v25 = vrot.slane %v3572_v53, %v4668_v9  ;;  %v3498_v31 = vadd.f32 %v3496_v11, %v3466_v61  ;;  %v3632_v1 = vrot.slane %v3573_v15, %v4668_v9  ;;  %v3650_v27 = vrot.slane %v3572_v53, %v4683_v22 }
 0x370   : > { %v3589_v20 = vmul.f32 %v3584_v44, %v5823_v48  ;;  %v3590_v36 = vmul.f32 %v3588_v37, %v5823_v48  ;;  %v3611_v23 = vmul.f32 %v3606_v62, %v5841_v18  ;;  %v3612_v45 = vmul.f32 %v3610_v21, %v5841_v18 }
 0x371   : > { %v3530_v42 = vadd.f32 %v3528_v2, %v3498_v31  ;;  %v3654_v32 = vrot.slane %v3573_v15, %v4683_v22  ;;  %v3633_v58 = vmul.f32 %v3628_v25, %v5839_v29  ;;  %v3634_v14 = vmul.f32 %v3632_v1, %v5839_v29 }
 0x372   : > { %v3593_v33 = vcombine.low %v3589_v20, %v3590_v36  ;;  %v3665_v4 = vpop.permute.xlu1 %3664  ;;  %v3762_v40 = vpop.permute.xlu0 %3761  ;;  %v3615_v5 = vcombine.low %v3611_v23, %v3612_v45  ;;  %v3655_v43 = vmul.f32 %v3650_v27, %v5858_v24 }
 0x373   : > { %v3666_v35 = vsel %vm855_vm5, %v3663_v26, %v3665_v4  ;;  %v3562_v48 = vadd.f32 %v3560_v41, %v3530_v42  ;;  %v3670_v56 = vsel %vm855_vm5, %v3665_v4, %v3663_v26  ;;  %v3656_v13 = vmul.f32 %v3654_v32, %v5858_v24 }
 0x374   : > { %v3671_v18 = vmul.f32 %v3666_v35, %v4806_v10  ;;  %v3672_v38 = vmul.f32 %v3670_v56, %v4809_v12  ;;  %v3637_v19 = vcombine.low %v3633_v58, %v3634_v14 }
 0x375   : > { %v3595_v3 = vadd.f32 %v3593_v33, %v3562_v48  ;;  %v3659_v15 = vcombine.low %v3655_v43, %v3656_v13 }
 0x376   : > { %v3683_v47 = vrot.slane %v3671_v18, %v4634_v54  ;;  %v3705_v0 = vrot.slane %v3671_v18, %v4637_v55  ;;  %v3821_v28 = vpop.permute.xlu1 %3820  ;;  %v3799_v51 = vpop.permute.xlu0 %3798  ;;  %v3687_v29 = vrot.slane %v3672_v38, %v4634_v54  ;;  %v3709_v26 = vrot.slane %v3672_v38, %v4637_v55 }
 0x377   : > { %v3727_v10 = vrot.slane %v3671_v18, %v4668_v9  ;;  %v3617_v46 = vadd.f32 %v3615_v5, %v3595_v3  ;;  %v3731_v12 = vrot.slane %v3672_v38, %v4668_v9  ;;  %v3749_v6 = vrot.slane %v3671_v18, %v4683_v22 }
 0x378   : > { %v3688_v34 = vmul.f32 %v3683_v47, %v5856_v16  ;;  %v3689_v24 = vmul.f32 %v3687_v29, %v5856_v16  ;;  %v3753_v7 = vrot.slane %v3672_v38, %v4683_v22  ;;  %v3710_v11 = vmul.f32 %v3705_v0, %v3700_v17 }
 0x379   : > { %v3639_v53 = vadd.f32 %v3637_v19, %v3617_v46  ;;  %v3711_v8 = vmul.f32 %v3709_v26, %v3700_v17  ;;  %v3732_v37 = vmul.f32 %v3727_v10, %v5877_v57  ;;  %v3733_v2 = vmul.f32 %v3731_v12, %v5877_v57 }
 0x37a   : > { %v3764_v52 = vpop.permute.xlu1 %3763  ;;  %v3843_v61 = vpop.permute.xlu0 %3842  ;;  %v3692_v44 = vcombine.low %v3688_v34, %v3689_v24  ;;  %v3754_v25 = vmul.f32 %v3749_v6, %v3744_v39  ;;  %v3755_v31 = vmul.f32 %v3753_v7, %v3744_v39 }
 0x37b   : > { %v3661_v62 = vadd.f32 %v3659_v15, %v3639_v53  ;;  %v3765_v21 = vsel %vm954_vm6, %v3762_v40, %v3764_v52  ;;  %v3769_v16 = vsel %vm954_vm6, %v3764_v52, %v3762_v40  ;;  %v3714_v17 = vcombine.low %v3710_v11, %v3711_v8 }
 0x37c   : > { %v3770_v20 = vmul.f32 %v3765_v21, %v4827_v60  ;;  %v3771_v36 = vmul.f32 %v3769_v16, %v4830_v63  ;;  %v3736_v32 = vcombine.low %v3732_v37, %v3733_v2  ;;  %v3758_v4 = vcombine.low %v3754_v25, %v3755_v31 }
 0x37d   : > { %v3694_v1 = vadd.f32 %v3692_v44, %v3661_v62 }
 0x37e   : > { %v3876_v23 = vpop.permute.xlu1 %3875  ;;  %v3782_v45 = vrot.slane %v3770_v20, %v4634_v54  ;;  %v3786_v27 = vrot.slane %v3771_v36, %v4634_v54  ;;  %v3804_v41 = vrot.slane %v3770_v20, %v4637_v55  ;;  %v3808_v57 = vrot.slane %v3771_v36, %v4637_v55  ;;  %v3861_v42 = vpop.permute.xlu0 %3860 }
 0x37f   : > { %v3716_v33 = vadd.f32 %v3714_v17, %v3694_v1  ;;  %v3826_v39 = vrot.slane %v3770_v20, %v4668_v9  ;;  %v3830_v60 = vrot.slane %v3771_v36, %v4668_v9  ;;  %v3848_v58 = vrot.slane %v3770_v20, %v4683_v22 }
 0x380   : > { %v3787_v63 = vmul.f32 %v3782_v45, %v5902_v30  ;;  %v3788_v40 = vmul.f32 %v3786_v27, %v5902_v30  ;;  %v3809_v35 = vmul.f32 %v3804_v41, %v3799_v51  ;;  %v3810_v48 = vmul.f32 %v3808_v57, %v3799_v51 }
 0x381   : > { %v3738_v14 = vadd.f32 %v3736_v32, %v3716_v33  ;;  %v3852_v56 = vrot.slane %v3771_v36, %v4683_v22  ;;  %v3831_v3 = vmul.f32 %v3826_v39, %v3821_v28  ;;  %v3832_v13 = vmul.f32 %v3830_v60, %v3821_v28 }
 0x382   : > { %v3863_v18 = vpop.permute.xlu1 %3862  ;;  %v3791_v5 = vcombine.low %v3787_v63, %v3788_v40  ;;  %v3853_v0 = vmul.f32 %v3848_v58, %v3843_v61  ;;  %v3898_v10 = vpop.permute.xlu0 %3897  ;;  %v3813_v46 = vcombine.low %v3809_v35, %v3810_v48 }
 0x383   : > { %v3864_v43 = vsel %vm1053_vm7, %v3861_v42, %v3863_v18  ;;  %v3760_v38 = vadd.f32 %v3758_v4, %v3738_v14  ;;  %v3868_v47 = vsel %vm1053_vm7, %v3863_v18, %v3861_v42  ;;  %v3854_v29 = vmul.f32 %v3852_v56, %v3843_v61 }
 0x384   : > { %v3869_v30 = vmul.f32 %v3864_v43, %v4848_v49  ;;  %v3870_v26 = vmul.f32 %v3868_v47, %v4851_v50  ;;  %v3835_v6 = vcombine.low %v3831_v3, %v3832_v13 }
 0x385   : > { %v3793_v51 = vadd.f32 %v3791_v5, %v3760_v38  ;;  %v3857_v49 = vcombine.low %v3853_v0, %v3854_v29 }
 0x386   : > { %v3881_v19 = vrot.slane %v3869_v30, %v4634_v54  ;;  %v3885_v34 = vrot.slane %v3870_v26, %v4634_v54  ;;  %v3903_v12 = vrot.slane %v3869_v30, %v4637_v55  ;;  %v3907_v24 = vrot.slane %v3870_v26, %v4637_v55  ;;  %v3920_v11 = vpop.permute.xlu1 %3919  ;;  %v3942_v55 = vpop.permute.xlu0 %3941 }
 0x387   : > { %v3815_v28 = vadd.f32 %v3813_v46, %v3793_v51  ;;  %v3925_v7 = vrot.slane %v3869_v30, %v4668_v9  ;;  %v3929_v53 = vrot.slane %v3870_v26, %v4668_v9  ;;  %v3947_v8 = vrot.slane %v3869_v30, %v4683_v22 }
 0x388   : > { %v3886_v15 = vmul.f32 %v3881_v19, %v3876_v23  ;;  %v3887_v50 = vmul.f32 %v3885_v34, %v3876_v23  ;;  %v3908_v61 = vmul.f32 %v3903_v12, %v3898_v10  ;;  %v3909_v54 = vmul.f32 %v3907_v24, %v3898_v10 }
 0x389   : > { %v3837_v52 = vadd.f32 %v3835_v6, %v3815_v28  ;;  %v3951_v44 = vrot.slane %v3870_v26, %v4683_v22  ;;  %v3930_v2 = vmul.f32 %v3925_v7, %v3920_v11  ;;  %v3931_v21 = vmul.f32 %v3929_v53, %v3920_v11 }
 0x38a   : > { %v3890_v37 = vcombine.low %v3886_v15, %v3887_v50  ;;  %v3912_v9 = vcombine.low %v3908_v61, %v3909_v54  ;;  %v3952_v25 = vmul.f32 %v3947_v8, %v3942_v55  ;;  %v3964_v1 = vpop.permute.xlu1 %3963  ;;  %v3979_v45 = vpop.permute.xlu0 %3978 }
 0x38b   : > { %v3859_v62 = vadd.f32 %v3857_v49, %v3837_v52  ;;  %v3953_v31 = vmul.f32 %v3951_v44, %v3942_v55  ;;  %v3934_v36 = vcombine.low %v3930_v2, %v3931_v21  ;;  %v3971_v27 = vrot.slane %v3964_v1, %v5268_v59 }
 0x38c   : > { %v3986_v57 = vrot.slane %v3979_v45, %v5268_v59 }
 0x38d   : > { %v3892_v16 = vadd.f32 %v3890_v37, %v3859_v62  ;;  %v3956_v23 = vcombine.low %v3952_v25, %v3953_v31 }
 0x38f   : > { %v3914_v20 = vadd.f32 %v3912_v9, %v3892_v16 }
 0x391   : > { %v3936_v17 = vadd.f32 %v3934_v36, %v3914_v20 }
 0x393   : > { %v3958_v22 = vadd.f32 %v3956_v23, %v3936_v17 }
 0x395   : > { %v3973_v41 = vmul.f32 %v3971_v27, %v3958_v22 }
 0x397   : > { %v3988_v42 = vadd.f32 %v3986_v57, %v3973_v41 }
 0x399   : > { %v3989_v33 = vmax.f32 %v3988_v42, 0.0 }
 0x39b   : > { %3990 = vst [vmem:[%s217_s8] sm:$0xff] %v3989_v33 }
 0x39c   : > { %4301 = shalt.err (!%p4298_p3)
}
 0x39d   : > { %s4302_s14 = scalar_lea.hbm %s5966_s6, 128  ;;  %s4306_s15 = scalar_lea.hbm %s6013_s5, 256 }
 0x39e   : > { %p4303_p4 = scmp.ne.s32.totalorder %s5966_s6, %s4302_s14  ;;  %p4307_p9 = scmp.lt.u32.totalorder %s5966_s6, %s6013_s5 }
 0x39f   : > { %p4308_p10 = scmp.lt.u32.totalorder %s4306_s15, %s4302_s14  ;;  %p4310_p12 = scmp.lt.u32.totalorder %s4302_s14, %s5966_s6 }
 0x3a0   : > { %p4304_p7 = pnand %p4303_p4, %p4431_p5 }
 0x3a1   : > { %p4309_p11 = por %p4308_p10, %p4307_p9 }
 0x3a2   : > { %p4305_p8 = pneg %p4304_p7 }
 0x3a3   : > { %p4311_p13 = por %p4310_p12, %p4309_p11 }
 0x3a5   : > { %p4312_p0 = pnand %p4311_p13, %p4305_p8 }
 0x3a7   : > { %4315 = shalt.err (!%p4312_p0)
}
 0x3a8   : > { %4235 = dma.vmem_to_hbm [thread:$0]  (%p4431_p5), %s5968_s26, 128, %s5966_s6, %s3992_s7  }
 0x3a9 PF: > { %p4241_p1 = scmp.ge.s32.totalorder %s4350_s21, 2  ;;  %s4018_s16 = sand.u32 1, %s4338_s18  }
 0x3aa   : > { %s4019_s8 = scalar_lea.sflag [#allocation3], %s4018_s16 }
 0x3ab   : > { %p4238_p2 = pnand %p4241_p1, %p4435_p6 }
 0x3ad   : > { %4333 = dma.done.wait (!%p4238_p2), %s4019_s8, 128  }
 0x3ae   : > { %4335 = vsyncadd (!%p4238_p2), %s4019_s8, 4294967168  ;;  %p15_p3 = scmp.ge.s32.totalorder %s4418_s24, 4   ;;  %s6069_s18 = smov %s4342_s19 }
 0x3af   : > { %s6070_s19 = smov %s4346_s20  ;;  %s6071_s20 = smov %s4429_s27 }
 0x3b0   : > { %s6072_s21 = smov %s4418_s24  ;;  %17 = sbr.rel (!%p15_p3) target bundleno = 3 (0x3), region = 231 }
 0x3b7   :  { %4024 = vsyncpa [#allocation3], 1 }
 0x3b8   :  { %4026 = vsyncpa [#allocation3 + $0x1], 1 }

</bundles_post_ra>
